<compile_context>
chip_gen: v7x
topology: tpu7x:2x2x1
jax: 0.10.0
libtpu: 0.0.40
codegen_flags: <defaults>
</compile_context>

<pallas_src>
import functools
import math

import jax
import jax.numpy as jnp
from jax.experimental import pallas as pl
from jax.experimental.pallas import tpu as pltpu


# ----------------------------- BlockSpec helpers -----------------------------
def _fs(shape):
    """Whole-array block, same block for every grid point."""
    n = len(shape)
    return pl.BlockSpec(tuple(shape), lambda i, n=n: (0,) * n)


def _bfs(shape):
    """Block selecting slot `i` along a leading stacking axis (size 2)."""
    n = len(shape)
    return pl.BlockSpec((1,) + tuple(shape[1:]),
                        lambda i, n=n: (i,) + (0,) * (n - 1))


def _layer_norm(v, g, b, eps=1e-5):
    mu = jnp.mean(v, axis=-1, keepdims=True)
    var = jnp.mean((v - mu) ** 2, axis=-1, keepdims=True)
    return (v - mu) * jax.lax.rsqrt(var + eps) * g + b


# --------------------- kernel A: per-branch trunk + SAttention ---------------
def _branch_kernel(cont_ref, gate_ref,
                   tw_ref, tb_ref, cw_ref, cb_ref, pw_ref, pb_ref,
                   mw_ref, mb_ref, fw_ref, fb_ref,
                   dw_ref, db_ref,
                   g1_ref, b1_ref, qkv_ref, g2_ref, b2_ref,
                   w1_ref, bb1_ref, w2_ref, bb2_ref,
                   o_ref,
                   *, conv_kernel, conv_feat, ma_kernel, nhead, temperature):
    branch = pl.program_id(0)                       # 0 = trend, 1 = season
    is_trend = (branch == 0).astype(jnp.float32)    # scalar branch gate

    cont = cont_ref[...]                            # (B, T, F) continuous feats
    gate = gate_ref[...]                            # (B, T, G) gate feats
    B, T, F = cont.shape
    G = gate.shape[-1]
    C = tw_ref.shape[1]                             # d_feat (Filter channels)
    D = fw_ref.shape[1]                             # d_model
    P = dw_ref.shape[1]                             # DLinear output length (== T)
    dh = D // nhead

    # ---------------- Filter (feature gate) + market_linear -----------------
    gp = (jnp.dot(gate.reshape(B * T, G), tw_ref[...],
                  preferred_element_type=jnp.float32)
          + tb_ref[...]).reshape(B, T, C)           # Filter.trans
    # Depthwise Conv1d (stride == kernel) fused with proj_out into a single
    # weighted reduction over time:
    #   market[b,c] = sum_t gp[b,t,c] * mix[t,c] + (sum_f pw[f]) * cb[c] + pb
    # (conv weight layout: cw[k, c] == torch Conv1d weight[c, 0, k])
    pw = pw_ref[...]                                            # (conv_feat, 1)
    t_cov = conv_feat * conv_kernel
    mix = (pw[:, :, None] * cw_ref[...][None, :, :]).reshape(t_cov, C)
    bias_c = jnp.sum(pw, axis=0, keepdims=True) * cb_ref[...] + pb_ref[...]
    market = jnp.sum(gp[:, :t_cov, :] * mix[None, :, :], axis=1) + bias_c  # (B, C)
    mkt_add = (jnp.dot(market, mw_ref[...], preferred_element_type=jnp.float32)
               + mb_ref[...])                                   # (B, D)

    # ---------------- feat_to_model ------------------------------------------
    enc = (jnp.dot(cont.reshape(B * T, F), fw_ref[...],
                   preferred_element_type=jnp.float32)
           + fb_ref[...]).reshape(B, T, D)

    # ---------------- DLinear decomposition + per-branch time mix -----------
    # TODO(synk): DLinear source not provided; standard moving-average decomp.
    pad = (ma_kernel - 1) // 2
    front = jnp.broadcast_to(enc[:, :1, :], (B, pad, D))
    back = jnp.broadcast_to(enc[:, T - 1:, :], (B, pad, D))
    xp = jnp.concatenate([front, enc, back], axis=1)            # (B, T+2*pad, D)
    avg = xp[:, 0:T, :]
    for k in range(1, ma_kernel):
        avg = avg + xp[:, k:k + T, :]
    avg = avg / float(ma_kernel)                                # trend_init
    comp = is_trend * avg + (1.0 - is_trend) * (enc - avg)      # branch select
    # Linear(seq_len -> seq_len) over the time axis, as a 2-D MXU matmul:
    comp_t = comp.transpose(1, 0, 2).reshape(T, B * D)          # (T, B*D)
    comp = (jnp.dot(dw_ref[0], comp_t, preferred_element_type=jnp.float32)
            .reshape(P, B, D).transpose(1, 0, 2)) + db_ref[0][None]   # (B, P, D)

    # ---------------- SAttention (per-branch weights via BlockSpec) ---------
    xn = _layer_norm(comp, g1_ref[0], b1_ref[0])                # norm1
    qkv = jnp.dot(xn.reshape(B * P, D), qkv_ref[0],
                  preferred_element_type=jnp.float32)           # fused QKV (B*P, 3D)
    q3 = qkv[:, 0:D].reshape(B, P, D).transpose(1, 0, 2)        # (P, B, D)
    k3 = qkv[:, D:2 * D].reshape(B, P, D).transpose(1, 0, 2)
    v3 = qkv[:, 2 * D:3 * D].reshape(B, P, D).transpose(1, 0, 2)
    # Fold heads into the leading batch axis -> single batched contraction
    # (no per-head matmul loop, no per-head softmax).
    qh = jnp.concatenate([q3[:, :, h * dh:(h + 1) * dh] for h in range(nhead)], axis=0)
    kh = jnp.concatenate([k3[:, :, h * dh:(h + 1) * dh] for h in range(nhead)], axis=0)
    vh = jnp.concatenate([v3[:, :, h * dh:(h + 1) * dh] for h in range(nhead)], axis=0)
    s = jnp.einsum("gnd,gmd->gnm", qh, kh,
                   preferred_element_type=jnp.float32) / temperature   # (H*P, B, B)
    s = s - jnp.max(s, axis=-1, keepdims=True)
    es = jnp.exp(s)
    attw = es / jnp.sum(es, axis=-1, keepdims=True)             # softmax over stocks
    att = jnp.einsum("gnm,gmd->gnd", attw, vh,
                     preferred_element_type=jnp.float32)        # (H*P, B, dh)
    att = jnp.concatenate([att[h * P:(h + 1) * P] for h in range(nhead)], axis=-1)
    att = att.transpose(1, 0, 2)                                # (B, P, D)

    xt = _layer_norm(xn + att, g2_ref[0], b2_ref[0])            # norm2
    hid = jnp.maximum(
        jnp.dot(xt.reshape(B * P, D), w1_ref[0],
                preferred_element_type=jnp.float32) + bb1_ref[0], 0.0)
    ffn = jnp.dot(hid, w2_ref[0], preferred_element_type=jnp.float32) + bb2_ref[0]
    out = xt + ffn.reshape(B, P, D)
    # TODO(synk): RWKV Block (identity here) would be applied around this point.

    # trend branch only: + market_linear(market_signal), broadcast over time
    out = out + is_trend * mkt_add[:, None, :]
    o_ref[0] = out


# ------------- kernel B: fuse branches + TemporalAttention + head -----------
def _fuse_head_kernel(br_ref, ta_ref, hw_ref, hb_ref, o_ref):
    z = br_ref[0] + br_ref[1]                                   # (B, P, D)
    B, P, D = z.shape
    h = jnp.dot(z.reshape(B * P, D), ta_ref[...],
                preferred_element_type=jnp.float32).reshape(B, P, D)
    query = h[:, P - 1, :]                                      # (B, D)
    lam = jnp.sum(h * query[:, None, :], axis=-1)               # (B, P)
    lam = lam - jnp.max(lam, axis=1, keepdims=True)
    lam = jnp.exp(lam)
    lam = lam / jnp.sum(lam, axis=1, keepdims=True)             # softmax over time
    pooled = jnp.sum(lam[:, :, None] * z, axis=1)               # (B, D)
    o_ref[...] = (jnp.dot(pooled, hw_ref[...],
                          preferred_element_type=jnp.float32) + hb_ref[...])


# --------------------------------- forward ----------------------------------
def dft_forward(x, p, cfg):
    B, T, _ = x.shape
    gs, ge = cfg["gate_start"], cfg["gate_end"]
    Kc, Sc = cfg["conv_kernel"], cfg["conv_stride"]
    nhead = cfg["s_nhead"]

    cont = x[:, :, 6:gs]                            # (B, T, d_feat)
    gate = x[:, :, gs:ge]                           # (B, T, d_gate)
    F = cont.shape[-1]
    G = gate.shape[-1]
    C = p["trans_w"].shape[1]
    D = p["f2m_w"].shape[1]
    P = p["dlin_w"].shape[1]
    pred = p["head_w"].shape[1]
    conv_feat = (T - Kc) // Sc + 1
    temperature = math.sqrt(D / nhead)

    # DFT instantiates Filter with its defaults (kernel == stride); the fused
    # conv+proj reduction relies on the non-overlapping windows this implies.
    assert Kc == Sc, "Filter is instantiated with kernel == stride in DFT"
    # Equal-size heads (PyTorch gives the last head the remainder otherwise).
    assert D % nhead == 0, "d_model must be divisible by s_nhead"

    kern_a = functools.partial(
        _branch_kernel, conv_kernel=Kc, conv_feat=conv_feat, ma_kernel=3,
        nhead=nhead, temperature=temperature)

    branches = pl.pallas_call(
        kern_a,
        grid=(2,),                                  # 0 = trend, 1 = season
        in_specs=[
            _fs((B, T, F)), _fs((B, T, G)),
            _fs((G, C)), _fs((1, C)), _fs((Kc, C)), _fs((1, C)),
            _fs((conv_feat, 1)), _fs((1, 1)),
            _fs((C, D)), _fs((1, D)),
            _fs((C, D)), _fs((1, D)),
            _bfs((2, P, T)), _bfs((2, P, 1)),
            _bfs((2, 1, D)), _bfs((2, 1, D)),
            _bfs((2, D, 3 * D)),
            _bfs((2, 1, D)), _bfs((2, 1, D)),
            _bfs((2, D, D)), _bfs((2, 1, D)),
            _bfs((2, D, D)), _bfs((2, 1, D)),
        ],
        out_specs=pl.BlockSpec((1, B, P, D), lambda i: (i, 0, 0, 0)),
        out_shape=jax.ShapeDtypeStruct((2, B, P, D), jnp.float32),
        compiler_params=pltpu.CompilerParams(dimension_semantics=("parallel",)),
    )(cont, gate,
      p["trans_w"], p["trans_b"].reshape(1, C),
      p["conv_w"], p["conv_b"].reshape(1, C),
      p["proj_w"].reshape(conv_feat, 1), p["proj_b"].reshape(1, 1),
      p["mkt_w"], p["mkt_b"].reshape(1, D),
      p["f2m_w"], p["f2m_b"].reshape(1, D),
      p["dlin_w"], p["dlin_b"].reshape(2, P, 1),
      p["ln1_g"].reshape(2, 1, D), p["ln1_b"].reshape(2, 1, D),
      p["wqkv"],
      p["ln2_g"].reshape(2, 1, D), p["ln2_b"].reshape(2, 1, D),
      p["ffn_w1"], p["ffn_b1"].reshape(2, 1, D),
      p["ffn_w2"], p["ffn_b2"].reshape(2, 1, D))

    out = pl.pallas_call(
        _fuse_head_kernel,
        grid=(1,),
        in_specs=[_fs((2, B, P, D)), _fs((D, D)), _fs((D, pred)), _fs((1, pred))],
        out_specs=_fs((B, pred)),
        out_shape=jax.ShapeDtypeStruct((B, pred), jnp.float32),
    )(branches, p["ta_w"], p["head_w"], p["head_b"].reshape(1, pred))
    return out


# ----------------------------- parameter init --------------------------------
def init_params(key, cfg):
    F = cfg["d_feat"]
    D = cfg["d_model"]
    G = cfg["d_gate"]
    T = cfg["seq_len"]
    Kc = cfg["conv_kernel"]
    conv_feat = (T - Kc) // cfg["conv_stride"] + 1
    P = T                                           # DLinear(seq_len, pred_len=seq_len)
    pred = cfg["pred_len"]
    ks = iter(jax.random.split(key, 64))

    def w(shape, scale=0.1):
        return scale * jax.random.normal(next(ks), shape, dtype=jnp.float32)

    # stacked-[2] arrays: index 0 = trend branch, index 1 = season branch
    return dict(
        trans_w=w((G, F)), trans_b=w((F,), 0.01),
        conv_w=w((Kc, F)), conv_b=w((F,), 0.01),
        proj_w=w((conv_feat,)), proj_b=w((1,), 0.01),
        mkt_w=w((F, D)), mkt_b=w((D,), 0.01),
        f2m_w=w((F, D)), f2m_b=w((D,), 0.01),
        dlin_w=w((2, P, T)), dlin_b=w((2, P), 0.01),
        ln1_g=jnp.ones((2, D), jnp.float32), ln1_b=jnp.zeros((2, D), jnp.float32),
        wqkv=w((2, D, 3 * D)),                       # [wq | wk | wv] fused
        ln2_g=jnp.ones((2, D), jnp.float32), ln2_b=jnp.zeros((2, D), jnp.float32),
        ffn_w1=w((2, D, D)), ffn_b1=w((2, D), 0.01),
        ffn_w2=w((2, D, D)), ffn_b2=w((2, D), 0.01),
        ta_w=w((D, D)),
        head_w=w((D, pred)), head_b=w((pred,), 0.01),
    )


if __name__ == "__main__":
    # Small, internally consistent DFT config:
    #   continuous feats = x[:, :, 6:22]  -> d_feat = 16
    #   gate feats       = x[:, :, 22:32] -> d_gate_input = 10
    cfg = dict(d_feat=16, d_model=32, s_nhead=2, seq_len=8, pred_len=1,
               gate_start=22, gate_end=32, d_gate=10,
               conv_kernel=5, conv_stride=5)

    key = jax.random.PRNGKey(0)
    pkey, xkey = jax.random.split(key)
    params = init_params(pkey, cfg)

    B = 4
    x = jax.random.normal(xkey, (B, cfg["seq_len"], cfg["gate_end"]),
                          dtype=jnp.float32)

    fwd = jax.jit(lambda xx, pp: dft_forward(xx, pp, cfg))
    out = jax.block_until_ready(fwd(x, params))
    assert out.shape == (B, cfg["pred_len"]), out.shape
    assert bool(jnp.all(jnp.isfinite(out)))
    print("KERNEL_OK")
</pallas_src>

<mosaic_0001>
module attributes {stable_mosaic.version = 11 : i64} {
  func.func @_branch_kernel(%arg0: i32, %arg1: memref<4x8x16xf32, #tpu.memory_space<vmem>>, %arg2: memref<4x8x10xf32, #tpu.memory_space<vmem>>, %arg3: memref<10x16xf32, #tpu.memory_space<vmem>>, %arg4: memref<1x16xf32, #tpu.memory_space<vmem>>, %arg5: memref<5x16xf32, #tpu.memory_space<vmem>>, %arg6: memref<1x16xf32, #tpu.memory_space<vmem>>, %arg7: memref<1x1xf32, #tpu.memory_space<vmem>>, %arg8: memref<1x1xf32, #tpu.memory_space<vmem>>, %arg9: memref<16x32xf32, #tpu.memory_space<vmem>>, %arg10: memref<1x32xf32, #tpu.memory_space<vmem>>, %arg11: memref<16x32xf32, #tpu.memory_space<vmem>>, %arg12: memref<1x32xf32, #tpu.memory_space<vmem>>, %arg13: memref<1x8x8xf32, #tpu.memory_space<vmem>>, %arg14: memref<1x8x1xf32, #tpu.memory_space<vmem>>, %arg15: memref<1x1x32xf32, #tpu.memory_space<vmem>>, %arg16: memref<1x1x32xf32, #tpu.memory_space<vmem>>, %arg17: memref<1x32x96xf32, #tpu.memory_space<vmem>>, %arg18: memref<1x1x32xf32, #tpu.memory_space<vmem>>, %arg19: memref<1x1x32xf32, #tpu.memory_space<vmem>>, %arg20: memref<1x32x32xf32, #tpu.memory_space<vmem>>, %arg21: memref<1x1x32xf32, #tpu.memory_space<vmem>>, %arg22: memref<1x32x32xf32, #tpu.memory_space<vmem>>, %arg23: memref<1x1x32xf32, #tpu.memory_space<vmem>>, %arg24: memref<1x4x8x32xf32, #tpu.memory_space<vmem>>) attributes {dimension_semantics = [#tpu.dimension_semantics<parallel>], iteration_bounds = array<i64: 2>, scalar_prefetch = 0 : i64, scratch_operands = 0 : i64, tpu.core_type = #tpu.core_type<tc>, window_params = [{pipeline_mode = #tpu.pipeline_mode<synchronous>, transform_indices = @transform_0, window_bounds = array<i64: 4, 8, 16>}, {pipeline_mode = #tpu.pipeline_mode<synchronous>, transform_indices = @transform_1, window_bounds = array<i64: 4, 8, 10>}, {pipeline_mode = #tpu.pipeline_mode<synchronous>, transform_indices = @transform_2, window_bounds = array<i64: 10, 16>}, {pipeline_mode = #tpu.pipeline_mode<synchronous>, transform_indices = @transform_3, window_bounds = array<i64: 1, 16>}, {pipeline_mode = #tpu.pipeline_mode<synchronous>, transform_indices = @transform_4, window_bounds = array<i64: 5, 16>}, {pipeline_mode = #tpu.pipeline_mode<synchronous>, transform_indices = @transform_5, window_bounds = array<i64: 1, 16>}, {pipeline_mode = #tpu.pipeline_mode<synchronous>, transform_indices = @transform_6, window_bounds = array<i64: 1, 1>}, {pipeline_mode = #tpu.pipeline_mode<synchronous>, transform_indices = @transform_7, window_bounds = array<i64: 1, 1>}, {pipeline_mode = #tpu.pipeline_mode<synchronous>, transform_indices = @transform_8, window_bounds = array<i64: 16, 32>}, {pipeline_mode = #tpu.pipeline_mode<synchronous>, transform_indices = @transform_9, window_bounds = array<i64: 1, 32>}, {pipeline_mode = #tpu.pipeline_mode<synchronous>, transform_indices = @transform_10, window_bounds = array<i64: 16, 32>}, {pipeline_mode = #tpu.pipeline_mode<synchronous>, transform_indices = @transform_11, window_bounds = array<i64: 1, 32>}, {transform_indices = @transform_12, window_bounds = array<i64: 1, 8, 8>}, {transform_indices = @transform_13, window_bounds = array<i64: 1, 8, 1>}, {transform_indices = @transform_14, window_bounds = array<i64: 1, 1, 32>}, {transform_indices = @transform_15, window_bounds = array<i64: 1, 1, 32>}, {transform_indices = @transform_16, window_bounds = array<i64: 1, 32, 96>}, {transform_indices = @transform_17, window_bounds = array<i64: 1, 1, 32>}, {transform_indices = @transform_18, window_bounds = array<i64: 1, 1, 32>}, {transform_indices = @transform_19, window_bounds = array<i64: 1, 32, 32>}, {transform_indices = @transform_20, window_bounds = array<i64: 1, 1, 32>}, {transform_indices = @transform_21, window_bounds = array<i64: 1, 32, 32>}, {transform_indices = @transform_22, window_bounds = array<i64: 1, 1, 32>}, {transform_indices = @transform_23, window_bounds = array<i64: 1, 4, 8, 32>}]} {
    %c0_i32 = arith.constant 0 : i32
    %0 = arith.cmpi eq, %arg0, %c0_i32 : i32
    %1 = arith.extui %0 : i1 to i32
    %2 = arith.sitofp %1 : i32 to f32
    %c0 = arith.constant 0 : index
    %c0_0 = arith.constant 0 : index
    %c0_1 = arith.constant 0 : index
    %3 = vector.load %arg1[%c0, %c0_0, %c0_1] : memref<4x8x16xf32, #tpu.memory_space<vmem>>, vector<4x8x16xf32>
    %c0_2 = arith.constant 0 : index
    %c0_3 = arith.constant 0 : index
    %c0_4 = arith.constant 0 : index
    %4 = vector.load %arg2[%c0_2, %c0_3, %c0_4] : memref<4x8x10xf32, #tpu.memory_space<vmem>>, vector<4x8x10xf32>
    %5 = vector.shape_cast %4 : vector<4x8x10xf32> to vector<32x10xf32>
    %c0_5 = arith.constant 0 : index
    %c0_6 = arith.constant 0 : index
    %6 = vector.load %arg3[%c0_5, %c0_6] : memref<10x16xf32, #tpu.memory_space<vmem>>, vector<10x16xf32>
    %cst = arith.constant dense<0.000000e+00> : vector<32x16xf32>
    %7 = tpu.matmul %5, %6, %cst {dimension_numbers = #tpu.dot_dimension_numbers<[1], [0], [0], [1], [0, 0, 1, 1], [], []>} : vector<32x10xf32>, vector<10x16xf32>, vector<32x16xf32> -> vector<32x16xf32>
    %c0_7 = arith.constant 0 : index
    %c0_8 = arith.constant 0 : index
    %8 = vector.load %arg4[%c0_7, %c0_8] : memref<1x16xf32, #tpu.memory_space<vmem>>, vector<1x16xf32>
    %9 = vector.broadcast %8 : vector<1x16xf32> to vector<32x16xf32>
    %10 = arith.addf %7, %9 : vector<32x16xf32>
    %11 = vector.shape_cast %10 : vector<32x16xf32> to vector<4x8x16xf32>
    %c0_9 = arith.constant 0 : index
    %c0_10 = arith.constant 0 : index
    %12 = vector.load %arg7[%c0_9, %c0_10] : memref<1x1xf32, #tpu.memory_space<vmem>>, vector<1x1xf32>
    %13 = vector.shape_cast %12 : vector<1x1xf32> to vector<1x1x1xf32>
    %c0_11 = arith.constant 0 : index
    %c0_12 = arith.constant 0 : index
    %14 = vector.load %arg5[%c0_11, %c0_12] : memref<5x16xf32, #tpu.memory_space<vmem>>, vector<5x16xf32>
    %15 = vector.shape_cast %14 : vector<5x16xf32> to vector<1x5x16xf32>
    %16 = vector.broadcast %13 : vector<1x1x1xf32> to vector<1x5x16xf32>
    %17 = arith.mulf %16, %15 : vector<1x5x16xf32>
    %18 = vector.shape_cast %17 : vector<1x5x16xf32> to vector<5x16xf32>
    %cst_13 = arith.constant dense<0.000000e+00> : vector<1xf32>
    %19 = vector.multi_reduction <add>, %12, %cst_13 [0] : vector<1x1xf32> to vector<1xf32>
    %20 = vector.shape_cast %19 : vector<1xf32> to vector<1x1xf32>
    %c0_14 = arith.constant 0 : index
    %c0_15 = arith.constant 0 : index
    %21 = vector.load %arg6[%c0_14, %c0_15] : memref<1x16xf32, #tpu.memory_space<vmem>>, vector<1x16xf32>
    %22 = vector.broadcast %20 : vector<1x1xf32> to vector<1x16xf32>
    %23 = arith.mulf %22, %21 : vector<1x16xf32>
    %c0_16 = arith.constant 0 : index
    %c0_17 = arith.constant 0 : index
    %24 = vector.load %arg8[%c0_16, %c0_17] : memref<1x1xf32, #tpu.memory_space<vmem>>, vector<1x1xf32>
    %25 = vector.broadcast %24 : vector<1x1xf32> to vector<1x16xf32>
    %26 = arith.addf %23, %25 : vector<1x16xf32>
    %27 = vector.extract_strided_slice %11 {offsets = [0, 0, 0], sizes = [4, 5, 16], strides = [1, 1, 1]} : vector<4x8x16xf32> to vector<4x5x16xf32>
    %28 = vector.shape_cast %18 : vector<5x16xf32> to vector<1x5x16xf32>
    %29 = vector.broadcast %28 : vector<1x5x16xf32> to vector<4x5x16xf32>
    %30 = arith.mulf %27, %29 : vector<4x5x16xf32>
    %cst_18 = arith.constant dense<0.000000e+00> : vector<4x16xf32>
    %31 = vector.multi_reduction <add>, %30, %cst_18 [1] : vector<4x5x16xf32> to vector<4x16xf32>
    %32 = vector.broadcast %26 : vector<1x16xf32> to vector<4x16xf32>
    %33 = arith.addf %31, %32 : vector<4x16xf32>
    %c0_19 = arith.constant 0 : index
    %c0_20 = arith.constant 0 : index
    %34 = vector.load %arg9[%c0_19, %c0_20] : memref<16x32xf32, #tpu.memory_space<vmem>>, vector<16x32xf32>
    %cst_21 = arith.constant dense<0.000000e+00> : vector<4x32xf32>
    %35 = tpu.matmul %33, %34, %cst_21 {dimension_numbers = #tpu.dot_dimension_numbers<[1], [0], [0], [1], [0, 0, 1, 1], [], []>} : vector<4x16xf32>, vector<16x32xf32>, vector<4x32xf32> -> vector<4x32xf32>
    %c0_22 = arith.constant 0 : index
    %c0_23 = arith.constant 0 : index
    %36 = vector.load %arg10[%c0_22, %c0_23] : memref<1x32xf32, #tpu.memory_space<vmem>>, vector<1x32xf32>
    %37 = vector.broadcast %36 : vector<1x32xf32> to vector<4x32xf32>
    %38 = arith.addf %35, %37 : vector<4x32xf32>
    %39 = vector.shape_cast %3 : vector<4x8x16xf32> to vector<32x16xf32>
    %c0_24 = arith.constant 0 : index
    %c0_25 = arith.constant 0 : index
    %40 = vector.load %arg11[%c0_24, %c0_25] : memref<16x32xf32, #tpu.memory_space<vmem>>, vector<16x32xf32>
    %cst_26 = arith.constant dense<0.000000e+00> : vector<32x32xf32>
    %41 = tpu.matmul %39, %40, %cst_26 {dimension_numbers = #tpu.dot_dimension_numbers<[1], [0], [0], [1], [0, 0, 1, 1], [], []>} : vector<32x16xf32>, vector<16x32xf32>, vector<32x32xf32> -> vector<32x32xf32>
    %c0_27 = arith.constant 0 : index
    %c0_28 = arith.constant 0 : index
    %42 = vector.load %arg12[%c0_27, %c0_28] : memref<1x32xf32, #tpu.memory_space<vmem>>, vector<1x32xf32>
    %43 = vector.broadcast %42 : vector<1x32xf32> to vector<32x32xf32>
    %44 = arith.addf %41, %43 : vector<32x32xf32>
    %45 = vector.shape_cast %44 : vector<32x32xf32> to vector<4x8x32xf32>
    %46 = vector.extract_strided_slice %45 {offsets = [0, 0, 0], sizes = [4, 1, 32], strides = [1, 1, 1]} : vector<4x8x32xf32> to vector<4x1x32xf32>
    %47 = vector.extract_strided_slice %45 {offsets = [0, 7, 0], sizes = [4, 1, 32], strides = [1, 1, 1]} : vector<4x8x32xf32> to vector<4x1x32xf32>
    %48 = tpu.concatenate %46, %45, %47 in 1 : vector<4x1x32xf32>, vector<4x8x32xf32>, vector<4x1x32xf32> -> vector<4x10x32xf32>
    %49 = vector.extract_strided_slice %48 {offsets = [0, 0, 0], sizes = [4, 8, 32], strides = [1, 1, 1]} : vector<4x10x32xf32> to vector<4x8x32xf32>
    %50 = vector.extract_strided_slice %48 {offsets = [0, 1, 0], sizes = [4, 8, 32], strides = [1, 1, 1]} : vector<4x10x32xf32> to vector<4x8x32xf32>
    %51 = arith.addf %49, %50 : vector<4x8x32xf32>
    %52 = vector.extract_strided_slice %48 {offsets = [0, 2, 0], sizes = [4, 8, 32], strides = [1, 1, 1]} : vector<4x10x32xf32> to vector<4x8x32xf32>
    %53 = arith.addf %51, %52 : vector<4x8x32xf32>
    %cst_29 = arith.constant 3.000000e+00 : f32
    %54 = vector.broadcast %cst_29 : f32 to vector<4x8x32xf32>
    %55 = arith.divf %53, %54 : vector<4x8x32xf32>
    %56 = vector.broadcast %2 : f32 to vector<4x8x32xf32>
    %57 = arith.mulf %56, %55 : vector<4x8x32xf32>
    %cst_30 = arith.constant 1.000000e+00 : f32
    %58 = arith.subf %cst_30, %2 : f32
    %59 = arith.subf %45, %55 : vector<4x8x32xf32>
    %60 = vector.broadcast %58 : f32 to vector<4x8x32xf32>
    %61 = arith.mulf %60, %59 : vector<4x8x32xf32>
    %62 = arith.addf %57, %61 : vector<4x8x32xf32>
    %63 = tpu.transpose %62, [1, 0, 2] : vector<4x8x32xf32> -> vector<8x4x32xf32>
    %64 = vector.shape_cast %63 : vector<8x4x32xf32> to vector<8x128xf32>
    %c0_31 = arith.constant 0 : index
    %c0_32 = arith.constant 0 : index
    %c0_33 = arith.constant 0 : index
    %65 = vector.load %arg13[%c0_31, %c0_32, %c0_33] : memref<1x8x8xf32, #tpu.memory_space<vmem>>, vector<1x8x8xf32>
    %66 = vector.shape_cast %65 : vector<1x8x8xf32> to vector<8x8xf32>
    %cst_34 = arith.constant dense<0.000000e+00> : vector<8x128xf32>
    %67 = tpu.matmul %66, %64, %cst_34 {dimension_numbers = #tpu.dot_dimension_numbers<[1], [0], [0], [1], [0, 0, 1, 1], [], []>} : vector<8x8xf32>, vector<8x128xf32>, vector<8x128xf32> -> vector<8x128xf32>
    %68 = vector.shape_cast %67 : vector<8x128xf32> to vector<8x4x32xf32>
    %69 = tpu.transpose %68, [1, 0, 2] : vector<8x4x32xf32> -> vector<4x8x32xf32>
    %c0_35 = arith.constant 0 : index
    %c0_36 = arith.constant 0 : index
    %c0_37 = arith.constant 0 : index
    %70 = vector.load %arg14[%c0_35, %c0_36, %c0_37] : memref<1x8x1xf32, #tpu.memory_space<vmem>>, vector<1x8x1xf32>
    %71 = vector.shape_cast %70 : vector<1x8x1xf32> to vector<8x1xf32>
    %72 = vector.shape_cast %71 : vector<8x1xf32> to vector<1x8x1xf32>
    %73 = vector.broadcast %72 : vector<1x8x1xf32> to vector<4x8x32xf32>
    %74 = arith.addf %69, %73 : vector<4x8x32xf32>
    %c0_38 = arith.constant 0 : index
    %c0_39 = arith.constant 0 : index
    %c0_40 = arith.constant 0 : index
    %75 = vector.load %arg15[%c0_38, %c0_39, %c0_40] : memref<1x1x32xf32, #tpu.memory_space<vmem>>, vector<1x1x32xf32>
    %76 = vector.shape_cast %75 : vector<1x1x32xf32> to vector<1x32xf32>
    %c0_41 = arith.constant 0 : index
    %c0_42 = arith.constant 0 : index
    %c0_43 = arith.constant 0 : index
    %77 = vector.load %arg16[%c0_41, %c0_42, %c0_43] : memref<1x1x32xf32, #tpu.memory_space<vmem>>, vector<1x1x32xf32>
    %78 = vector.shape_cast %77 : vector<1x1x32xf32> to vector<1x32xf32>
    %cst_44 = arith.constant dense<0.000000e+00> : vector<4x8xf32>
    %79 = vector.multi_reduction <add>, %74, %cst_44 [2] : vector<4x8x32xf32> to vector<4x8xf32>
    %80 = vector.shape_cast %79 : vector<4x8xf32> to vector<4x8x1xf32>
    %cst_45 = arith.constant 3.200000e+01 : f32
    %81 = vector.broadcast %cst_45 : f32 to vector<4x8x1xf32>
    %82 = arith.divf %80, %81 : vector<4x8x1xf32>
    %83 = vector.broadcast %82 : vector<4x8x1xf32> to vector<4x8x32xf32>
    %84 = arith.subf %74, %83 : vector<4x8x32xf32>
    %85 = arith.mulf %84, %84 : vector<4x8x32xf32>
    %cst_46 = arith.constant dense<0.000000e+00> : vector<4x8xf32>
    %86 = vector.multi_reduction <add>, %85, %cst_46 [2] : vector<4x8x32xf32> to vector<4x8xf32>
    %87 = vector.shape_cast %86 : vector<4x8xf32> to vector<4x8x1xf32>
    %cst_47 = arith.constant 3.200000e+01 : f32
    %88 = vector.broadcast %cst_47 : f32 to vector<4x8x1xf32>
    %89 = arith.divf %87, %88 : vector<4x8x1xf32>
    %90 = vector.broadcast %82 : vector<4x8x1xf32> to vector<4x8x32xf32>
    %91 = arith.subf %74, %90 : vector<4x8x32xf32>
    %cst_48 = arith.constant 9.99999974E-6 : f32
    %92 = vector.broadcast %cst_48 : f32 to vector<4x8x1xf32>
    %93 = arith.addf %89, %92 : vector<4x8x1xf32>
    %94 = math.rsqrt %93 : vector<4x8x1xf32>
    %95 = vector.broadcast %94 : vector<4x8x1xf32> to vector<4x8x32xf32>
    %96 = arith.mulf %91, %95 : vector<4x8x32xf32>
    %97 = vector.shape_cast %76 : vector<1x32xf32> to vector<1x1x32xf32>
    %98 = vector.broadcast %97 : vector<1x1x32xf32> to vector<4x8x32xf32>
    %99 = arith.mulf %96, %98 : vector<4x8x32xf32>
    %100 = vector.shape_cast %78 : vector<1x32xf32> to vector<1x1x32xf32>
    %101 = vector.broadcast %100 : vector<1x1x32xf32> to vector<4x8x32xf32>
    %102 = arith.addf %99, %101 : vector<4x8x32xf32>
    %103 = vector.shape_cast %102 : vector<4x8x32xf32> to vector<32x32xf32>
    %c0_49 = arith.constant 0 : index
    %c0_50 = arith.constant 0 : index
    %c0_51 = arith.constant 0 : index
    %104 = vector.load %arg17[%c0_49, %c0_50, %c0_51] : memref<1x32x96xf32, #tpu.memory_space<vmem>>, vector<1x32x96xf32>
    %105 = vector.shape_cast %104 : vector<1x32x96xf32> to vector<32x96xf32>
    %cst_52 = arith.constant dense<0.000000e+00> : vector<32x96xf32>
    %106 = tpu.matmul %103, %105, %cst_52 {dimension_numbers = #tpu.dot_dimension_numbers<[1], [0], [0], [1], [0, 0, 1, 1], [], []>} : vector<32x32xf32>, vector<32x96xf32>, vector<32x96xf32> -> vector<32x96xf32>
    %107 = vector.extract_strided_slice %106 {offsets = [0, 0], sizes = [32, 32], strides = [1, 1]} : vector<32x96xf32> to vector<32x32xf32>
    %108 = vector.shape_cast %107 : vector<32x32xf32> to vector<4x8x32xf32>
    %109 = tpu.transpose %108, [1, 0, 2] : vector<4x8x32xf32> -> vector<8x4x32xf32>
    %110 = vector.extract_strided_slice %106 {offsets = [0, 32], sizes = [32, 32], strides = [1, 1]} : vector<32x96xf32> to vector<32x32xf32>
    %111 = vector.shape_cast %110 : vector<32x32xf32> to vector<4x8x32xf32>
    %112 = tpu.transpose %111, [1, 0, 2] : vector<4x8x32xf32> -> vector<8x4x32xf32>
    %113 = vector.extract_strided_slice %106 {offsets = [0, 64], sizes = [32, 32], strides = [1, 1]} : vector<32x96xf32> to vector<32x32xf32>
    %114 = vector.shape_cast %113 : vector<32x32xf32> to vector<4x8x32xf32>
    %115 = tpu.transpose %114, [1, 0, 2] : vector<4x8x32xf32> -> vector<8x4x32xf32>
    %116 = vector.extract_strided_slice %109 {offsets = [0, 0, 0], sizes = [8, 4, 16], strides = [1, 1, 1]} : vector<8x4x32xf32> to vector<8x4x16xf32>
    %117 = vector.extract_strided_slice %109 {offsets = [0, 0, 16], sizes = [8, 4, 16], strides = [1, 1, 1]} : vector<8x4x32xf32> to vector<8x4x16xf32>
    %118 = tpu.concatenate %116, %117 in 0 : vector<8x4x16xf32>, vector<8x4x16xf32> -> vector<16x4x16xf32>
    %119 = vector.extract_strided_slice %112 {offsets = [0, 0, 0], sizes = [8, 4, 16], strides = [1, 1, 1]} : vector<8x4x32xf32> to vector<8x4x16xf32>
    %120 = vector.extract_strided_slice %112 {offsets = [0, 0, 16], sizes = [8, 4, 16], strides = [1, 1, 1]} : vector<8x4x32xf32> to vector<8x4x16xf32>
    %121 = tpu.concatenate %119, %120 in 0 : vector<8x4x16xf32>, vector<8x4x16xf32> -> vector<16x4x16xf32>
    %122 = vector.extract_strided_slice %115 {offsets = [0, 0, 0], sizes = [8, 4, 16], strides = [1, 1, 1]} : vector<8x4x32xf32> to vector<8x4x16xf32>
    %123 = vector.extract_strided_slice %115 {offsets = [0, 0, 16], sizes = [8, 4, 16], strides = [1, 1, 1]} : vector<8x4x32xf32> to vector<8x4x16xf32>
    %124 = tpu.concatenate %122, %123 in 0 : vector<8x4x16xf32>, vector<8x4x16xf32> -> vector<16x4x16xf32>
    "tpu.trace_start"() <{level = 10 : i32, message = "gnd,gmd->gnm"}> : () -> ()
    %cst_53 = arith.constant dense<0.000000e+00> : vector<16x4x4xf32>
    %125 = tpu.matmul %118, %121, %cst_53 {dimension_numbers = #tpu.dot_dimension_numbers<[2], [2], [1], [1], [0, 0, 0, 1, 1, 1], [0], [0]>} : vector<16x4x16xf32>, vector<16x4x16xf32>, vector<16x4x4xf32> -> vector<16x4x4xf32>
    "tpu.trace_stop"() : () -> ()
    %cst_54 = arith.constant 4.000000e+00 : f32
    %126 = vector.broadcast %cst_54 : f32 to vector<16x4x4xf32>
    %127 = arith.divf %125, %126 : vector<16x4x4xf32>
    %cst_55 = arith.constant dense<0xFF800000> : vector<16x4xf32>
    %128 = vector.multi_reduction <maximumf>, %127, %cst_55 [2] : vector<16x4x4xf32> to vector<16x4xf32>
    %129 = vector.shape_cast %128 : vector<16x4xf32> to vector<16x4x1xf32>
    %130 = vector.broadcast %129 : vector<16x4x1xf32> to vector<16x4x4xf32>
    %131 = arith.subf %127, %130 : vector<16x4x4xf32>
    %132 = math.exp %131 : vector<16x4x4xf32>
    %cst_56 = arith.constant dense<0.000000e+00> : vector<16x4xf32>
    %133 = vector.multi_reduction <add>, %132, %cst_56 [2] : vector<16x4x4xf32> to vector<16x4xf32>
    %134 = vector.shape_cast %133 : vector<16x4xf32> to vector<16x4x1xf32>
    %135 = vector.broadcast %134 : vector<16x4x1xf32> to vector<16x4x4xf32>
    %136 = arith.divf %132, %135 : vector<16x4x4xf32>
    "tpu.trace_start"() <{level = 10 : i32, message = "gnm,gmd->gnd"}> : () -> ()
    %cst_57 = arith.constant dense<0.000000e+00> : vector<16x4x16xf32>
    %137 = tpu.matmul %136, %124, %cst_57 {dimension_numbers = #tpu.dot_dimension_numbers<[2], [1], [1], [2], [0, 0, 0, 1, 1, 2], [0], [0]>} : vector<16x4x4xf32>, vector<16x4x16xf32>, vector<16x4x16xf32> -> vector<16x4x16xf32>
    "tpu.trace_stop"() : () -> ()
    %138 = vector.extract_strided_slice %137 {offsets = [0, 0, 0], sizes = [8, 4, 16], strides = [1, 1, 1]} : vector<16x4x16xf32> to vector<8x4x16xf32>
    %139 = vector.extract_strided_slice %137 {offsets = [8, 0, 0], sizes = [8, 4, 16], strides = [1, 1, 1]} : vector<16x4x16xf32> to vector<8x4x16xf32>
    %140 = tpu.concatenate %138, %139 in 2 : vector<8x4x16xf32>, vector<8x4x16xf32> -> vector<8x4x32xf32>
    %141 = tpu.transpose %140, [1, 0, 2] : vector<8x4x32xf32> -> vector<4x8x32xf32>
    %142 = arith.addf %102, %141 : vector<4x8x32xf32>
    %c0_58 = arith.constant 0 : index
    %c0_59 = arith.constant 0 : index
    %c0_60 = arith.constant 0 : index
    %143 = vector.load %arg18[%c0_58, %c0_59, %c0_60] : memref<1x1x32xf32, #tpu.memory_space<vmem>>, vector<1x1x32xf32>
    %144 = vector.shape_cast %143 : vector<1x1x32xf32> to vector<1x32xf32>
    %c0_61 = arith.constant 0 : index
    %c0_62 = arith.constant 0 : index
    %c0_63 = arith.constant 0 : index
    %145 = vector.load %arg19[%c0_61, %c0_62, %c0_63] : memref<1x1x32xf32, #tpu.memory_space<vmem>>, vector<1x1x32xf32>
    %146 = vector.shape_cast %145 : vector<1x1x32xf32> to vector<1x32xf32>
    %cst_64 = arith.constant dense<0.000000e+00> : vector<4x8xf32>
    %147 = vector.multi_reduction <add>, %142, %cst_64 [2] : vector<4x8x32xf32> to vector<4x8xf32>
    %148 = vector.shape_cast %147 : vector<4x8xf32> to vector<4x8x1xf32>
    %cst_65 = arith.constant 3.200000e+01 : f32
    %149 = vector.broadcast %cst_65 : f32 to vector<4x8x1xf32>
    %150 = arith.divf %148, %149 : vector<4x8x1xf32>
    %151 = vector.broadcast %150 : vector<4x8x1xf32> to vector<4x8x32xf32>
    %152 = arith.subf %142, %151 : vector<4x8x32xf32>
    %153 = arith.mulf %152, %152 : vector<4x8x32xf32>
    %cst_66 = arith.constant dense<0.000000e+00> : vector<4x8xf32>
    %154 = vector.multi_reduction <add>, %153, %cst_66 [2] : vector<4x8x32xf32> to vector<4x8xf32>
    %155 = vector.shape_cast %154 : vector<4x8xf32> to vector<4x8x1xf32>
    %cst_67 = arith.constant 3.200000e+01 : f32
    %156 = vector.broadcast %cst_67 : f32 to vector<4x8x1xf32>
    %157 = arith.divf %155, %156 : vector<4x8x1xf32>
    %158 = vector.broadcast %150 : vector<4x8x1xf32> to vector<4x8x32xf32>
    %159 = arith.subf %142, %158 : vector<4x8x32xf32>
    %cst_68 = arith.constant 9.99999974E-6 : f32
    %160 = vector.broadcast %cst_68 : f32 to vector<4x8x1xf32>
    %161 = arith.addf %157, %160 : vector<4x8x1xf32>
    %162 = math.rsqrt %161 : vector<4x8x1xf32>
    %163 = vector.broadcast %162 : vector<4x8x1xf32> to vector<4x8x32xf32>
    %164 = arith.mulf %159, %163 : vector<4x8x32xf32>
    %165 = vector.shape_cast %144 : vector<1x32xf32> to vector<1x1x32xf32>
    %166 = vector.broadcast %165 : vector<1x1x32xf32> to vector<4x8x32xf32>
    %167 = arith.mulf %164, %166 : vector<4x8x32xf32>
    %168 = vector.shape_cast %146 : vector<1x32xf32> to vector<1x1x32xf32>
    %169 = vector.broadcast %168 : vector<1x1x32xf32> to vector<4x8x32xf32>
    %170 = arith.addf %167, %169 : vector<4x8x32xf32>
    %171 = vector.shape_cast %170 : vector<4x8x32xf32> to vector<32x32xf32>
    %c0_69 = arith.constant 0 : index
    %c0_70 = arith.constant 0 : index
    %c0_71 = arith.constant 0 : index
    %172 = vector.load %arg20[%c0_69, %c0_70, %c0_71] : memref<1x32x32xf32, #tpu.memory_space<vmem>>, vector<1x32x32xf32>
    %173 = vector.shape_cast %172 : vector<1x32x32xf32> to vector<32x32xf32>
    %cst_72 = arith.constant dense<0.000000e+00> : vector<32x32xf32>
    %174 = tpu.matmul %171, %173, %cst_72 {dimension_numbers = #tpu.dot_dimension_numbers<[1], [0], [0], [1], [0, 0, 1, 1], [], []>} : vector<32x32xf32>, vector<32x32xf32>, vector<32x32xf32> -> vector<32x32xf32>
    %c0_73 = arith.constant 0 : index
    %c0_74 = arith.constant 0 : index
    %c0_75 = arith.constant 0 : index
    %175 = vector.load %arg21[%c0_73, %c0_74, %c0_75] : memref<1x1x32xf32, #tpu.memory_space<vmem>>, vector<1x1x32xf32>
    %176 = vector.shape_cast %175 : vector<1x1x32xf32> to vector<1x32xf32>
    %177 = vector.broadcast %176 : vector<1x32xf32> to vector<32x32xf32>
    %178 = arith.addf %174, %177 : vector<32x32xf32>
    %cst_76 = arith.constant 0.000000e+00 : f32
    %179 = vector.broadcast %cst_76 : f32 to vector<32x32xf32>
    %180 = arith.maximumf %178, %179 : vector<32x32xf32>
    %c0_77 = arith.constant 0 : index
    %c0_78 = arith.constant 0 : index
    %c0_79 = arith.constant 0 : index
    %181 = vector.load %arg22[%c0_77, %c0_78, %c0_79] : memref<1x32x32xf32, #tpu.memory_space<vmem>>, vector<1x32x32xf32>
    %182 = vector.shape_cast %181 : vector<1x32x32xf32> to vector<32x32xf32>
    %cst_80 = arith.constant dense<0.000000e+00> : vector<32x32xf32>
    %183 = tpu.matmul %180, %182, %cst_80 {dimension_numbers = #tpu.dot_dimension_numbers<[1], [0], [0], [1], [0, 0, 1, 1], [], []>} : vector<32x32xf32>, vector<32x32xf32>, vector<32x32xf32> -> vector<32x32xf32>
    %c0_81 = arith.constant 0 : index
    %c0_82 = arith.constant 0 : index
    %c0_83 = arith.constant 0 : index
    %184 = vector.load %arg23[%c0_81, %c0_82, %c0_83] : memref<1x1x32xf32, #tpu.memory_space<vmem>>, vector<1x1x32xf32>
    %185 = vector.shape_cast %184 : vector<1x1x32xf32> to vector<1x32xf32>
    %186 = vector.broadcast %185 : vector<1x32xf32> to vector<32x32xf32>
    %187 = arith.addf %183, %186 : vector<32x32xf32>
    %188 = vector.shape_cast %187 : vector<32x32xf32> to vector<4x8x32xf32>
    %189 = arith.addf %170, %188 : vector<4x8x32xf32>
    %190 = vector.shape_cast %38 : vector<4x32xf32> to vector<4x1x32xf32>
    %191 = vector.broadcast %2 : f32 to vector<4x1x32xf32>
    %192 = arith.mulf %191, %190 : vector<4x1x32xf32>
    %193 = vector.broadcast %192 : vector<4x1x32xf32> to vector<4x8x32xf32>
    %194 = arith.addf %189, %193 : vector<4x8x32xf32>
    %c0_84 = arith.constant 0 : index
    %c0_85 = arith.constant 0 : index
    %c0_86 = arith.constant 0 : index
    %c0_87 = arith.constant 0 : index
    %195 = vector.load %arg24[%c0_84, %c0_85, %c0_86, %c0_87] : memref<1x4x8x32xf32, #tpu.memory_space<vmem>>, vector<1x4x8x32xf32>
    %196 = vector.shape_cast %195 : vector<1x4x8x32xf32> to vector<4x8x32xf32>
    %197 = vector.shape_cast %194 : vector<4x8x32xf32> to vector<1x4x8x32xf32>
    tpu.vector_store %arg24[%c0_84, %c0_85, %c0_86, %c0_87], %197 {strides = array<i32>} : memref<1x4x8x32xf32, #tpu.memory_space<vmem>>, vector<1x4x8x32xf32>,
    return
  }
  func.func @transform_0(%arg0: i32) -> (i32, i32, i32) {
    %c0_i32 = arith.constant 0 : i32
    %c0_i32_0 = arith.constant 0 : i32
    %c0_i32_1 = arith.constant 0 : i32
    %c0_i32_2 = arith.constant 0 : i32
    return %c0_i32, %c0_i32_0, %c0_i32_1 : i32, i32, i32
  }
  func.func @transform_1(%arg0: i32) -> (i32, i32, i32) {
    %c0_i32 = arith.constant 0 : i32
    %c0_i32_0 = arith.constant 0 : i32
    %c0_i32_1 = arith.constant 0 : i32
    %c0_i32_2 = arith.constant 0 : i32
    return %c0_i32, %c0_i32_0, %c0_i32_1 : i32, i32, i32
  }
  func.func @transform_2(%arg0: i32) -> (i32, i32) {
    %c0_i32 = arith.constant 0 : i32
    %c0_i32_0 = arith.constant 0 : i32
    %c0_i32_1 = arith.constant 0 : i32
    return %c0_i32, %c0_i32_0 : i32, i32
  }
  func.func @transform_3(%arg0: i32) -> (i32, i32) {
    %c0_i32 = arith.constant 0 : i32
    %c0_i32_0 = arith.constant 0 : i32
    %c0_i32_1 = arith.constant 0 : i32
    return %c0_i32, %c0_i32_0 : i32, i32
  }
  func.func @transform_4(%arg0: i32) -> (i32, i32) {
    %c0_i32 = arith.constant 0 : i32
    %c0_i32_0 = arith.constant 0 : i32
    %c0_i32_1 = arith.constant 0 : i32
    return %c0_i32, %c0_i32_0 : i32, i32
  }
  func.func @transform_5(%arg0: i32) -> (i32, i32) {
    %c0_i32 = arith.constant 0 : i32
    %c0_i32_0 = arith.constant 0 : i32
    %c0_i32_1 = arith.constant 0 : i32
    return %c0_i32, %c0_i32_0 : i32, i32
  }
  func.func @transform_6(%arg0: i32) -> (i32, i32) {
    %c0_i32 = arith.constant 0 : i32
    %c0_i32_0 = arith.constant 0 : i32
    %c0_i32_1 = arith.constant 0 : i32
    return %c0_i32, %c0_i32_0 : i32, i32
  }
  func.func @transform_7(%arg0: i32) -> (i32, i32) {
    %c0_i32 = arith.constant 0 : i32
    %c0_i32_0 = arith.constant 0 : i32
    %c0_i32_1 = arith.constant 0 : i32
    return %c0_i32, %c0_i32_0 : i32, i32
  }
  func.func @transform_8(%arg0: i32) -> (i32, i32) {
    %c0_i32 = arith.constant 0 : i32
    %c0_i32_0 = arith.constant 0 : i32
    %c0_i32_1 = arith.constant 0 : i32
    return %c0_i32, %c0_i32_0 : i32, i32
  }
  func.func @transform_9(%arg0: i32) -> (i32, i32) {
    %c0_i32 = arith.constant 0 : i32
    %c0_i32_0 = arith.constant 0 : i32
    %c0_i32_1 = arith.constant 0 : i32
    return %c0_i32, %c0_i32_0 : i32, i32
  }
  func.func @transform_10(%arg0: i32) -> (i32, i32) {
    %c0_i32 = arith.constant 0 : i32
    %c0_i32_0 = arith.constant 0 : i32
    %c0_i32_1 = arith.constant 0 : i32
    return %c0_i32, %c0_i32_0 : i32, i32
  }
  func.func @transform_11(%arg0: i32) -> (i32, i32) {
    %c0_i32 = arith.constant 0 : i32
    %c0_i32_0 = arith.constant 0 : i32
    %c0_i32_1 = arith.constant 0 : i32
    return %c0_i32, %c0_i32_0 : i32, i32
  }
  func.func @transform_12(%arg0: i32) -> (i32, i32, i32) {
    %c0_i32 = arith.constant 0 : i32
    %c0_i32_0 = arith.constant 0 : i32
    %c0_i32_1 = arith.constant 0 : i32
    return %arg0, %c0_i32, %c0_i32_0 : i32, i32, i32
  }
  func.func @transform_13(%arg0: i32) -> (i32, i32, i32) {
    %c0_i32 = arith.constant 0 : i32
    %c0_i32_0 = arith.constant 0 : i32
    %c0_i32_1 = arith.constant 0 : i32
    return %arg0, %c0_i32, %c0_i32_0 : i32, i32, i32
  }
  func.func @transform_14(%arg0: i32) -> (i32, i32, i32) {
    %c0_i32 = arith.constant 0 : i32
    %c0_i32_0 = arith.constant 0 : i32
    %c0_i32_1 = arith.constant 0 : i32
    return %arg0, %c0_i32, %c0_i32_0 : i32, i32, i32
  }
  func.func @transform_15(%arg0: i32) -> (i32, i32, i32) {
    %c0_i32 = arith.constant 0 : i32
    %c0_i32_0 = arith.constant 0 : i32
    %c0_i32_1 = arith.constant 0 : i32
    return %arg0, %c0_i32, %c0_i32_0 : i32, i32, i32
  }
  func.func @transform_16(%arg0: i32) -> (i32, i32, i32) {
    %c0_i32 = arith.constant 0 : i32
    %c0_i32_0 = arith.constant 0 : i32
    %c0_i32_1 = arith.constant 0 : i32
    return %arg0, %c0_i32, %c0_i32_0 : i32, i32, i32
  }
  func.func @transform_17(%arg0: i32) -> (i32, i32, i32) {
    %c0_i32 = arith.constant 0 : i32
    %c0_i32_0 = arith.constant 0 : i32
    %c0_i32_1 = arith.constant 0 : i32
    return %arg0, %c0_i32, %c0_i32_0 : i32, i32, i32
  }
  func.func @transform_18(%arg0: i32) -> (i32, i32, i32) {
    %c0_i32 = arith.constant 0 : i32
    %c0_i32_0 = arith.constant 0 : i32
    %c0_i32_1 = arith.constant 0 : i32
    return %arg0, %c0_i32, %c0_i32_0 : i32, i32, i32
  }
  func.func @transform_19(%arg0: i32) -> (i32, i32, i32) {
    %c0_i32 = arith.constant 0 : i32
    %c0_i32_0 = arith.constant 0 : i32
    %c0_i32_1 = arith.constant 0 : i32
    return %arg0, %c0_i32, %c0_i32_0 : i32, i32, i32
  }
  func.func @transform_20(%arg0: i32) -> (i32, i32, i32) {
    %c0_i32 = arith.constant 0 : i32
    %c0_i32_0 = arith.constant 0 : i32
    %c0_i32_1 = arith.constant 0 : i32
    return %arg0, %c0_i32, %c0_i32_0 : i32, i32, i32
  }
  func.func @transform_21(%arg0: i32) -> (i32, i32, i32) {
    %c0_i32 = arith.constant 0 : i32
    %c0_i32_0 = arith.constant 0 : i32
    %c0_i32_1 = arith.constant 0 : i32
    return %arg0, %c0_i32, %c0_i32_0 : i32, i32, i32
  }
  func.func @transform_22(%arg0: i32) -> (i32, i32, i32) {
    %c0_i32 = arith.constant 0 : i32
    %c0_i32_0 = arith.constant 0 : i32
    %c0_i32_1 = arith.constant 0 : i32
    return %arg0, %c0_i32, %c0_i32_0 : i32, i32, i32
  }
  func.func @transform_23(%arg0: i32) -> (i32, i32, i32, i32) {
    %c0_i32 = arith.constant 0 : i32
    %c0_i32_0 = arith.constant 0 : i32
    %c0_i32_1 = arith.constant 0 : i32
    %c0_i32_2 = arith.constant 0 : i32
    return %arg0, %c0_i32, %c0_i32_0, %c0_i32_1 : i32, i32, i32, i32
  }
}

module attributes {stable_mosaic.version = 11 : i64} {
  func.func @_fuse_head_kernel(%arg0: i32, %arg1: memref<2x4x8x32xf32, #tpu.memory_space<vmem>>, %arg2: memref<32x32xf32, #tpu.memory_space<vmem>>, %arg3: memref<32x1xf32, #tpu.memory_space<vmem>>, %arg4: memref<1x1xf32, #tpu.memory_space<vmem>>, %arg5: memref<4x1xf32, #tpu.memory_space<vmem>>) attributes {dimension_semantics = [#tpu.dimension_semantics<arbitrary>], iteration_bounds = array<i64: 1>, scalar_prefetch = 0 : i64, scratch_operands = 0 : i64, tpu.core_type = #tpu.core_type<tc>, window_params = [{pipeline_mode = #tpu.pipeline_mode<synchronous>, transform_indices = @transform_0, window_bounds = array<i64: 2, 4, 8, 32>}, {pipeline_mode = #tpu.pipeline_mode<synchronous>, transform_indices = @transform_1, window_bounds = array<i64: 32, 32>}, {pipeline_mode = #tpu.pipeline_mode<synchronous>, transform_indices = @transform_2, window_bounds = array<i64: 32, 1>}, {pipeline_mode = #tpu.pipeline_mode<synchronous>, transform_indices = @transform_3, window_bounds = array<i64: 1, 1>}, {pipeline_mode = #tpu.pipeline_mode<synchronous>, transform_indices = @transform_4, window_bounds = array<i64: 4, 1>}]} {
    %c0 = arith.constant 0 : index
    %c0_0 = arith.constant 0 : index
    %c0_1 = arith.constant 0 : index
    %c0_2 = arith.constant 0 : index
    %0 = vector.load %arg1[%c0, %c0_0, %c0_1, %c0_2] : memref<2x4x8x32xf32, #tpu.memory_space<vmem>>, vector<1x4x8x32xf32>
    %1 = vector.shape_cast %0 : vector<1x4x8x32xf32> to vector<4x8x32xf32>
    %c1 = arith.constant 1 : index
    %c0_3 = arith.constant 0 : index
    %c0_4 = arith.constant 0 : index
    %c0_5 = arith.constant 0 : index
    %2 = vector.load %arg1[%c1, %c0_3, %c0_4, %c0_5] : memref<2x4x8x32xf32, #tpu.memory_space<vmem>>, vector<1x4x8x32xf32>
    %3 = vector.shape_cast %2 : vector<1x4x8x32xf32> to vector<4x8x32xf32>
    %4 = arith.addf %1, %3 : vector<4x8x32xf32>
    %5 = vector.shape_cast %4 : vector<4x8x32xf32> to vector<32x32xf32>
    %c0_6 = arith.constant 0 : index
    %c0_7 = arith.constant 0 : index
    %6 = vector.load %arg2[%c0_6, %c0_7] : memref<32x32xf32, #tpu.memory_space<vmem>>, vector<32x32xf32>
    %cst = arith.constant dense<0.000000e+00> : vector<32x32xf32>
    %7 = tpu.matmul %5, %6, %cst {dimension_numbers = #tpu.dot_dimension_numbers<[1], [0], [0], [1], [0, 0, 1, 1], [], []>} : vector<32x32xf32>, vector<32x32xf32>, vector<32x32xf32> -> vector<32x32xf32>
    %8 = vector.shape_cast %7 : vector<32x32xf32> to vector<4x8x32xf32>
    %9 = vector.extract_strided_slice %8 {offsets = [0, 7, 0], sizes = [4, 1, 32], strides = [1, 1, 1]} : vector<4x8x32xf32> to vector<4x1x32xf32>
    %10 = vector.shape_cast %9 : vector<4x1x32xf32> to vector<4x32xf32>
    %11 = vector.shape_cast %10 : vector<4x32xf32> to vector<4x1x32xf32>
    %12 = vector.broadcast %11 : vector<4x1x32xf32> to vector<4x8x32xf32>
    %13 = arith.mulf %8, %12 : vector<4x8x32xf32>
    %cst_8 = arith.constant dense<0.000000e+00> : vector<4x8xf32>
    %14 = vector.multi_reduction <add>, %13, %cst_8 [2] : vector<4x8x32xf32> to vector<4x8xf32>
    %cst_9 = arith.constant dense<0xFF800000> : vector<4xf32>
    %15 = vector.multi_reduction <maximumf>, %14, %cst_9 [1] : vector<4x8xf32> to vector<4xf32>
    %16 = vector.shape_cast %15 : vector<4xf32> to vector<4x1xf32>
    %17 = vector.broadcast %16 : vector<4x1xf32> to vector<4x8xf32>
    %18 = arith.subf %14, %17 : vector<4x8xf32>
    %19 = math.exp %18 : vector<4x8xf32>
    %cst_10 = arith.constant dense<0.000000e+00> : vector<4xf32>
    %20 = vector.multi_reduction <add>, %19, %cst_10 [1] : vector<4x8xf32> to vector<4xf32>
    %21 = vector.shape_cast %20 : vector<4xf32> to vector<4x1xf32>
    %22 = vector.broadcast %21 : vector<4x1xf32> to vector<4x8xf32>
    %23 = arith.divf %19, %22 : vector<4x8xf32>
    %24 = vector.shape_cast %23 : vector<4x8xf32> to vector<4x8x1xf32>
    %25 = vector.broadcast %24 : vector<4x8x1xf32> to vector<4x8x32xf32>
    %26 = arith.mulf %25, %4 : vector<4x8x32xf32>
    %cst_11 = arith.constant dense<0.000000e+00> : vector<4x32xf32>
    %27 = vector.multi_reduction <add>, %26, %cst_11 [1] : vector<4x8x32xf32> to vector<4x32xf32>
    %c0_12 = arith.constant 0 : index
    %c0_13 = arith.constant 0 : index
    %28 = vector.load %arg3[%c0_12, %c0_13] : memref<32x1xf32, #tpu.memory_space<vmem>>, vector<32x1xf32>
    %cst_14 = arith.constant dense<0.000000e+00> : vector<4x1xf32>
    %29 = tpu.matmul %27, %28, %cst_14 {dimension_numbers = #tpu.dot_dimension_numbers<[1], [0], [0], [1], [0, 0, 1, 1], [], []>} : vector<4x32xf32>, vector<32x1xf32>, vector<4x1xf32> -> vector<4x1xf32>
    %c0_15 = arith.constant 0 : index
    %c0_16 = arith.constant 0 : index
    %30 = vector.load %arg4[%c0_15, %c0_16] : memref<1x1xf32, #tpu.memory_space<vmem>>, vector<1x1xf32>
    %31 = vector.broadcast %30 : vector<1x1xf32> to vector<4x1xf32>
    %32 = arith.addf %29, %31 : vector<4x1xf32>
    %c0_17 = arith.constant 0 : index
    %c0_18 = arith.constant 0 : index
    %33 = vector.load %arg5[%c0_17, %c0_18] : memref<4x1xf32, #tpu.memory_space<vmem>>, vector<4x1xf32>
    tpu.vector_store %arg5[%c0_17, %c0_18], %32 {strides = array<i32>} : memref<4x1xf32, #tpu.memory_space<vmem>>, vector<4x1xf32>,
    return
  }
  func.func @transform_0(%arg0: i32) -> (i32, i32, i32, i32) {
    %c0_i32 = arith.constant 0 : i32
    %c0_i32_0 = arith.constant 0 : i32
    %c0_i32_1 = arith.constant 0 : i32
    %c0_i32_2 = arith.constant 0 : i32
    %c0_i32_3 = arith.constant 0 : i32
    return %c0_i32, %c0_i32_0, %c0_i32_1, %c0_i32_2 : i32, i32, i32, i32
  }
  func.func @transform_1(%arg0: i32) -> (i32, i32) {
    %c0_i32 = arith.constant 0 : i32
    %c0_i32_0 = arith.constant 0 : i32
    %c0_i32_1 = arith.constant 0 : i32
    return %c0_i32, %c0_i32_0 : i32, i32
  }
  func.func @transform_2(%arg0: i32) -> (i32, i32) {
    %c0_i32 = arith.constant 0 : i32
    %c0_i32_0 = arith.constant 0 : i32
    %c0_i32_1 = arith.constant 0 : i32
    return %c0_i32, %c0_i32_0 : i32, i32
  }
  func.func @transform_3(%arg0: i32) -> (i32, i32) {
    %c0_i32 = arith.constant 0 : i32
    %c0_i32_0 = arith.constant 0 : i32
    %c0_i32_1 = arith.constant 0 : i32
    return %c0_i32, %c0_i32_0 : i32, i32
  }
  func.func @transform_4(%arg0: i32) -> (i32, i32) {
    %c0_i32 = arith.constant 0 : i32
    %c0_i32_0 = arith.constant 0 : i32
    %c0_i32_1 = arith.constant 0 : i32
    return %c0_i32, %c0_i32_0 : i32, i32
  }
}

</mosaic_0001>

<bundles_post_ra>
// kernel: _lambda_.3
= control target key start
LH: loop header
LB: loop body
LE: loop exit
PB: predicated region body
PF: predicated region fallthrough
CT: control target
= control target key end

     0   :  { %vm36_vm0 = vcmask 261120   ;;  %v134_v18 = vlaneseq  ;;  %vm188_vm1 = vcmask 1041409   ;;  %vm190_vm2 = vcmask 1042434   ;;  %s663_s1 = inlined_call_operand.vmem [shape: f32[32,32], index: 1, kind: input, shape index: {}]   ;;  %s664_s0 = inlined_call_operand.vmem [shape: f32[2,4,8,32], index: 0, kind: input, shape index: {}]   ;;  %s665_s2 = inlined_call_operand.vmem [shape: f32[32,1], index: 2, kind: input, shape index: {}]   ;;  %s666_s3 = inlined_call_operand.<no memory space> [shape: f32[1,1], index: 3, kind: input, shape index: {}]   ;;  %s667_s4 = inlined_call_operand.vmem [shape: f32[4,1], index: 4, kind: output, shape index: {}]  }
   0x1   :  { %v32_v0 = vld [vmem:[%s663_s1] sm:$0xff]  ;;  %v33_v1 = vld [vmem:[%s663_s1 + $0x8] sm:$0xff]  ;;  %v34_v2 = vld [vmem:[%s663_s1 + $0x10] sm:$0xff]  ;;  %vm192_vm3 = vcmask 1043459   ;;  %vm195_vm4 = vcmask 60416   ;;  %v532_v51 = vmov 0  }
   0x2   :  { %v496_v3 = vpack.c.bf16 %v33_v1, %v32_v0  ;;  %v35_v4 = vld [vmem:[%s663_s1 + $0x18] sm:$0xff]  ;;  %v19_v5 = vld [vmem:[%s664_s0] sm:$0xff]  ;;  %v20_v9 = vld [vmem:[%s664_s0 + $0x8] sm:$0xff]  ;;  %v613_v19 = vshrl.u32 %v134_v18, 7  ;;  %v171_v37 = vand.u32 127, %v134_v18  ;;  %515 = vset.pattern.permute.xlu0 %v532_v51  ;;  %514 = vset.pattern.permute.xlu1 %v532_v51  ;;  %vm534_vm5 = vmmov 0  }
   0x3   :  { %v448_v6 = vld [vmem:[%s664_s0 + $0x20] sm:$0xff]  ;;  %v500_v7 = vpack.c.bf16 %v35_v4, %v34_v2  ;;  %v449_v10 = vld [vmem:[%s664_s0 + $0x28] sm:$0xff]  ;;  %v21_v11 = vld [vmem:[%s664_s0 + $0x10] sm:$0xff]  ;;  %vm442_vm6 = vcmask 3072  }
   0x4   :  { %v579_v8 = vadd.f32 %v448_v6, %v19_v5  ;;  %497 = vmatprep.subr.bf16.mxu0 %v496_v3  ;;  %v450_v12 = vld [vmem:[%s664_s0 + $0x30] sm:$0xff]  ;;  %v595_v13 = vadd.f32 %v449_v10, %v20_v9  ;;  %v22_v15 = vld [vmem:[%s664_s0 + $0x18] sm:$0xff]  ;;  %v136_v20 = vsub.s32 7, %v613_v19  ;;  %v174_v39 = vsub.s32 %v171_v37, %v613_v19 }
   0x5   :  { %499 = vmatpush3.bf16.msra.mxu0 %v496_v3  ;;  %v597_v14 = vadd.f32 %v450_v12, %v21_v11  ;;  %v451_v16 = vld [vmem:[%s664_s0 + $0x38] sm:$0xff]  ;;  %v202_v52 = vsub.s32 0, %v613_v19  ;;  %v206_v53 = vsub.s32 1, %v613_v19  ;;  %v210_v54 = vsub.s32 2, %v613_v19 }
   0x6   :  { %479 = vmatprep.mubr.msk.f32.mxu0 %vm36_vm0, %v579_v8  ;;  %501 = vmatprep.subr.bf16.mxu0 %v500_v7  ;;  %v607_v17 = vadd.f32 %v451_v16, %v22_v15  ;;  %v214_v55 = vsub.s32 3, %v613_v19 }
   0x9   :  { %503 = vmatpush3.bf16.msra.mxu0 %v500_v7 }
   0xc   :  { %480 = vmatmul.mubr.msk.f32.vlgmr.msra.gmra.mrb[0].mxu0 %vm36_vm0, %v595_v13 }
   0xd   :  { %482 = vmatprep.mubr.msk.f32.mxu0 %vm36_vm0, %v597_v14 }
  0x10   :  { %483 = vmatmul.mubr.msk.f32.gmra.mrb[2].mxu0 %vm36_vm0, %v607_v17 }
  0xdf   :  { %v481_v21 = vpop.f32.mrb[0].mxu0 }
  0xe0   :  { %v115_v22 = vpop.f32.mrb[1].mxu0  ;;  %v141_v23 = vrot.slane %v481_v21, %v136_v20 }
  0xe1   :  { %v137_v24 = vrot.slane %v115_v22, %v136_v20 }
  0xe2   :  { %v151_v28 = vmul.f32 %v481_v21, %v141_v23 }
  0xe3   :  { %v484_v25 = vpop.f32.mrb[2].mxu0  ;;  %v150_v26 = vmul.f32 %v137_v24, %v115_v22 }
  0xe4   :  { %v125_v27 = vpop.f32.mrb[3].mxu0  ;;  %v149_v29 = vrot.slane %v484_v25, %v136_v20  ;;  %v157_v34 = vsel %vm36_vm0, %v151_v28, 0.0 }
  0xe5   :  { %v145_v30 = vrot.slane %v125_v27, %v136_v20  ;;  %v154_v31 = vsel %vm36_vm0, %v150_v26, 0.0 }
  0xe6   :  { %155 = vadd.xlane.f32.xlu0 %v154_v31  ;;  %v153_v33 = vmul.f32 %v484_v25, %v149_v29 }
  0xe7   :  { %v152_v32 = vmul.f32 %v145_v30, %v125_v27 }
  0xe8   :  { %v163_v36 = vsel %vm36_vm0, %v153_v33, 0.0 }
  0xe9   :  { %v160_v35 = vsel %vm36_vm0, %v152_v32, 0.0 }
  0xea   :  { %158 = vadd.xlane.f32.xlu0 %v157_v34  ;;  %161 = vadd.xlane.f32.xlu1 %v160_v35 }
  0xee   :  { %164 = vadd.xlane.f32.xlu1 %v163_v36 }
 0x173   :  { %v156_v38 = vpop.xlane.xlu0 %155 }
 0x174   :  { %v175_v42 = vrot.slane %v156_v38, %v174_v39 }
 0x177   :  { %v159_v40 = vpop.xlane.xlu0 %158  ;;  %v162_v41 = vpop.xlane.xlu1 %161 }
 0x178   :  { %v179_v43 = vrot.slane %v159_v40, %v174_v39  ;;  %v183_v44 = vrot.slane %v162_v41, %v174_v39 }
 0x17a   :  { %v189_v45 = vsel %vm188_vm1, %v179_v43, %v175_v42  ;;  %v354_v42 = vld [vmem:[%s665_s2 + $0x10] sm:$0xff]  ;;  %v355_v43 = vld [vmem:[%s665_s2 + $0x18] sm:$0xff] }
 0x17b   :  { %v165_v46 = vpop.xlane.xlu1 %164  ;;  %v191_v48 = vsel %vm190_vm2, %v183_v44, %v189_v45  ;;  %v508_v44 = vpack.c.bf16 %v355_v43, %v354_v42  ;;  %v535_v45 = vmov 0.0  }
 0x17c   :  { %v187_v47 = vrot.slane %v165_v46, %v174_v39  ;;  %493 = vmatprep.mubr.msk.f32.mxu1 %vm534_vm5, %v535_v45 }
 0x17e   :  { %v193_v49 = vsel %vm192_vm3, %v187_v47, %v191_v48 }
 0x17f   :  { %v196_v50 = vsel %vm195_vm4, %v193_v49, -inf }
 0x180   :  { %197 = vmax.xlane.f32.xlu0 %v196_v50 }
 0x20d   :  { %v198_v56 = vpop.xlane.xlu0 %197 }
 0x20e   :  { %v203_v57 = vrot.slane %v198_v56, %v202_v52  ;;  %v207_v58 = vrot.slane %v198_v56, %v206_v53  ;;  %v211_v59 = vrot.slane %v198_v56, %v210_v54  ;;  %v215_v60 = vrot.slane %v198_v56, %v214_v55 }
 0x210   :  { %v220_v61 = vsub.f32 %v156_v38, %v203_v57  ;;  %v221_v62 = vsub.f32 %v159_v40, %v207_v58  ;;  %v222_v63 = vsub.f32 %v162_v41, %v211_v59  ;;  %v223_v2 = vsub.f32 %v165_v46, %v215_v60  ;;  %v352_v38 = vld [vmem:[%s665_s2] sm:$0xff] }
 0x211   :  { %v533_v41 = vmov 0.0|0.0   ;;  %v9_v46 = vstv %s666_s3 }
 0x212   :  { %v224_v0 = vmul.f32 1.442695, %v220_v61  ;;  %v226_v1 = vmul.f32 1.442695, %v221_v62  ;;  %v228_v3 = vmul.f32 1.442695, %v222_v63  ;;  %504 = vmatprep.subr.bf16.mxu1 %v533_v41 }
 0x213   :  { %v230_v4 = vmul.f32 1.442695, %v223_v2  ;;  %10 = vst [vmem:[#allocation2] sm:$0x1] %v9_v46 }
 0x214   :  { %516 = vpow2.f32 %v224_v0 }
 0x215   :  { %518 = vpow2.f32 %v226_v1 }
 0x216   :  { %520 = vpow2.f32 %v228_v3 }
 0x217   :  { %522 = vpow2.f32 %v230_v4 }
 0x21e   :  { %v517_v5 = vpop.eup %516 }
 0x21f   :  { %v519_v6 = vpop.eup %518  ;;  %237 = vperm.xlu1 %514, %v517_v5  }
 0x220   :  { %240 = vperm.xlu0 %515, %v519_v6   ;;  %v521_v7 = vpop.eup %520 }
 0x221   :  { %v523_v9 = vpop.eup %522 }
 0x223   :  { %243 = vperm.xlu1 %514, %v521_v7  }
 0x227   :  { %246 = vperm.xlu1 %514, %v523_v9  }
 0x29e   :  { %v238_v10 = vpop.permute.xlu1 %237 }
 0x29f   :  { %v241_v11 = vpop.permute.xlu0 %240  ;;  %v251_v16 = vrot.slane %v238_v10, %v174_v39 }
 0x2a0   :  { %v255_v15 = vrot.slane %v241_v11, %v174_v39 }
 0x2a2   :  { %v244_v12 = vpop.permute.xlu1 %243  ;;  %v264_v20 = vsel %vm188_vm1, %v255_v15, %v251_v16 }
 0x2a3   :  { %v259_v18 = vrot.slane %v244_v12, %v174_v39 }
 0x2a5   :  { %v265_v22 = vsel %vm190_vm2, %v259_v18, %v264_v20 }
 0x2a6   :  { %v247_v19 = vpop.permute.xlu1 %246 }
 0x2a7   :  { %v263_v21 = vrot.slane %v247_v19, %v174_v39  ;;  %v353_v39 = vld [vmem:[%s665_s2 + $0x8] sm:$0xff] }
 0x2a8   :  { %v505_v40 = vpack.c.bf16 %v353_v39, %v352_v38 }
 0x2a9   :  { %v266_v23 = vsel %vm192_vm3, %v263_v21, %v265_v22  ;;  %v456_v22 = vld [vmem:[#allocation2] ss:$0 sm:$0xff] }
 0x2aa   :  { %v268_v24 = vsel %vm195_vm4, %v266_v23, 0.0  ;;  %506 = vmatpush3.bf16.msra.mxu1 %v505_v40 }
 0x2ab   :  { %269 = vadd.xlane.f32.xlu1 %v268_v24  ;;  %507 = vmatprep.subr.bf16.mxu1 %v533_v41 }
 0x2ae   :  { %509 = vmatpush3.bf16.msra.mxu1 %v508_v44 }
 0x338   :  { %v270_v25 = vpop.xlane.xlu1 %269 }
 0x339   :  { %v275_v26 = vrot.slane %v270_v25, %v202_v52  ;;  %v279_v27 = vrot.slane %v270_v25, %v206_v53  ;;  %v283_v28 = vrot.slane %v270_v25, %v210_v54  ;;  %v287_v29 = vrot.slane %v270_v25, %v214_v55 }
 0x33b   :  { %524 = vrcp.f32 %v275_v26 }
 0x33c   :  { %526 = vrcp.f32 %v279_v27 }
 0x33d   :  { %528 = vrcp.f32 %v283_v28 }
 0x33e   :  { %530 = vrcp.f32 %v287_v29 }
 0x345   :  { %v525_v30 = vpop.eup %524 }
 0x346   :  { %v293_v31 = vmul.f32 %v525_v30, %v517_v5  ;;  %v527_v32 = vpop.eup %526 }
 0x347   :  { %v295_v33 = vmul.f32 %v527_v32, %v519_v6  ;;  %v529_v34 = vpop.eup %528 }
 0x348   :  { %302 = vperm.xlu0 %515, %v293_v31   ;;  %v297_v35 = vmul.f32 %v529_v34, %v521_v7  ;;  %v531_v36 = vpop.eup %530 }
 0x349   :  { %v299_v37 = vmul.f32 %v531_v36, %v523_v9 }
 0x34c   :  { %307 = vperm.xlu0 %515, %v295_v33  }
 0x350   :  { %312 = vperm.xlu0 %515, %v297_v35  }
 0x354   :  { %317 = vperm.xlu0 %515, %v299_v37  }
 0x3c7   :  { %v303_v47 = vpop.permute.xlu0 %302 }
 0x3c8   :  { %v320_v48 = vmul.f32 %v303_v47, %v579_v8 }
 0x3ca   :  { %v324_v49 = vsel %vm36_vm0, %v320_v48, 0.0 }
 0x3cb   :  { %v325_v50 = vrot.slane %v324_v49, 4  ;;  %v308_v51 = vpop.permute.xlu0 %307 }
 0x3cc   :  { %v321_v52 = vmul.f32 %v308_v51, %v595_v13 }
 0x3cd   :  { %v326_v54 = vadd.f32 %v325_v50, %v324_v49 }
 0x3ce   :  { %v331_v53 = vsel %vm36_vm0, %v321_v52, 0.0 }
 0x3cf   :  { %v332_v55 = vrot.slane %v331_v53, 4  ;;  %v313_v56 = vpop.permute.xlu0 %312  ;;  %v327_v60 = vrot.slane %v326_v54, 2 }
 0x3d0   :  { %v322_v57 = vmul.f32 %v313_v56, %v597_v14 }
 0x3d1   :  { %v333_v58 = vadd.f32 %v332_v55, %v331_v53  ;;  %v328_v2 = vadd.f32 %v327_v60, %v326_v54 }
 0x3d2   :  { %v338_v59 = vsel %vm36_vm0, %v322_v57, 0.0 }
 0x3d3   :  { %v334_v61 = vrot.slane %v333_v58, 2  ;;  %v339_v62 = vrot.slane %v338_v59, 4  ;;  %v318_v8 = vpop.permute.xlu0 %317  ;;  %v329_v14 = vrot.slane %v328_v2, 1 }
 0x3d4   :  { %v323_v63 = vmul.f32 %v318_v8, %v607_v17 }
 0x3d5   :  { %v335_v0 = vadd.f32 %v334_v61, %v333_v58  ;;  %v340_v1 = vadd.f32 %v339_v62, %v338_v59  ;;  %v330_v16 = vadd.f32 %v329_v14, %v328_v2 }
 0x3d6   :  { %v345_v13 = vsel %vm36_vm0, %v323_v63, 0.0 }
 0x3d7   :  { %v341_v3 = vrot.slane %v340_v1, 2  ;;  %v346_v4 = vrot.slane %v345_v13, 4  ;;  %v336_v5 = vrot.slane %v335_v0, 1 }
 0x3d9   :  { %v342_v6 = vadd.f32 %v341_v3, %v340_v1  ;;  %v347_v7 = vadd.f32 %v346_v4, %v345_v13  ;;  %v337_v11 = vadd.f32 %v336_v5, %v335_v0 }
 0x3db   :  { %v343_v9 = vrot.slane %v342_v6, 1  ;;  %v348_v10 = vrot.slane %v347_v7, 2  ;;  %v367_v17 = vsel %vm188_vm1, %v337_v11, %v330_v16 }
 0x3dd   :  { %v349_v12 = vadd.f32 %v348_v10, %v347_v7  ;;  %v344_v15 = vadd.f32 %v343_v9, %v342_v6 }
 0x3df   :  { %v350_v18 = vrot.slane %v349_v12, 1  ;;  %v368_v20 = vsel %vm190_vm2, %v344_v15, %v367_v17 }
 0x3e1   :  { %v351_v19 = vadd.f32 %v350_v18, %v349_v12 }
 0x3e3   :  { %v369_v21 = vsel %vm192_vm3, %v351_v19, %v368_v20 }
 0x3e4   :  { %494 = vmatmul.mubr.msk.f32.vlgmr.msra.gmra.mrb[0].mxu1 %vm36_vm0, %v369_v21 }
 0x4b7   :  { %v438_v23 = vpop.f32.mrb[0].mxu1 }
 0x4b8   :  { %v439_v24 = vadd.f32 %v456_v22, %v438_v23  ;;  %v495_v25 = vpop.f32.mrb[1].mxu1 }
 0x4ba   :  { %443 = vst.msk [vmem:[%s667_s4] sm:$0xf] %vm442_vm6, %v439_v24 }

// kernel: _lambda_.2
= control target key start
LH: loop header
LB: loop body
LE: loop exit
PB: predicated region body
PF: predicated region fallthrough
CT: control target
= control target key end

     0   :  { %s7987_s0 = inlined_call_operand.vmem [shape: f32[4,8,16], index: 0, kind: input, shape index: {}]   ;;  %s7988_s1 = inlined_call_operand.vmem [shape: f32[4,8,10], index: 1, kind: input, shape index: {}]   ;;  %s7989_s2 = inlined_call_operand.vmem [shape: f32[10,16], index: 2, kind: input, shape index: {}]   ;;  %s7990_s3 = inlined_call_operand.vmem [shape: f32[1,16], index: 3, kind: input, shape index: {}]   ;;  %s7991_s4 = inlined_call_operand.vmem [shape: f32[5,16], index: 4, kind: input, shape index: {}]   ;;  %s7992_s5 = inlined_call_operand.vmem [shape: f32[1,16], index: 5, kind: input, shape index: {}]   ;;  %s7993_s6 = inlined_call_operand.<no memory space> [shape: f32[1,1], index: 6, kind: input, shape index: {}]   ;;  %s7994_s8 = inlined_call_operand.hbm [shape: f32[16,32], index: 8, kind: input, shape index: {}]   ;;  %s7995_s9 = inlined_call_operand.hbm [shape: f32[1,32], index: 9, kind: input, shape index: {}]   ;;  %s7996_s10 = inlined_call_operand.vmem [shape: f32[16,32], index: 10, kind: input, shape index: {}]   ;;  %s7997_s11 = inlined_call_operand.hbm [shape: f32[1,32], index: 11, kind: input, shape index: {}]   ;;  %s7998_s12 = inlined_call_operand.hbm [shape: f32[2,8,8], index: 12, kind: input, shape index: {}]   ;;  %s7999_s13 = inlined_call_operand.vmem [shape: f32[2,8,1], index: 13, kind: input, shape index: {}]   ;;  %s8000_s14 = inlined_call_operand.vmem [shape: f32[2,1,32], index: 14, kind: input, shape index: {}]   ;;  %s8001_s15 = inlined_call_operand.hbm [shape: f32[2,1,32], index: 15, kind: input, shape index: {}]   ;;  %s8002_s16 = inlined_call_operand.vmem [shape: f32[2,32,96], index: 16, kind: input, shape index: {}]   ;;  %s8003_s17 = inlined_call_operand.hbm [shape: f32[2,1,32], index: 17, kind: input, shape index: {}]   ;;  %s8004_s18 = inlined_call_operand.hbm [shape: f32[2,1,32], index: 18, kind: input, shape index: {}]   ;;  %s8005_s19 = inlined_call_operand.vmem [shape: f32[2,32,32], index: 19, kind: input, shape index: {}]   ;;  %s8006_s20 = inlined_call_operand.hbm [shape: f32[2,1,32], index: 20, kind: input, shape index: {}]   ;;  %s8007_s21 = inlined_call_operand.vmem [shape: f32[2,32,32], index: 21, kind: input, shape index: {}]   ;;  %s8008_s22 = inlined_call_operand.hbm [shape: f32[2,1,32], index: 22, kind: input, shape index: {}]   ;;  %s8009_s23 = inlined_call_operand.vmem [shape: f32[2,4,8,32], index: 23, kind: output, shape index: {}]   ;;  %s8010_s7 = inlined_call_operand.<no memory space> [shape: f32[1,1], index: 7, kind: input, shape index: {}]  }
   0x1   :  { %8034 = sst [smem:[#allocation28_spill]] %s7987_s0  ;;  %v30_v1 = vstv %s8010_s7 }
   0x2   :  { %8035 = sst [smem:[#allocation29_spill]] %s7988_s1  ;;  %31 = vst [vmem:[#allocation3] sm:$0x1] %v30_v1 }
   0x3   :  { %8036 = sst [smem:[#allocation30_spill]] %s7989_s2 }
   0x4   :  { %8037 = sst [smem:[#allocation31_spill]] %s7990_s3 }
   0x5   :  { %8038 = sst [smem:[#allocation32_spill]] %s7991_s4 }
   0x6   :  { %8039 = sst [smem:[#allocation33_spill]] %s7992_s5 }
   0x7   :  { %8040 = sst [smem:[#allocation34_spill]] %s7993_s6 }
   0x8   :  { %8041 = sst [smem:[#allocation35_spill]] %s7994_s8  ;;  %s8053_s24 = sld [smem:[#allocation34_spill]] }
   0x9   :  { %8042 = sst [smem:[#allocation36_spill]] %s7995_s9 }
   0xa   :  { %8043 = sst [smem:[#allocation37_spill]] %s7996_s10 }
   0xb   :  { %8044 = sst [smem:[#allocation38_spill]] %s7998_s12 }
   0xc   :  { %8045 = sst [smem:[#allocation39_spill]] %s7999_s13 }
   0xd   :  { %8046 = sst [smem:[#allocation40_spill]] %s8000_s14 }
   0xe   :  { %8047 = sst [smem:[#allocation41_spill]] %s8002_s16  ;;  %v28_v0 = vstv %s8053_s24 }
   0xf   :  { %8048 = sst [smem:[#allocation42_spill]] %s8003_s17  ;;  %29 = vst [vmem:[#allocation2] sm:$0x1] %v28_v0 }
  0x10   :  { %8049 = sst [smem:[#allocation43_spill]] %s8005_s19 }
  0x11   :  { %8050 = sst [smem:[#allocation44_spill]] %s8006_s20 }
  0x12   :  { %8051 = sst [smem:[#allocation45_spill]] %s8007_s21 }
  0x13   :  { %8052 = sst [smem:[#allocation46_spill]] %s8009_s23 }
  0x14   :  { %32 = vsyncpa [#allocation5], 0 }
  0x15   :  { %33 = vsyncpa [#allocation7], 0 }
  0x16   :  { %34 = vsyncpa [#allocation10], 0 }
  0x17   :  { %36 = vsyncpa [#allocation10 + $0x1], 0 }
  0x18   :  { %37 = vsyncpa [#allocation13], 0 }
  0x19   :  { %39 = vsyncpa [#allocation13 + $0x1], 0 }
  0x1a   :  { %40 = vsyncpa [#allocation16], 0 }
  0x1b   :  { %42 = vsyncpa [#allocation16 + $0x1], 0  ;;  %s6861_s1 = smov 0   ;;  %s6863_s26 = smov 0  }
  0x1c   :  { %s6865_s2 = smov 0   ;;  %s6867_s6 = smov 0  }
  0x1d LB: > { %8054 = sst [smem:[#allocation23_spill]] %s6701_s26  ;;  %s6880_s7 = sadd.s32 4294967295, %s6709_s6   ;;  %s6709_s6 = sphi %s6867_s6, %s8108_s6   ;;  %s6705_s2 = sphi %s6865_s2, %s8111_s2   ;;  %s6701_s26 = sphi %s6863_s26, %s8110_s26   ;;  %s6697_s1 = sphi %s6861_s1, %s8109_s1  }
  0x1e   : > { %8055 = sst [smem:[#allocation24_spill]] %s6705_s2  ;;  %s6883_s27 = sadd.s32 1, %s6709_s6  }
  0x1f   : > { %8056 = sst [smem:[#allocation25_spill]] %s6883_s27  ;;  %s304_s8 = ssub.s32 %s6709_s6, %s6883_s27 }
  0x20   : > { %s307_s28 = sadd.s32 1, %s6705_s2  ;;  %p305_p0 = scmp.eq.s32.totalorder %s304_s8, 0 }
  0x21   : > { %p314_p1 = scmp.ne.s32.totalorder %s6705_s2, %s6701_s26  ;;  %p315_p2 = scmp.eq.s32.totalorder %s6709_s6, 0 }
  0x22   : > { %p320_p3 = scmp.ne.s32.totalorder %s6701_s26, %s6697_s1  ;;  %p8018_p5 = scmp.eq.s32.totalorder %s6880_s7, 0 }
  0x23   : > { %s6893_s29 = scalar_select %p305_p0, %s6705_s2, %s307_s28  }
  0x24   : > { %p6895_p4 = por %p315_p2, %p314_p1  ;;  %p5695_p6 = scmp.ge.s32.totalorder %s6709_s6, 1 }
  0x25   : > { %8057 = sst [smem:[#allocation26_spill]] %s6893_s29  ;;  %p617_p7 = scmp.lt.s32.totalorder %s6709_s6, 3 }
  0x26   : > { %p6904_p8 = por %p8018_p5, %p320_p3  ;;  %s6711_s30 = smov [#allocation6]  }
  0x27   : > { %p6908_p9 = pnand %p5695_p6, %p617_p7  ;;  %s667_s24 = sshll.u32 %s6711_s30, 4  ;;  %s668_s24 = int_to_ptr.vmem [resolvable:$true] %s667_s24 }
  0x28   : > { %s8059_s0 = scalar_select %p6904_p8, 1, 0 }
  0x29   : > { %s8061_s4 = scalar_select %p6908_p9, 1, 0 }
  0x2a   : > { %8060 = sst [smem:[#allocation27_spill]] %s8059_s0  ;;  %p6227_p10 = pneg %p6908_p9 }
  0x2b   : > { %p6259_p11 = scmp.lt.s32.totalorder %s6709_s6, 2  ;;  %s6916_s25 = sand.u32 1, %s6709_s6  }
  0x2c   : > { %p6920_p12 = pnand %p6227_p10, %p8018_p5  ;;  %s6931_s8 = sand.u32 1, %s6705_s2  }
  0x2d   : > { %p6926_p13 = pnand %p6259_p11, %p6895_p4  ;;  %s5700_s28 = sshll.u32 %s6931_s8, 3 }
  0x2e   : > { %s8062_s5 = scalar_select %p6920_p12, 1, 0 }
  0x2f   : > { %s8063_s1 = scalar_select %p6926_p13, 1, 0 }
  0x30   : > { %s8064_s9 = sld [smem:[#allocation36_spill]]  ;;  %p6942_p1 = pneg %p6920_p12 }
  0x32   : > { %s8065_s3 = scalar_select %p6942_p1, 1, 0 }
  0x36   : > { %s6395_s27 = scalar_lea.hbm %s8064_s9, 16 }
  0x37   : > { %p6396_p0 = scmp.ne.s32.totalorder %s8064_s9, %s6395_s27  ;;  %p6402_p4 = scmp.lt.u32.totalorder %s6395_s27, %s8064_s9 }
  0x39   : > { %p6398_p2 = pnand %p6942_p1, %p6396_p0 }
  0x3b   : > { %p6399_p3 = pneg %p6398_p2 }
  0x3d   : > { %p6404_p6 = pnand %p6402_p4, %p6399_p3 }
  0x3f   : > { %6407 = shalt.err (!%p6404_p6)
}
  0x40   : > { %s6408_s29 = scalar_lea.vmem %s668_s24, 16  ;;  %s6415_s21 = scalar_lea.vmem %s668_s24, 32 }
  0x41   : > { %p6409_p7 = scmp.ne.s32.totalorder %s668_s24, %s6408_s29  ;;  %p6416_p5 = scmp.lt.s32.totalorder %s668_s24, %s668_s24 }
  0x42   : > { %p6417_p8 = scmp.lt.s32.totalorder %s6415_s21, %s6408_s29 }
  0x43   : > { %p6411_p10 = pnand %p6409_p7, %p6942_p1 }
  0x44   : > { %p6418_p9 = por %p6417_p8, %p6416_p5 }
  0x45   : > { %p6412_p11 = pneg %p6411_p10 }
  0x47   : > { %p6419_p13 = pnand %p6418_p9, %p6412_p11 }
  0x49   : > { %6422 = shalt.err (!%p6419_p13)
}
  0x4a   : > { %6233 = dma.hbm_to_vmem [thread:$0]  (!%p6920_p12), %s8064_s9, 16, %s668_s24, [#allocation7]  }
  0x4b   : > { %s5701_s19 = sshll.u32 %s6709_s6, 7  ;;  %s696_s2 = scalar_lea.vmem [#allocation9], %s5700_s28 }
  0x4c   : > { %s703_s27 = sshll.u32 %s696_s2, 4  ;;  %s8066_s12 = sld [smem:[#allocation38_spill]]  ;;  %s6964_s27 = int_to_ptr.vmem [resolvable:$true] %s703_s27 }
  0x4d   : > { %s8026_s29 = scalar_lea.sflag [#allocation10], %s6916_s25  ;;  %p8067_p8 = scmp.ne.s32.totalorder %s8063_s1, 0 }
  0x4f   : > { %p6971_p9 = pneg %p8067_p8 }
  0x51   : > { %s8068_s24 = scalar_select %p6971_p9, 1, 0 }
  0x52   : > { %s6962_s13 = scalar_lea.hbm %s8066_s12, %s5701_s19  ;;  %s6428_s28 = scalar_lea.hbm %s8066_s12, 256 }
  0x53   : > { %s6423_s21 = scalar_lea.hbm %s6962_s13, 128  ;;  %p6429_p2 = scmp.lt.u32.totalorder %s6962_s13, %s8066_s12 }
  0x54   : > { %p6424_p5 = scmp.ne.s32.totalorder %s6962_s13, %s6423_s21  ;;  %p6430_p3 = scmp.lt.u32.totalorder %s6428_s28, %s6423_s21 }
  0x55   : > { %p6432_p6 = scmp.lt.u32.totalorder %s6423_s21, %s6962_s13 }
  0x56   : > { %p6426_p13 = pnand %p6971_p9, %p6424_p5  ;;  %p6431_p4 = por %p6430_p3, %p6429_p2 }
  0x58   : > { %p6427_p0 = pneg %p6426_p13  ;;  %p6433_p7 = por %p6432_p6, %p6431_p4 }
  0x5a   : > { %p6434_p10 = pnand %p6433_p7, %p6427_p0 }
  0x5c   : > { %6437 = shalt.err (!%p6434_p10)
}
  0x5d   : > { %s6438_s19 = scalar_lea.vmem %s6964_s27, 128  ;;  %s6712_s2 = smov [#allocation9]  }
  0x5e   : > { %p6439_p11 = scmp.ne.s32.totalorder %s6964_s27, %s6438_s19  ;;  %s6443_s14 = sshll.u32 %s6712_s2, 4  ;;  %s6444_s14 = int_to_ptr.vmem [resolvable:$false] %s6443_s14 }
  0x5f   : > { %s6445_s16 = scalar_lea.vmem %s6444_s14, 256  ;;  %p6446_p12 = scmp.lt.s32.totalorder %s6964_s27, %s6444_s14 }
  0x60   : > { %p6441_p5 = pnand %p6439_p11, %p6971_p9  ;;  %p6447_p1 = scmp.lt.s32.totalorder %s6445_s16, %s6438_s19 }
  0x62   : > { %p6442_p13 = pneg %p6441_p5  ;;  %p6448_p2 = por %p6447_p1, %p6446_p12 }
  0x64   : > { %p6449_p3 = pnand %p6448_p2, %p6442_p13 }
  0x66   : > { %6452 = shalt.err (!%p6449_p3)
}
  0x67   : > { %6240 = dma.hbm_to_vmem [thread:$0]  (!%p8067_p8), %s6962_s13, 128, %s6964_s27, %s8026_s29  }
  0x68   : > { %s6997_s21 = sshll.u32 %s6709_s6, 4  ;;  %s8069_s17 = sld [smem:[#allocation42_spill]] }
  0x69   : > { %s751_s19 = scalar_lea.vmem [#allocation12], %s6931_s8 }
  0x6a   : > { %s758_s2 = sshll.u32 %s751_s19, 4  ;;  %s759_s2 = int_to_ptr.vmem [resolvable:$true] %s758_s2 }
  0x6e   : > { %s7003_s30 = scalar_lea.hbm %s8069_s17, %s6997_s21  ;;  %s6458_s27 = scalar_lea.hbm %s8069_s17, 32 }
  0x6f   : > { %s6453_s16 = scalar_lea.hbm %s7003_s30, 16  ;;  %p6459_p4 = scmp.lt.u32.totalorder %s7003_s30, %s8069_s17 }
  0x70   : > { %p6454_p12 = scmp.ne.s32.totalorder %s7003_s30, %s6453_s16  ;;  %p6460_p6 = scmp.lt.u32.totalorder %s6458_s27, %s6453_s16 }
  0x71   : > { %p6462_p10 = scmp.lt.u32.totalorder %s6453_s16, %s7003_s30 }
  0x72   : > { %p6456_p1 = pnand %p6454_p12, %p6971_p9  ;;  %p6461_p7 = por %p6460_p6, %p6459_p4 }
  0x74   : > { %p6457_p0 = pneg %p6456_p1  ;;  %p6463_p11 = por %p6462_p10, %p6461_p7 }
  0x76   : > { %p6464_p5 = pnand %p6463_p11, %p6457_p0 }
  0x78   : > { %6467 = shalt.err (!%p6464_p5)
}
  0x79   : > { %s6468_s19 = scalar_lea.vmem %s759_s2, 16  ;;  %s6713_s29 = smov [#allocation12]  }
  0x7a   : > { %p6469_p13 = scmp.ne.s32.totalorder %s759_s2, %s6468_s19  ;;  %s6473_s14 = sshll.u32 %s6713_s29, 4  ;;  %s6474_s14 = int_to_ptr.vmem [resolvable:$false] %s6473_s14 }
  0x7b   : > { %s6475_s13 = scalar_lea.vmem %s6474_s14, 32  ;;  %p6476_p12 = scmp.lt.s32.totalorder %s759_s2, %s6474_s14 }
  0x7c   : > { %p6471_p2 = pnand %p6469_p13, %p6971_p9  ;;  %p6477_p1 = scmp.lt.s32.totalorder %s6475_s13, %s6468_s19 }
  0x7e   : > { %p6472_p3 = pneg %p6471_p2  ;;  %p6478_p8 = por %p6477_p1, %p6476_p12 }
  0x80   : > { %p6479_p4 = pnand %p6478_p8, %p6472_p3 }
  0x82   : > { %6482 = shalt.err (!%p6479_p4)
}
  0x83   : > { %p8070_p6 = scmp.ne.s32.totalorder %s8063_s1, 0  ;;  %s8071_s16 = scalar_lea.sflag [#allocation13], %s6916_s25 }
  0x84   : > { %s8072_s20 = sld [smem:[#allocation44_spill]]  ;;  %s793_s14 = scalar_lea.vmem [#allocation15], %s6931_s8 }
  0x85   : > { %6246 = dma.hbm_to_vmem [thread:$0]  (!%p8070_p6), %s7003_s30, 16, %s759_s2, %s8071_s16  }
  0x86   : > { %s800_s28 = sshll.u32 %s793_s14, 4  ;;  %s801_s28 = int_to_ptr.vmem [resolvable:$true] %s800_s28 }
  0x8a   : > { %s7030_s29 = scalar_lea.hbm %s8072_s20, %s6997_s21  ;;  %s6488_s2 = scalar_lea.hbm %s8072_s20, 32 }
  0x8b   : > { %s6483_s19 = scalar_lea.hbm %s7030_s29, 16  ;;  %p6489_p10 = scmp.lt.u32.totalorder %s7030_s29, %s8072_s20 }
  0x8c   : > { %p6484_p8 = scmp.ne.s32.totalorder %s7030_s29, %s6483_s19  ;;  %p6490_p11 = scmp.lt.u32.totalorder %s6488_s2, %s6483_s19 }
  0x8d   : > { %p6492_p13 = scmp.lt.u32.totalorder %s6483_s19, %s7030_s29 }
  0x8e   : > { %p6486_p0 = pnand %p6484_p8, %p6971_p9  ;;  %p6491_p5 = por %p6490_p11, %p6489_p10 }
  0x90   : > { %p6487_p7 = pneg %p6486_p0  ;;  %p6493_p2 = por %p6492_p13, %p6491_p5 }
  0x92   : > { %p6494_p3 = pnand %p6493_p2, %p6487_p7 }
  0x94   : > { %6497 = shalt.err (!%p6494_p3)
}
  0x95   : > { %s6498_s27 = scalar_lea.vmem %s801_s28, 16  ;;  %s6714_s14 = smov [#allocation15]  }
  0x96   : > { %p6499_p12 = scmp.ne.s32.totalorder %s801_s28, %s6498_s27  ;;  %s6503_s23 = sshll.u32 %s6714_s14, 4  ;;  %s6504_s23 = int_to_ptr.vmem [resolvable:$false] %s6503_s23 }
  0x97   : > { %s6505_s13 = scalar_lea.vmem %s6504_s23, 32  ;;  %p6506_p8 = scmp.lt.s32.totalorder %s801_s28, %s6504_s23 }
  0x98   : > { %p6501_p1 = pnand %p6499_p12, %p6971_p9  ;;  %p6507_p0 = scmp.lt.s32.totalorder %s6505_s13, %s6498_s27 }
  0x9a   : > { %p6502_p4 = pneg %p6501_p1  ;;  %p6508_p6 = por %p6507_p0, %p6506_p8 }
  0x9c   : > { %p6509_p10 = pnand %p6508_p6, %p6502_p4 }
  0x9e   : > { %6512 = shalt.err (!%p6509_p10)
}
  0x9f   : > { %p8073_p11 = scmp.ne.s32.totalorder %s8063_s1, 0  ;;  %s8074_s19 = scalar_lea.sflag [#allocation16], %s6916_s25 }
  0xa0   : > { %s6715_s30 = smov [#allocation4]   ;;  %s8075_s14 = sld [smem:[#allocation35_spill]] }
  0xa1   : > { %6252 = dma.hbm_to_vmem [thread:$0]  (!%p8073_p11), %s7030_s29, 16, %s801_s28, %s8074_s19  }
  0xa2   : > { %s653_s2 = sshll.u32 %s6715_s30, 4  ;;  %p8076_p6 = scmp.ne.s32.totalorder %s8065_s3, 0  ;;  %s654_s2 = int_to_ptr.vmem [resolvable:$true] %s653_s2 }
  0xa6   : > { %s6513_s9 = scalar_lea.hbm %s8075_s14, 256 }
  0xa7   : > { %p6514_p7 = scmp.ne.s32.totalorder %s8075_s14, %s6513_s9  ;;  %p6520_p2 = scmp.lt.u32.totalorder %s6513_s9, %s8075_s14 }
  0xa9   : > { %p6516_p5 = pnand %p6514_p7, %p8076_p6 }
  0xab   : > { %p6517_p13 = pneg %p6516_p5 }
  0xad   : > { %p6522_p3 = pnand %p6520_p2, %p6517_p13 }
  0xaf   : > { %6525 = shalt.err (!%p6522_p3)
}
  0xb0   : > { %s6526_s29 = scalar_lea.vmem %s654_s2, 256  ;;  %p6534_p8 = scmp.lt.s32.totalorder %s654_s2, %s654_s2 }
  0xb1   : > { %p6527_p12 = scmp.ne.s32.totalorder %s654_s2, %s6526_s29  ;;  %p6535_p0 = scmp.lt.s32.totalorder %s6526_s29, %s6526_s29 }
  0xb3   : > { %p6529_p1 = pnand %p6527_p12, %p8076_p6  ;;  %p6536_p10 = por %p6535_p0, %p6534_p8 }
  0xb5   : > { %p6530_p4 = pneg %p6529_p1 }
  0xb7   : > { %p6537_p11 = pnand %p6536_p10, %p6530_p4 }
  0xb9   : > { %6540 = shalt.err (!%p6537_p11)
}
  0xba   : > { %s6716_s12 = smov 128   ;;  %s6717_s28 = smov 8  }
  0xbb   : > { %p8077_p7 = scmp.ne.s32.totalorder %s8062_s5, 0  ;;  %s6718_s30 = smov [#allocation8]  }
  0xbc   : > { %s681_s16 = sshll.u32 %s6718_s30, 4  ;;  %s7075_s27 = scalar_lea.hbm %s8001_s15, %s6997_s21  ;;  %s682_s16 = int_to_ptr.vmem [resolvable:$true] %s681_s16 }
  0xbd   : > { %6230 = dma.hbm_to_vmem [thread:$0]  (!%p8077_p7), %s8075_s14, 256, %s654_s2, [#allocation5], %s6716_s12, %s6716_s12, %s6717_s28  }
  0xbe   : > { %s726_s13 = scalar_lea.vmem [#allocation11], %s6931_s8  ;;  %s6541_s10 = scalar_lea.hbm %s7997_s11, 16 }
  0xbf   : > { %s733_s29 = sshll.u32 %s726_s13, 4  ;;  %p6542_p11 = scmp.ne.s32.totalorder %s7997_s11, %s6541_s10  ;;  %s734_s29 = int_to_ptr.vmem [resolvable:$true] %s733_s29 }
  0xc0   : > { %p6548_p2 = scmp.lt.u32.totalorder %s6541_s10, %s7997_s11 }
  0xc1   : > { %p6544_p5 = pnand %p6542_p11, %p8076_p6 }
  0xc3   : > { %p6545_p13 = pneg %p6544_p5 }
  0xc5   : > { %p6550_p3 = pnand %p6548_p2, %p6545_p13 }
  0xc7   : > { %6553 = shalt.err (!%p6550_p3)
}
  0xc8   : > { %s6554_s28 = scalar_lea.vmem %s682_s16, 16  ;;  %s6561_s17 = scalar_lea.vmem %s682_s16, 32 }
  0xc9   : > { %p6555_p12 = scmp.ne.s32.totalorder %s682_s16, %s6554_s28  ;;  %p6562_p8 = scmp.lt.s32.totalorder %s682_s16, %s682_s16 }
  0xca   : > { %p6563_p0 = scmp.lt.s32.totalorder %s6561_s17, %s6554_s28 }
  0xcb   : > { %p6557_p1 = pnand %p6555_p12, %p8076_p6 }
  0xcc   : > { %p6564_p10 = por %p6563_p0, %p6562_p8 }
  0xcd   : > { %p6558_p4 = pneg %p6557_p1 }
  0xcf   : > { %p6565_p9 = pnand %p6564_p10, %p6558_p4 }
  0xd1   : > { %6568 = shalt.err (!%p6565_p9)
}
  0xd2   : > { %6236 = dma.hbm_to_vmem [thread:$0]  (!%p8077_p7), %s7997_s11, 16, %s682_s16, [#allocation7]  }
  0xd3   : > { %s6569_s10 = scalar_lea.hbm %s7075_s27, 16  ;;  %p8078_p11 = scmp.ne.s32.totalorder %s8068_s24, 0 }
  0xd4   : > { %p6570_p6 = scmp.ne.s32.totalorder %s7075_s27, %s6569_s10  ;;  %s6574_s9 = scalar_lea.hbm %s8001_s15, 32 }
  0xd5   : > { %p6575_p9 = scmp.lt.u32.totalorder %s7075_s27, %s8001_s15  ;;  %p6576_p2 = scmp.lt.u32.totalorder %s6574_s9, %s6569_s10 }
  0xd6   : > { %p6572_p5 = pnand %p6570_p6, %p8078_p11  ;;  %p6578_p12 = scmp.lt.u32.totalorder %s6569_s10, %s7075_s27 }
  0xd7   : > { %p6577_p3 = por %p6576_p2, %p6575_p9 }
  0xd8   : > { %p6573_p13 = pneg %p6572_p5 }
  0xd9   : > { %p6579_p1 = por %p6578_p12, %p6577_p3 }
  0xdb   : > { %p6580_p4 = pnand %p6579_p1, %p6573_p13 }
  0xdd   : > { %6583 = shalt.err (!%p6580_p4)
}
  0xde   : > { %s6584_s30 = scalar_lea.vmem %s734_s29, 16  ;;  %s6719_s16 = smov [#allocation11]  }
  0xdf   : > { %p6585_p7 = scmp.ne.s32.totalorder %s734_s29, %s6584_s30  ;;  %s6589_s6 = sshll.u32 %s6719_s16, 4  ;;  %s6590_s6 = int_to_ptr.vmem [resolvable:$false] %s6589_s6 }
  0xe0   : > { %s6591_s23 = scalar_lea.vmem %s6590_s6, 32  ;;  %p6592_p10 = scmp.lt.s32.totalorder %s734_s29, %s6590_s6 }
  0xe1   : > { %p6587_p8 = pnand %p6585_p7, %p8078_p11  ;;  %p6593_p6 = scmp.lt.s32.totalorder %s6591_s23, %s6584_s30 }
  0xe3   : > { %p6588_p0 = pneg %p6587_p8  ;;  %p6594_p5 = por %p6593_p6, %p6592_p10 }
  0xe5   : > { %p6595_p2 = pnand %p6594_p5, %p6588_p0 }
  0xe7   : > { %6598 = shalt.err (!%p6595_p2)
}
  0xe8   : > { %p8079_p9 = scmp.ne.s32.totalorder %s8063_s1, 0  ;;  %s8080_s13 = scalar_lea.sflag [#allocation10], %s6916_s25 }
  0xe9   : > { %s7119_s28 = scalar_lea.hbm %s8004_s18, %s6997_s21  ;;  %s768_s17 = scalar_lea.vmem [#allocation14], %s6931_s8 }
  0xea   : > { %6243 = dma.hbm_to_vmem [thread:$0]  (!%p8079_p9), %s7075_s27, 16, %s734_s29, %s8080_s13  }
  0xeb   : > { %s775_s20 = sshll.u32 %s768_s17, 4  ;;  %s6599_s26 = scalar_lea.hbm %s7119_s28, 16  ;;  %s776_s20 = int_to_ptr.vmem [resolvable:$true] %s775_s20 }
  0xec   : > { %p6600_p13 = scmp.ne.s32.totalorder %s7119_s28, %s6599_s26  ;;  %s6604_s27 = scalar_lea.hbm %s8004_s18, 32 }
  0xed   : > { %p6605_p1 = scmp.lt.u32.totalorder %s7119_s28, %s8004_s18  ;;  %p6606_p4 = scmp.lt.u32.totalorder %s6604_s27, %s6599_s26 }
  0xee   : > { %p6602_p3 = pnand %p6600_p13, %p8078_p11  ;;  %p6608_p8 = scmp.lt.u32.totalorder %s6599_s26, %s7119_s28 }
  0xef   : > { %p6607_p7 = por %p6606_p4, %p6605_p1 }
  0xf0   : > { %p6603_p12 = pneg %p6602_p3 }
  0xf1   : > { %p6609_p0 = por %p6608_p8, %p6607_p7 }
  0xf3   : > { %p6610_p10 = pnand %p6609_p0, %p6603_p12 }
  0xf5   : > { %6613 = shalt.err (!%p6610_p10)
}
  0xf6   : > { %s6614_s9 = scalar_lea.vmem %s776_s20, 16  ;;  %s6720_s5 = smov [#allocation14]  }
  0xf7   : > { %p6615_p6 = scmp.ne.s32.totalorder %s776_s20, %s6614_s9  ;;  %s6619_s19 = sshll.u32 %s6720_s5, 4  ;;  %s6620_s19 = int_to_ptr.vmem [resolvable:$false] %s6619_s19 }
  0xf8   : > { %s6621_s30 = scalar_lea.vmem %s6620_s19, 32  ;;  %p6622_p13 = scmp.lt.s32.totalorder %s776_s20, %s6620_s19 }
  0xf9   : > { %p6617_p5 = pnand %p6615_p6, %p8078_p11  ;;  %p6623_p3 = scmp.lt.s32.totalorder %s6621_s30, %s6614_s9 }
  0xfb   : > { %p6618_p2 = pneg %p6617_p5  ;;  %p6624_p9 = por %p6623_p3, %p6622_p13 }
  0xfd   : > { %p6625_p1 = pnand %p6624_p9, %p6618_p2 }
  0xff   : > { %6628 = shalt.err (!%p6625_p1)
}
 0x100   : > { %p8081_p4 = scmp.ne.s32.totalorder %s8063_s1, 0  ;;  %s8082_s16 = scalar_lea.sflag [#allocation13], %s6916_s25 }
 0x101   : > { %s7145_s13 = scalar_lea.hbm %s8008_s22, %s6997_s21  ;;  %s818_s2 = scalar_lea.vmem [#allocation17], %s6931_s8 }
 0x102   : > { %6249 = dma.hbm_to_vmem [thread:$0]  (!%p8081_p4), %s7119_s28, 16, %s776_s20, %s8082_s16  }
 0x103   : > { %s825_s12 = sshll.u32 %s818_s2, 4  ;;  %s6629_s17 = scalar_lea.hbm %s7145_s13, 16  ;;  %s826_s12 = int_to_ptr.vmem [resolvable:$true] %s825_s12 }
 0x104   : > { %p6630_p9 = scmp.ne.s32.totalorder %s7145_s13, %s6629_s17  ;;  %s6634_s28 = scalar_lea.hbm %s8008_s22, 32 }
 0x105   : > { %p6635_p8 = scmp.lt.u32.totalorder %s7145_s13, %s8008_s22  ;;  %p6636_p0 = scmp.lt.u32.totalorder %s6634_s28, %s6629_s17 }
 0x106   : > { %p6632_p12 = pnand %p6630_p9, %p8078_p11  ;;  %p6638_p6 = scmp.lt.u32.totalorder %s6629_s17, %s7145_s13 }
 0x107   : > { %p6637_p10 = por %p6636_p0, %p6635_p8 }
 0x108   : > { %p6633_p7 = pneg %p6632_p12 }
 0x109   : > { %p6639_p5 = por %p6638_p6, %p6637_p10 }
 0x10b   : > { %p6640_p2 = pnand %p6639_p5, %p6633_p7 }
 0x10d   : > { %6643 = shalt.err (!%p6640_p2)
}
 0x10e   : > { %s6644_s8 = scalar_lea.vmem %s826_s12, 16  ;;  %s6721_s21 = smov [#allocation17]  }
 0x10f   : > { %p6645_p13 = scmp.ne.s32.totalorder %s826_s12, %s6644_s8  ;;  %s6649_s27 = sshll.u32 %s6721_s21, 4  ;;  %s6650_s27 = int_to_ptr.vmem [resolvable:$false] %s6649_s27 }
 0x110   : > { %s6651_s29 = scalar_lea.vmem %s6650_s27, 32  ;;  %p6652_p9 = scmp.lt.s32.totalorder %s826_s12, %s6650_s27 }
 0x111   : > { %p6647_p3 = pnand %p6645_p13, %p8078_p11  ;;  %p6653_p12 = scmp.lt.s32.totalorder %s6651_s29, %s6644_s8 }
 0x113   : > { %p6648_p1 = pneg %p6647_p3  ;;  %p6654_p4 = por %p6653_p12, %p6652_p9 }
 0x115   : > { %p6655_p0 = pnand %p6654_p4, %p6648_p1 }
 0x117   : > { %6658 = shalt.err (!%p6655_p0)
}
 0x118   : > { %p8083_p8 = scmp.ne.s32.totalorder %s8063_s1, 0  ;;  %s8084_s3 = scalar_lea.sflag [#allocation16], %s6916_s25 }
 0x119   : > { %p8085_p7 = scmp.ne.s32.totalorder %s8061_s4, 0 }
 0x11a   : > { %6255 = dma.hbm_to_vmem [thread:$0]  (!%p8083_p8), %s7145_s13, 16, %s826_s12, %s8084_s3  }
 0x11b   : > { %834 = sbr.rel (%p8085_p7) target bundleno = 3723 (0xe8b), region = 112  ;;  %p8086_p11 = scmp.eq.s32.totalorder (!%p8085_p7), %s6880_s7, 0 }
 0x122   : > { %6676 = dma.done.wait (%p8086_p11), [#allocation5], 256   ;;  %p8087_p10 = pmov %p8086_p11 }
 0x124   : > { %6678 = vsyncadd (%p8087_p10), [#allocation5], 4294967040  ;;  %p8088_p6 = pmov %p8087_p10 }
 0x126   : > { %6680 = dma.done.wait (%p8088_p6), [#allocation7], 32   ;;  %p8089_p4 = pmov %p8088_p6 }
 0x127   : > { %s8090_s1 = sld [smem:[#allocation23_spill]]  ;;  %s8091_s25 = sld [smem:[#allocation27_spill]] }
 0x128   : > { %6682 = vsyncadd (%p8089_p4), [#allocation7], 4294967264  ;;  %s848_s24 = sand.u32 1, %s6880_s7  }
 0x129   : > { %s849_s5 = scalar_lea.sflag [#allocation10], %s848_s24 }
 0x12d   : > { %s7179_s9 = sand.u32 1, %s8090_s1   ;;  %p8092_p5 = scmp.ne.s32.totalorder %s8091_s25, 0 }
 0x12e   : > { %s5711_s4 = sshll.u32 %s7179_s9, 3 }
 0x12f   : > { %s7182_s19 = scalar_lea.vmem [#allocation9], %s5711_s4 }
 0x130   : > { %6684 = dma.done.wait (%p8092_p5), %s849_s5, 144  }
 0x131   : > { %6686 = vsyncadd (%p8092_p5), %s849_s5, 4294967152  ;;  %s860_s30 = scalar_lea.vmem [#allocation11], %s7179_s9  ;;  %s866_s16 = scalar_lea.sflag [#allocation13], %s848_s24 }
 0x132   : > { %s868_s6 = scalar_lea.vmem [#allocation12], %s7179_s9 }
 0x133   : > { %6688 = dma.done.wait (%p8092_p5), %s866_s16, 32  }
 0x134   : > { %6690 = vsyncadd (%p8092_p5), %s866_s16, 4294967264  ;;  %s876_s23 = scalar_lea.vmem [#allocation14], %s7179_s9  ;;  %s882_s13 = scalar_lea.sflag [#allocation16], %s848_s24 }
 0x135   : > { %s884_s2 = scalar_lea.vmem [#allocation15], %s7179_s9 }
 0x136   : > { %6692 = dma.done.wait (%p8092_p5), %s882_s13, 32  }
 0x137   : > { %6694 = vsyncadd (%p8092_p5), %s882_s13, 4294967264  ;;  %v6722_v2 = vmov 0   ;;  %v1149_v3 = vlaneseq  ;;  %vm1057_vm0 = vcmask 1041408   ;;  %vm1044_vm1 = vcmask 80896   ;;  %s8093_s26 = sld [smem:[#allocation30_spill]]  ;;  %s8095_s21 = sld [smem:[#allocation29_spill]] }
 0x138   : > { %6313 = vset.pattern.permute.xlu0 %v6722_v2  ;;  %6314 = vset.pattern.permute.xlu1 %v6722_v2  ;;  %vm6723_vm2 = vmmov 1   ;;  %v1146_v10 = vld [vmem:[#allocation2] sm:$0x1]  ;;  %v1170_v11 = vld [vmem:[#allocation3] sm:$0x1]  ;;  %v1224_v16 = vld [vmem:[#allocation4] sm:$0xff]  ;;  %p8101_p2 = pmov %p8089_p4 }
 0x139   : > { %v7200_v4 = vshrl.u32 %v1149_v3, 7  ;;  %vm6167_vm3 = vmpackc.low %vm1057_vm0, %vm6723_vm2  ;;  %1173 = vperm.xlu1 %6314, %v1170_v11   ;;  %v1225_v17 = vld [vmem:[#allocation4 + $0x8] sm:$0xff]  ;;  %v6724_v18 = vmov 0.0|0.0   ;;  %vm6725_vm4 = vmmov 0   ;;  %v6726_v20 = vmov 0.0   ;;  %s8096_s16 = sld [smem:[#allocation37_spill]] }
 0x13a   : > { %6172 = vmatprep.subr.bf16.mxu1 %v6724_v18  ;;  %v6173_v19 = vpack.c.bf16 %v1225_v17, %v1224_v16  ;;  %5946 = vmatprep.mubr.msk.f32.mxu1 %vm6725_vm4, %v6726_v20  ;;  %s8097_s28 = sld [smem:[#allocation32_spill]]  ;;  %s8098_s8 = sld [smem:[#allocation31_spill]]  ;;  %vm1185_vm5 = vcmask 126976   ;;  %vm1238_vm6 = vcmask 1041409   ;;  %vm1241_vm7 = vcmask 1042434  }
 0x13b   : > { %v7203_v5 = vsub.s32 0, %v7200_v4  ;;  %s8099_s3 = sld [smem:[#allocation33_spill]]  ;;  %vm1244_vm8 = vcmask 1043459   ;;  %vm1246_vm9 = vcmask 130048   ;;  %s8100_s24 = sld [smem:[#allocation28_spill]]  ;;  %vm1445_vm10 = vcmask 1040384  }
 0x13c   : > { %6174 = vmatpush3.bf16.msra.mxu1 %v6173_v19  ;;  %vm1462_vm11 = vcmask 1046528   ;;  %vm1483_vm12 = vcmask 1045504   ;;  %s6731_s27 = smov 32   ;;  %s6732_s29 = smov 96   ;;  %vm1676_vm13 = vcmask 261120   ;;  %vm1678_vm14 = vcmask 523264  }
 0x13d   : > { %s8094_s10 = smov %s8093_s26  ;;  %v1035_v6 = vld [vmem:[%s8093_s26] sm:$0xff]  ;;  %v1152_v12 = vrot.slane %v1146_v10, %v7203_v5  ;;  %v1032_v13 = vld [vmem:[%s8095_s21 + $0x8] sm:$0xff]  ;;  %v1033_v14 = vld [vmem:[%s8095_s21 + $0x10] sm:$0xff]  ;;  %vm1680_vm15 = vcmask 785408   ;;  %vm1683_vm0 = vcmask 64512   ;;  %p997_p13 = scmp.lt.s32.totalorder %s6880_s7, 1 }
 0x13e   : > { %v1036_v7 = vld [vmem:[%s8094_s10 + $0x8] sm:$0x3]  ;;  %v1031_v8 = vld [vmem:[%s8095_s21] sm:$0xff]  ;;  %v1034_v15 = vld [vmem:[%s8095_s21 + $0x18] sm:$0xff]  ;;  %s8102_s4 = sld [smem:[#allocation39_spill]]  ;;  %s8103_s17 = sld [smem:[#allocation41_spill]] }
 0x13f   : > { %v6166_v9 = vpack.c.bf16 %v1036_v7, %v1035_v6  ;;  %5936 = vmatprep.mubr.msk.f32.mxu0 %vm1044_vm1, %v1031_v8  ;;  %1154 = vperm.xlu0 %6313, %v1152_v12   ;;  %v1319_v21 = vld [vmem:[%s8096_s16] sm:$0xff]  ;;  %v1320_v22 = vld [vmem:[%s8096_s16 + $0x8] sm:$0xff]  ;;  %s8113_s7 = smov (!%p997_p13, %s6880_s7), 1  ;;  %vm3594_vm2 = vcmask 27648   ;;  %s8107_s12 = sld [smem:[#allocation46_spill]] }
 0x140   : > { %v7239_v23 = vpack.c.bf16 %v1320_v22, %v1319_v21  ;;  %v1147_v25 = vld [vmem:[%s8097_s28] sm:$0x1f]  ;;  %s7278_s28 = scalar_select %p8101_p2, 1, 0 }
 0x141   : > { %6168 = vmatprep.subr.msk.bf16.mxu0 %vm6167_vm3, %v6166_v9  ;;  %v5721_v26 = vld [vmem:[%s8098_s8] ss:$0 sm:$0xff]  ;;  %s6730_s8 = smov 64  }
 0x142   : > { %6171 = vmatpush3.bf16.msk.msra.mxu0 %vm6167_vm3, %v6166_v9  ;;  %6176 = vmatprep.subr.bf16.mxu1 %v7239_v23  ;;  %v1159_v38 = vld [vmem:[%s8099_s3] sm:$0x1]  ;;  %s1026_s20 = scvt.s32.f32 %s7278_s28  ;;  %s5712_s3 = sshll.u32 %s8113_s7, 3  ;;  %vm3771_vm3 = vcmask 31744  }
 0x143   : > { %1162 = vperm.xlu0 %6313, %v1146_v10   ;;  %5959 = vmatprep.subr.mxu0 %v6726_v20 }
 0x144   : > { %s1514_s0 = ssub.f32 1.0, %s1026_s20  ;;  %s1000_s5 = scalar_lea.vmem %s8102_s4, %s5712_s3 }
 0x145   : > { %5937 = vmatmul.mubr.msk.f32.vlgmr.msra.gmra.mrb[0].mxu0 %vm1044_vm1, %v1032_v13  ;;  %s8105_s3 = sld [smem:[#allocation43_spill]] }
 0x146   : > { %5939 = vmatprep.mubr.msk.f32.mxu0 %vm1044_vm1, %v1033_v14 }
 0x149   : > { %5940 = vmatmul.mubr.msk.f32.gmra.mrb[2].mxu0 %vm1044_vm1, %v1034_v15  ;;  %vm3775_vm1 = vcmask 1043456  }
 0x14a   : > { %5961 = vmatprep.mubr.msk.f32.mxu0 %vm6725_vm4, %v6726_v20 }
 0x1b8   : > { %v1174_v41 = vpop.permute.xlu1 %1173 }
 0x1b9   : > { %v1179_v50 = vrot.slane %v1174_v41, %v7203_v5 }
 0x1be   : > { %v1155_v24 = vpop.permute.xlu0 %1154 }
 0x1bf   : > { %v1157_v27 = vmul.f32 %v1155_v24, %v1147_v25  ;;  %v1027_v25 = vld [vmem:[%s8100_s24] sm:$0xff] }
 0x1c2   : > { %v1163_v31 = vpop.permute.xlu0 %1162 }
 0x1c3   : > { %v1168_v35 = vrot.slane %v1163_v31, %v7203_v5 }
 0x1c5   : > { %v1169_v48 = vmul.f32 %v1168_v35, %v1159_v38 }
 0x1c7   : > { %v1180_v60 = vadd.f32 %v1179_v50, %v1169_v48 }
 0x1c9   : > { %v1218_v7 = vrot.slane %v1180_v60, %v7203_v5 }
 0x218   : > { %v5938_v28 = vpop.f32.mrb[0].mxu0 }
 0x219   : > { %v1133_v29 = vadd.f32 %v5938_v28, %v5721_v26  ;;  %v1127_v30 = vpop.f32.mrb[1].mxu0  ;;  %v1029_v28 = vld [vmem:[%s8100_s24 + $0x10] sm:$0xff] }
 0x21a   : > { %v1128_v32 = vadd.f32 %v5721_v26, %v1127_v30 }
 0x21b   : > { %v1182_v33 = vmul.f32 %v1157_v27, %v1133_v29  ;;  %v1030_v29 = vld [vmem:[%s8100_s24 + $0x18] sm:$0xff] }
 0x21c   : > { %v1181_v34 = vmul.f32 %v1157_v27, %v1128_v32  ;;  %v5941_v36 = vpop.f32.mrb[2].mxu0  ;;  %v5727_v32 = vld [vmem:[#allocation6] ss:$0 sm:$0xff] }
 0x21d   : > { %v1193_v37 = vsel %vm1185_vm5, %v1182_v33, 0.0  ;;  %v1143_v39 = vadd.f32 %v5941_v36, %v5721_v26  ;;  %v1137_v40 = vpop.f32.mrb[3].mxu0 }
 0x21e   : > { %v1194_v42 = vrot.slane %v1193_v37, 4  ;;  %v1186_v43 = vsel %vm1185_vm5, %v1181_v34, 0.0  ;;  %v1138_v44 = vadd.f32 %v5721_v26, %v1137_v40 }
 0x21f   : > { %v1187_v45 = vrot.slane %v1186_v43, 4  ;;  %v1184_v46 = vmul.f32 %v1157_v27, %v1143_v39  ;;  %v7284_v39 = vstv %s1026_s20 }
 0x220   : > { %v1195_v47 = vadd.f32 %v1194_v42, %v1193_v37  ;;  %v1183_v49 = vmul.f32 %v1157_v27, %v1138_v44  ;;  %v1028_v27 = vld [vmem:[%s8100_s24 + $0x8] sm:$0xff]  ;;  %v5729_v37 = vld [vmem:[#allocation8] ss:$0 sm:$0xff] }
 0x221   : > { %v1188_v51 = vadd.f32 %v1187_v45, %v1186_v43  ;;  %v1207_v52 = vsel %vm1185_vm5, %v1184_v46, 0.0 }
 0x222   : > { %v1196_v53 = vrot.slane %v1195_v47, 2  ;;  %v1208_v54 = vrot.slane %v1207_v52, 4  ;;  %v1200_v55 = vsel %vm1185_vm5, %v1183_v49, 0.0 }
 0x223   : > { %v1189_v56 = vrot.slane %v1188_v51, 2  ;;  %v1201_v57 = vrot.slane %v1200_v55, 4 }
 0x224   : > { %v1197_v58 = vadd.f32 %v1196_v53, %v1195_v47  ;;  %v1209_v59 = vadd.f32 %v1208_v54, %v1207_v52 }
 0x225   : > { %v1190_v61 = vadd.f32 %v1189_v56, %v1188_v51  ;;  %v1202_v62 = vadd.f32 %v1201_v57, %v1200_v55 }
 0x226   : > { %v1198_v63 = vrot.slane %v1197_v58, 1  ;;  %v1210_v0 = vrot.slane %v1209_v59, 2 }
 0x227   : > { %v1191_v1 = vrot.slane %v1190_v61, 1  ;;  %v1203_v2 = vrot.slane %v1202_v62, 2 }
 0x228   : > { %v1199_v3 = vadd.f32 %v1198_v63, %v1197_v58  ;;  %v1211_v6 = vadd.f32 %v1210_v0, %v1209_v59 }
 0x229   : > { %v1192_v8 = vadd.f32 %v1191_v1, %v1190_v61  ;;  %v1204_v9 = vadd.f32 %v1203_v2, %v1202_v62 }
 0x22a   : > { %v1212_v10 = vrot.slane %v1211_v6, 1  ;;  %v1221_v11 = vadd.f32 %v1218_v7, %v1199_v3 }
 0x22b   : > { %v1205_v12 = vrot.slane %v1204_v9, 1  ;;  %v1220_v13 = vadd.f32 %v1218_v7, %v1192_v8 }
 0x22c   : > { %v1213_v14 = vadd.f32 %v1212_v10, %v1211_v6  ;;  %v1237_v15 = vrot.slane %v1221_v11, 7 }
 0x22d   : > { %v1206_v16 = vadd.f32 %v1205_v12, %v1204_v9 }
 0x22e   : > { %v1223_v17 = vadd.f32 %v1218_v7, %v1213_v14  ;;  %v1239_v18 = vsel %vm1238_vm6, %v1237_v15, %v1220_v13 }
 0x22f   : > { %v1222_v19 = vadd.f32 %v1218_v7, %v1206_v16 }
 0x230   : > { %v1243_v22 = vrot.slane %v1223_v17, 5 }
 0x231   : > { %v1240_v21 = vrot.slane %v1222_v19, 6 }
 0x233   : > { %v1242_v24 = vsel %vm1241_vm7, %v1240_v21, %v1239_v18 }
 0x234   : > { %v1245_v26 = vsel %vm1244_vm8, %v1243_v22, %v1242_v24 }
 0x235   : > { %5947 = vmatmul.mubr.msk.f32.vlgmr.msra.gmra.mrb[0].mxu1 %vm1246_vm9, %v1245_v26 }
 0x236   : > { %6178 = vmatpush3.bf16.msra.mxu1 %v7239_v23  ;;  %5953 = vmatprep.mubr.msk.f32.mxu1 %vm1246_vm9, %v1027_v25  ;;  %v6727_v23 = vmov 1966171168  }
 0x237   : > { %v5385_v30 = vunpack.c.l.s4 %v6727_v23 }
 0x239   : > { %5954 = vmatmul.mubr.msk.f32.vlgmr.msra.gmra.mrb[2].mxu1 %vm1246_vm9, %v1028_v27  ;;  %v5386_v31 = vunpack.c.0.s8 %v5385_v30 }
 0x23a   : > { %5956 = vmatprep.mubr.msk.f32.mxu1 %vm1246_vm9, %v1029_v28 }
 0x23b   : > { %v5389_v33 = vsub.s32 %v5386_v31, %v7200_v4 }
 0x23d   : > { %5957 = vmatmul.mubr.msk.f32.gmra.mrb[4].mxu1 %vm1246_vm9, %v1030_v29 }
 0x308   : > { %v1315_v34 = vpop.f32.mrb[0].mxu1 }
 0x309   : > { %v1316_v35 = vadd.f32 %v5727_v32, %v1315_v34  ;;  %v5948_v36 = vpop.f32.mrb[1].mxu1  ;;  %v6728_v34 = vmov 1983009808  }
 0x30b   : > { %v5390_v38 = vrot.slane %v1316_v35, %v5389_v33  ;;  %v1531_v35 = vunpack.c.l.s4 %v6728_v34 }
 0x30c   : > { %v5955_v40 = vpop.f32.mrb[2].mxu1 }
 0x30d   : > { %v5391_v41 = vcombine.high %v5390_v38, %v5390_v38  ;;  %v7286_v42 = vrot.slane %v5390_v38, %v5389_v33  ;;  %v7288_v43 = vadd.f32 %v5955_v40, %v5729_v37  ;;  %v1406_v44 = vpop.f32.mrb[3].mxu1 }
 0x30e   : > { %v7290_v45 = vadd.f32 %v5729_v37, %v1406_v44 }
 0x30f   : > { %v7292_v46 = vrot.slane %v5391_v41, %v5389_v33  ;;  %v7296_v47 = vmul.f32 %v7286_v42, %v7284_v39  ;;  %v1430_v48 = vrot.slane %v7288_v43, 7  ;;  %v1438_v49 = vrot.slane %v7288_v43, 6 }
 0x310   : > { %v1429_v50 = vrot.slane %v7290_v45, 7  ;;  %v1437_v51 = vrot.slane %v7290_v45, 6  ;;  %v5958_v52 = vpop.f32.mrb[4].mxu1  ;;  %v5406_v25 = vcombine.high %v7286_v42, %v7286_v42 }
 0x311   : > { %v1447_v53 = vsel %vm1445_vm10, %v7288_v43, %v1430_v48  ;;  %v7304_v54 = vadd.f32 %v5958_v52, %v5729_v37  ;;  %v1416_v55 = vpop.f32.mrb[5].mxu1  ;;  %v7308_v56 = vmul.f32 %v7292_v46, %v7284_v39  ;;  %v1451_v57 = vsel %vm1445_vm10, %v1430_v48, %v1438_v49 }
 0x312   : > { %v1466_v58 = vrot.slane %v1447_v53, 1  ;;  %v1487_v59 = vrot.slane %v1447_v53, 2  ;;  %v1446_v60 = vsel %vm1445_vm10, %v7290_v45, %v1429_v50  ;;  %v1467_v61 = vrot.slane %v1451_v57, 1 }
 0x313   : > { %v1488_v62 = vrot.slane %v1451_v57, 2  ;;  %v1450_v63 = vsel %vm1445_vm10, %v1429_v50, %v1437_v51  ;;  %v1463_v0 = vrot.slane %v1446_v60, 1  ;;  %v1484_v2 = vrot.slane %v1446_v60, 2 }
 0x314   : > { %v1464_v1 = vrot.slane %v1450_v63, 1  ;;  %v1485_v3 = vrot.slane %v1450_v63, 2  ;;  %v1432_v6 = vrot.slane %v7304_v54, 7  ;;  %v1468_v7 = vsel %vm1462_vm11, %v1466_v58, %v1467_v61 }
 0x315   : > { %v1489_v8 = vsel %vm1483_vm12, %v1487_v59, %v1488_v62  ;;  %v1440_v9 = vrot.slane %v7304_v54, 6  ;;  %v1417_v10 = vadd.f32 %v5729_v37, %v1416_v55  ;;  %v1480_v11 = vadd.f32 %v1468_v7, %v1447_v53 }
 0x316   : > { %v1465_v12 = vsel %vm1462_vm11, %v1463_v0, %v1464_v1  ;;  %v1486_v13 = vsel %vm1483_vm12, %v1484_v2, %v1485_v3  ;;  %v1449_v14 = vsel %vm1445_vm10, %v7304_v54, %v1432_v6  ;;  %v5407_v28 = vcombine.high %v7292_v46, %v7292_v46 }
 0x317   : > { %v1479_v15 = vadd.f32 %v1465_v12, %v1446_v60  ;;  %v1453_v16 = vsel %vm1445_vm10, %v1432_v6, %v1440_v9  ;;  %v1472_v17 = vrot.slane %v1449_v14, 1  ;;  %v1493_v18 = vrot.slane %v1449_v14, 2 }
 0x318   : > { %v1501_v19 = vadd.f32 %v1489_v8, %v1480_v11  ;;  %v1473_v21 = vrot.slane %v1453_v16, 1  ;;  %v1494_v22 = vrot.slane %v1453_v16, 2  ;;  %v1431_v24 = vrot.slane %v1417_v10, 7 }
 0x319   : > { %v1500_v26 = vadd.f32 %v1486_v13, %v1479_v15  ;;  %v1439_v27 = vrot.slane %v1417_v10, 6  ;;  %v1519_v46 = vstv %s1514_s0  ;;  %v7336_v49 = vmul.f32 %v5407_v28, %v7284_v39  ;;  %s8104_s0 = sld [smem:[#allocation40_spill]] }
 0x31a   : > { %v1506_v29 = vmul.f32 0.33333334, %v1501_v19  ;;  %v1474_v23 = vsel %vm1462_vm11, %v1472_v17, %v1473_v21  ;;  %v1448_v30 = vsel %vm1445_vm10, %v1417_v10, %v1431_v24  ;;  %v1495_v36 = vsel %vm1483_vm12, %v1493_v18, %v1494_v22 }
 0x31b   : > { %v1482_v31 = vadd.f32 %v1474_v23, %v1449_v14  ;;  %v1452_v32 = vsel %vm1445_vm10, %v1431_v24, %v1439_v27  ;;  %v1469_v33 = vrot.slane %v1448_v30, 1  ;;  %v1490_v38 = vrot.slane %v1448_v30, 2 }
 0x31c   : > { %v1470_v37 = vrot.slane %v1452_v32, 1  ;;  %v1516_v40 = vsub.f32 %v7288_v43, %v1506_v29  ;;  %v1505_v41 = vmul.f32 0.33333334, %v1500_v26  ;;  %v1491_v44 = vrot.slane %v1452_v32, 2 }
 0x31d   : > { %v1503_v42 = vadd.f32 %v1495_v36, %v1482_v31  ;;  %v7339_v50 = vmul.f32 %v5406_v25, %v7284_v39  ;;  %v1532_v59 = vunpack.c.0.s8 %v1531_v35  ;;  %v1511_v60 = vmul.f32 %v7284_v39, %v1506_v29 }
 0x31e   : > { %v1471_v48 = vsel %vm1462_vm11, %v1469_v33, %v1470_v37  ;;  %v1492_v53 = vsel %vm1483_vm12, %v1490_v38, %v1491_v44  ;;  %v1521_v55 = vmul.f32 %v1519_v46, %v1516_v40  ;;  %v1515_v57 = vsub.f32 %v7290_v45, %v1505_v41 }
 0x31f   : > { %v1508_v51 = vmul.f32 0.33333334, %v1503_v42  ;;  %v1481_v52 = vadd.f32 %v1471_v48, %v1448_v30  ;;  %v6729_v0 = vmov 1934713408   ;;  %v7347_v8 = vsub.s32 %v1532_v59, %v7200_v4 }
 0x320   : > { %v1563_v1 = vunpack.c.l.s4 %v6729_v0  ;;  %v1525_v2 = vadd.f32 %v1521_v55, %v1511_v60  ;;  %v1520_v3 = vmul.f32 %v1519_v46, %v1515_v57  ;;  %v1510_v45 = vmul.f32 %v7284_v39, %v1505_v41 }
 0x321   : > { %v1518_v43 = vsub.f32 %v7304_v54, %v1508_v51  ;;  %v1502_v58 = vadd.f32 %v1492_v53, %v1481_v52  ;;  %v1513_v61 = vmul.f32 %v7284_v39, %v1508_v51 }
 0x322   : > { %v1564_v13 = vunpack.c.0.s8 %v1563_v1  ;;  %v1524_v14 = vadd.f32 %v1520_v3, %v1510_v45  ;;  %v1903_v1 = vld [vmem:[%s1000_s5] sm:$0xff]  ;;  %s8106_s5 = sld [smem:[#allocation45_spill]] }
 0x323   : > { %v1523_v62 = vmul.f32 %v1519_v46, %v1518_v43  ;;  %v1507_v63 = vmul.f32 0.33333334, %v1502_v58 }
 0x325   : > { %v1527_v6 = vadd.f32 %v1523_v62, %v1513_v61  ;;  %v1517_v7 = vsub.f32 %v1417_v10, %v1507_v63  ;;  %v1512_v11 = vmul.f32 %v7284_v39, %v1507_v63  ;;  %v7354_v10 = vsub.s32 %v1564_v13, %v7200_v4  ;;  %v1682_v61 = vld [vmem:[%s7182_s19] sm:$0xff]  ;;  %s7412_s19 = sshll.u32 %s8113_s7, 5 }
 0x326   : > { %s1008_s26 = scalar_lea.vmem %s8103_s17, %s7412_s19  ;;  %s1013_s1 = scalar_lea.vmem %s8105_s3, %s7412_s19 }
 0x327   : > { %v1544_v54 = vcombine.low %v1525_v2, %v1527_v6  ;;  %v1545_v9 = vcombine.high %v1525_v2, %v1527_v6  ;;  %v1522_v12 = vmul.f32 %v1519_v46, %v1517_v7  ;;  %s1023_s17 = scalar_lea.vmem %s8107_s12, %s7412_s19 }
 0x328   : > { %s7937_s13 = scalar_lea.vmem %s8106_s5, %s7412_s19 }
 0x329   : > { %v1526_v15 = vadd.f32 %v1522_v12, %v1512_v11  ;;  %v1552_v16 = vrot.slane %v1544_v54, %v7347_v8  ;;  %v1559_v17 = vrot.slane %v1545_v9, %v7347_v8 }
 0x32b   : > { %v1528_v18 = vcombine.low %v1524_v14, %v1526_v15  ;;  %v1529_v19 = vcombine.high %v1524_v14, %v1526_v15 }
 0x32d   : > { %v1536_v21 = vrot.slane %v1528_v18, %v7347_v8  ;;  %v1543_v22 = vrot.slane %v1529_v19, %v7347_v8 }
 0x32f   : > { %v1560_v24 = vcombine.low %v1536_v21, %v1552_v16  ;;  %v1561_v25 = vcombine.high %v1536_v21, %v1552_v16  ;;  %v1576_v39 = vcombine.low %v1543_v22, %v1559_v17  ;;  %v1577_v26 = vcombine.high %v1543_v22, %v1559_v17 }
 0x331   : > { %v1568_v27 = vrot.slane %v1560_v24, %v7354_v10  ;;  %v1575_v28 = vrot.slane %v1561_v25, %v7354_v10  ;;  %v1584_v29 = vrot.slane %v1576_v39, %v7354_v10  ;;  %v1591_v23 = vrot.slane %v1577_v26, %v7354_v10 }
 0x333   : > { %v1596_v30 = vcombine.low %v1568_v27, %v1575_v28  ;;  %v5734_v31 = vcombine.high %v1568_v27, %v1575_v28  ;;  %v1612_v4 = vcombine.low %v1584_v29, %v1591_v23  ;;  %v5735_v32 = vcombine.high %v1584_v29, %v1591_v23 }
 0x335   : > { %v1603_v33 = vrot.slane %v1596_v30, %v7347_v8  ;;  %v1611_v34 = vrot.slane %v5734_v31, %v7347_v8  ;;  %v1619_v35 = vrot.slane %v1612_v4, %v7347_v8  ;;  %v1627_v36 = vrot.slane %v5735_v32, %v7347_v8 }
 0x337   : > { %v1629_v37 = vcombine.high %v1603_v33, %v1611_v34  ;;  %v1645_v38 = vcombine.high %v1619_v35, %v1627_v36  ;;  %v1628_v40 = vcombine.low %v1603_v33, %v1611_v34  ;;  %v1644_v41 = vcombine.low %v1619_v35, %v1627_v36 }
 0x339   : > { %v1643_v42 = vrot.slane %v1629_v37, %v7354_v10  ;;  %v1659_v44 = vrot.slane %v1645_v38, %v7354_v10  ;;  %v1636_v46 = vrot.slane %v1628_v40, %v7354_v10  ;;  %v1652_v48 = vrot.slane %v1644_v41, %v7354_v10 }
 0x33b   : > { %v1662_v51 = vcombine.low %v1643_v42, %v1659_v44  ;;  %v1661_v52 = vcombine.high %v1636_v46, %v1652_v48  ;;  %v1663_v53 = vcombine.high %v1643_v42, %v1659_v44  ;;  %v1660_v55 = vcombine.low %v1636_v46, %v1652_v48 }
 0x33d   : > { %1669 = vrot.lane.b32.xlu0 %v1662_v51, %s6730_s8  ;;  %1665 = vrot.lane.b32.xlu1 %v1661_v52, %s6731_s27 }
 0x341   : > { %1673 = vrot.lane.b32.xlu1 %v1663_v53, %s6732_s29 }
 0x3af   : > { %v1666_v57 = vpop.permute.xlu1 %1665  ;;  %v1670_v43 = vpop.permute.xlu0 %1669 }
 0x3b0   : > { %v1677_v58 = vsel %vm1676_vm13, %v1660_v55, %v1666_v57 }
 0x3b1   : > { %v1679_v60 = vsel %vm1678_vm14, %v1677_v58, %v1670_v43 }
 0x3b3   : > { %v1674_v59 = vpop.permute.xlu1 %1673 }
 0x3b4   : > { %v1681_v62 = vsel %vm1680_vm15, %v1679_v60, %v1674_v59 }
 0x3b5   : > { %5960 = vmatpush3.msra.mxu0 %v1681_v62 }
 0x3b6   : > { %5962 = vmatmul.mubr.msk.f32.vlgmr.msra.gmra.mrb[4].mxu0 %vm1683_vm0, %v1682_v61  ;;  %5978 = vmatprep.subr.mxu0 %v6726_v20 }
 0x3b7   : > { %5980 = vmatprep.mubr.msk.f32.mxu0 %vm6725_vm4, %v6726_v20 }
 0x489   : > { %v1753_v63 = vpop.f32.mrb[4].mxu0 }
 0x48a   : > { %1761 = vrot.lane.b32.xlu1 %v1753_v63, %s6730_s8  ;;  %1758 = vrot.lane.b32.xlu0 %v1753_v63, %s6732_s29  ;;  %v5963_v0 = vpop.f32.mrb[5].mxu0 }
 0x48e   : > { %1906 = vperm.xlu1 %6314, %v1903_v1   ;;  %1764 = vrot.lane.b32.xlu0 %v1753_v63, %s6731_s27  ;;  %s1003_s27 = scalar_lea.vmem %s8104_s0, %s8113_s7  ;;  %s6733_s7 = smov 112  }
 0x4fc   : > { %v1762_v2 = vpop.permute.xlu1 %1761  ;;  %v1759_v3 = vpop.permute.xlu0 %1758 }
 0x4fd   : > { %v1767_v6 = vcombine.low %v1753_v63, %v1762_v2  ;;  %v1768_v7 = vcombine.high %v1753_v63, %v1762_v2 }
 0x4ff   : > { %v1775_v11 = vrot.slane %v1767_v6, %v7347_v8  ;;  %v1782_v12 = vrot.slane %v1768_v7, %v7347_v8 }
 0x500   : > { %v1765_v45 = vpop.permute.xlu0 %1764 }
 0x501   : > { %v1783_v54 = vcombine.low %v1759_v3, %v1765_v45  ;;  %v1784_v9 = vcombine.high %v1759_v3, %v1765_v45 }
 0x503   : > { %v1791_v13 = vrot.slane %v1783_v54, %v7347_v8  ;;  %v1798_v14 = vrot.slane %v1784_v9, %v7347_v8 }
 0x505   : > { %v1799_v15 = vcombine.low %v1775_v11, %v1791_v13  ;;  %v1800_v16 = vcombine.high %v1775_v11, %v1791_v13  ;;  %v1815_v17 = vcombine.low %v1782_v12, %v1798_v14  ;;  %v1816_v18 = vcombine.high %v1782_v12, %v1798_v14 }
 0x507   : > { %v1807_v19 = vrot.slane %v1799_v15, %v7354_v10  ;;  %v1814_v21 = vrot.slane %v1800_v16, %v7354_v10  ;;  %v1823_v22 = vrot.slane %v1815_v17, %v7354_v10  ;;  %v1830_v24 = vrot.slane %v1816_v18, %v7354_v10  ;;  %v1988_v16 = vld [vmem:[%s1008_s26] sm:$0xff]  ;;  %v1989_v17 = vld [vmem:[%s1008_s26 + $0x8] sm:$0xff] }
 0x508   : > { %v6179_v18 = vpack.c.bf16 %v1989_v17, %v1988_v16 }
 0x509   : > { %v1835_v25 = vcombine.low %v1807_v19, %v1814_v21  ;;  %v5737_v39 = vcombine.high %v1807_v19, %v1814_v21  ;;  %v1851_v26 = vcombine.low %v1823_v22, %v1830_v24  ;;  %v5738_v27 = vcombine.high %v1823_v22, %v1830_v24  ;;  %v1990_v19 = vld [vmem:[%s1008_s26 + $0x10] sm:$0xff]  ;;  %v1991_v21 = vld [vmem:[%s1008_s26 + $0x18] sm:$0xff] }
 0x50a   : > { %6180 = vmatprep.subr.bf16.mxu1 %v6179_v18  ;;  %v6183_v22 = vpack.c.bf16 %v1991_v21, %v1990_v19 }
 0x50b   : > { %v1842_v28 = vrot.slane %v1835_v25, %v7347_v8  ;;  %v1850_v29 = vrot.slane %v5737_v39, %v7347_v8  ;;  %v1858_v23 = vrot.slane %v1851_v26, %v7347_v8  ;;  %v1866_v30 = vrot.slane %v5738_v27, %v7347_v8  ;;  %6182 = vmatpush3.bf16.msra.mxu1 %v6179_v18 }
 0x50c   : > { %6184 = vmatprep.subr.bf16.mxu1 %v6183_v22 }
 0x50d   : > { %v1867_v31 = vcombine.low %v1842_v28, %v1850_v29  ;;  %v1883_v4 = vcombine.low %v1858_v23, %v1866_v30  ;;  %v1868_v32 = vcombine.high %v1842_v28, %v1850_v29  ;;  %v1884_v33 = vcombine.high %v1858_v23, %v1866_v30  ;;  %v1907_v42 = vpop.permute.xlu1 %1906 }
 0x50f   : > { %v1875_v34 = vrot.slane %v1867_v31, %v7354_v10  ;;  %v1891_v35 = vrot.slane %v1883_v4, %v7354_v10  ;;  %v1882_v36 = vrot.slane %v1868_v32, %v7354_v10  ;;  %v1898_v37 = vrot.slane %v1884_v33, %v7354_v10  ;;  %6186 = vmatpush3.bf16.msra.mxu1 %v6183_v22 }
 0x510   : > { %5993 = vmatprep.subr.mxu1 %v6726_v20 }
 0x511   : > { %v1900_v38 = vcombine.high %v1875_v34, %v1891_v35  ;;  %v1899_v40 = vcombine.low %v1875_v34, %v1891_v35  ;;  %v1901_v41 = vcombine.low %v1882_v36, %v1898_v37  ;;  %v1902_v53 = vcombine.high %v1882_v36, %v1898_v37  ;;  %v5739_v34 = vld [vmem:[%s1003_s27] ss:$0 sm:$0xff] }
 0x513   : > { %v1910_v44 = vadd.f32 %v1907_v42, %v1900_v38  ;;  %v1909_v46 = vadd.f32 %v1907_v42, %v1899_v40  ;;  %v1911_v52 = vadd.f32 %v1907_v42, %v1901_v41  ;;  %v1912_v57 = vadd.f32 %v1907_v42, %v1902_v53  ;;  %v5740_v38 = vld [vmem:[%s860_s30] ss:$0 sm:$0xff]  ;;  %s6734_s30 = smov 16  }
 0x515   : > { %v1918_v48 = vsel %vm1676_vm13, %v1910_v44, 0.0  ;;  %v1915_v51 = vsel %vm1676_vm13, %v1909_v46, 0.0  ;;  %v1921_v55 = vsel %vm1676_vm13, %v1911_v52, 0.0  ;;  %v1924_v43 = vsel %vm1676_vm13, %v1912_v57, 0.0 }
 0x516   : > { %1919 = vadd.xlane.f32.xlu1 %v1918_v48  ;;  %1916 = vadd.xlane.f32.xlu0 %v1915_v51 }
 0x51a   : > { %1922 = vadd.xlane.f32.xlu0 %v1921_v55 }
 0x51e   : > { %1925 = vadd.xlane.f32.xlu0 %v1924_v43 }
 0x5a3   : > { %v1920_v58 = vpop.xlane.xlu1 %1919  ;;  %v1917_v59 = vpop.xlane.xlu0 %1916 }
 0x5a4   : > { %v1929_v60 = vmul.f32 0.03125, %v1920_v58  ;;  %v1928_v61 = vmul.f32 0.03125, %v1917_v59 }
 0x5a6   : > { %v1933_v62 = vsub.f32 %v1910_v44, %v1929_v60  ;;  %v1932_v63 = vsub.f32 %v1909_v46, %v1928_v61 }
 0x5a7   : > { %v1923_v0 = vpop.xlane.xlu0 %1922 }
 0x5a8   : > { %v1930_v1 = vmul.f32 0.03125, %v1923_v0  ;;  %v1937_v2 = vmul.f32 %v1933_v62, %v1933_v62  ;;  %v1936_v3 = vmul.f32 %v1932_v63, %v1932_v63 }
 0x5aa   : > { %v1934_v6 = vsub.f32 %v1911_v52, %v1930_v1  ;;  %v1943_v7 = vsel %vm1676_vm13, %v1937_v2, 0.0  ;;  %v1940_v45 = vsel %vm1676_vm13, %v1936_v3, 0.0 }
 0x5ab   : > { %1944 = vadd.xlane.f32.xlu0 %v1943_v7  ;;  %1941 = vadd.xlane.f32.xlu1 %v1940_v45  ;;  %v1926_v54 = vpop.xlane.xlu0 %1925 }
 0x5ac   : > { %v1931_v9 = vmul.f32 0.03125, %v1926_v54  ;;  %v1938_v11 = vmul.f32 %v1934_v6, %v1934_v6 }
 0x5ae   : > { %v1935_v12 = vsub.f32 %v1912_v57, %v1931_v9  ;;  %v1946_v13 = vsel %vm1676_vm13, %v1938_v11, 0.0 }
 0x5af   : > { %1947 = vadd.xlane.f32.xlu1 %v1946_v13 }
 0x5b0   : > { %v1939_v14 = vmul.f32 %v1935_v12, %v1935_v12 }
 0x5b2   : > { %v1949_v15 = vsel %vm1676_vm13, %v1939_v14, 0.0 }
 0x5b3   : > { %1950 = vadd.xlane.f32.xlu0 %v1949_v15 }
 0x638   : > { %v1942_v24 = vpop.xlane.xlu1 %1941  ;;  %v1945_v25 = vpop.xlane.xlu0 %1944 }
 0x639   : > { %v1952_v39 = vmul.f32 0.03125, %v1942_v24  ;;  %v1953_v26 = vmul.f32 0.03125, %v1945_v25 }
 0x63b   : > { %v1956_v27 = vadd.f32 1e-05, %v1952_v39  ;;  %v1957_v28 = vadd.f32 1e-05, %v1953_v26 }
 0x63c   : > { %v1948_v29 = vpop.xlane.xlu1 %1947 }
 0x63d   : > { %6315 = vrsqrt.f32 %v1956_v27  ;;  %v1954_v23 = vmul.f32 0.03125, %v1948_v29 }
 0x63e   : > { %6317 = vrsqrt.f32 %v1957_v28 }
 0x63f   : > { %v1958_v30 = vadd.f32 1e-05, %v1954_v23 }
 0x640   : > { %v1951_v31 = vpop.xlane.xlu0 %1950 }
 0x641   : > { %6319 = vrsqrt.f32 %v1958_v30  ;;  %v1955_v4 = vmul.f32 0.03125, %v1951_v31 }
 0x643   : > { %v1959_v32 = vadd.f32 1e-05, %v1955_v4 }
 0x645   : > { %6321 = vrsqrt.f32 %v1959_v32 }
 0x647   : > { %v6316_v33 = vpop.eup %6315 }
 0x648   : > { %v6318_v35 = vpop.eup %6317  ;;  %v1964_v36 = vmul.f32 %v6316_v33, %v1932_v63 }
 0x649   : > { %v1965_v37 = vmul.f32 %v6318_v35, %v1933_v62 }
 0x64a   : > { %v1974_v40 = vmul.f32 %v5739_v34, %v1964_v36 }
 0x64b   : > { %v6320_v41 = vpop.eup %6319  ;;  %v1975_v42 = vmul.f32 %v5739_v34, %v1965_v37 }
 0x64c   : > { %v7425_v44 = vadd.f32 %v5740_v38, %v1974_v40  ;;  %v1966_v46 = vmul.f32 %v6320_v41, %v1934_v6 }
 0x64d   : > { %v7427_v48 = vadd.f32 %v5740_v38, %v1975_v42 }
 0x64e   : > { %5972 = vmatprep.mubr.msk.f32.mxu1 %vm1676_vm13, %v7425_v44  ;;  %v1976_v51 = vmul.f32 %v5739_v34, %v1966_v46 }
 0x64f   : > { %v6322_v52 = vpop.eup %6321  ;;  %5973 = vmatmul.mubr.msk.f32.vlgmr.msra.gmra.mrb[6].mxu1 %vm1676_vm13, %v7427_v48 }
 0x650   : > { %v7433_v53 = vadd.f32 %v5740_v38, %v1976_v51  ;;  %v1967_v55 = vmul.f32 %v6322_v52, %v1935_v12 }
 0x652   : > { %5975 = vmatprep.mubr.msk.f32.mxu1 %vm1676_vm13, %v7433_v53  ;;  %v1977_v57 = vmul.f32 %v5739_v34, %v1967_v55 }
 0x654   : > { %v7437_v43 = vadd.f32 %v5740_v38, %v1977_v57 }
 0x656   : > { %5976 = vmatmul.mubr.msk.f32.gmra.mrb[8].mxu1 %vm1676_vm13, %v7437_v43 }
 0x657   : > { %5995 = vmatprep.mubr.msk.f32.mxu1 %vm6725_vm4, %v6726_v20 }
 0x722   : > { %v7443_v58 = vpop.f32.mrb[6].mxu1 }
 0x723   : > { %2163 = vrot.lane.b32.xlu0 %v7443_v58, %s6732_s29  ;;  %v7447_v59 = vpop.f32.mrb[7].mxu1 }
 0x724   : > { %2161 = vrot.lane.b32.xlu1 %v7447_v59, %s6732_s29 }
 0x729   : > { %v7451_v60 = vpop.f32.mrb[8].mxu1 }
 0x72a   : > { %v2105_v61 = vcombine.low %v7443_v58, %v7451_v60  ;;  %v2106_v62 = vcombine.high %v7443_v58, %v7451_v60  ;;  %v7457_v63 = vpop.f32.mrb[9].mxu1 }
 0x72b   : > { %v2089_v0 = vcombine.low %v7447_v59, %v7457_v63  ;;  %v2090_v1 = vcombine.high %v7447_v59, %v7457_v63  ;;  %2165 = vrot.lane.b32.xlu1 %v7457_v63, %s6732_s29 }
 0x72c   : > { %v2113_v2 = vrot.slane %v2105_v61, %v7347_v8  ;;  %v2120_v3 = vrot.slane %v2106_v62, %v7347_v8 }
 0x72d   : > { %v2097_v6 = vrot.slane %v2089_v0, %v7347_v8  ;;  %v2104_v7 = vrot.slane %v2090_v1, %v7347_v8 }
 0x72f   : > { %v2138_v45 = vcombine.high %v2104_v7, %v2120_v3  ;;  %2167 = vrot.lane.b32.xlu1 %v7451_v60, %s6732_s29  ;;  %v2121_v54 = vcombine.low %v2097_v6, %v2113_v2  ;;  %v2122_v9 = vcombine.high %v2097_v6, %v2113_v2  ;;  %v2137_v11 = vcombine.low %v2104_v7, %v2120_v3 }
 0x731   : > { %v2129_v12 = vrot.slane %v2121_v54, %v7354_v10  ;;  %v2136_v14 = vrot.slane %v2122_v9, %v7354_v10  ;;  %v7479_v16 = vrot.slane %v2137_v11, %v7354_v10  ;;  %v2152_v41 = vrot.slane %v2138_v45, %v7354_v10 }
 0x733   : > { %2329 = vrot.lane.b32.xlu0 %v2129_v12, %s6733_s7  ;;  %v2153_v13 = vcombine.high %v2129_v12, %v6726_v20  ;;  %v2154_v15 = vcombine.high %v2136_v14, %v6726_v20  ;;  %v2155_v17 = vcombine.high %v7479_v16, %v6726_v20  ;;  %v2156_v46 = vcombine.high %v2152_v41, %v6726_v20 }
 0x735   : > { %2331 = vrot.lane.b32.xlu1 %v2153_v13, %s6733_s7 }
 0x737   : > { %2333 = vrot.lane.b32.xlu0 %v2136_v14, %s6733_s7 }
 0x739   : > { %2335 = vrot.lane.b32.xlu1 %v2154_v15, %s6733_s7 }
 0x73b   : > { %2337 = vrot.lane.b32.xlu0 %v7479_v16, %s6733_s7 }
 0x73d   : > { %2339 = vrot.lane.b32.xlu1 %v2155_v17, %s6733_s7 }
 0x795   : > { %v2164_v24 = vpop.permute.xlu0 %2163 }
 0x796   : > { %v2162_v18 = vpop.permute.xlu1 %2161 }
 0x79d   : > { %v2166_v19 = vpop.permute.xlu1 %2165 }
 0x79e   : > { %v2173_v21 = vcombine.low %v2162_v18, %v2166_v19  ;;  %v2174_v22 = vcombine.high %v2162_v18, %v2166_v19 }
 0x7a0   : > { %v2181_v27 = vrot.slane %v2173_v21, %v7347_v8  ;;  %v2188_v28 = vrot.slane %v2174_v22, %v7347_v8 }
 0x7a1   : > { %v2168_v25 = vpop.permute.xlu1 %2167 }
 0x7a2   : > { %v2189_v39 = vcombine.low %v2164_v24, %v2168_v25  ;;  %v2190_v26 = vcombine.high %v2164_v24, %v2168_v25 }
 0x7a4   : > { %v2197_v29 = vrot.slane %v2189_v39, %v7347_v8  ;;  %v2204_v23 = vrot.slane %v2190_v26, %v7347_v8 }
 0x7a5   : > { %v2330_v51 = vpop.permute.xlu0 %2329 }
 0x7a6   : > { %v2205_v30 = vcombine.low %v2181_v27, %v2197_v29  ;;  %v2206_v31 = vcombine.high %v2181_v27, %v2197_v29  ;;  %v2221_v4 = vcombine.low %v2188_v28, %v2204_v23  ;;  %v2222_v37 = vcombine.high %v2188_v28, %v2204_v23 }
 0x7a7   : > { %v2332_v52 = vpop.permute.xlu1 %2331 }
 0x7a8   : > { %v2220_v32 = vrot.slane %v2206_v31, %v7354_v10  ;;  %v2213_v33 = vrot.slane %v2205_v30, %v7354_v10  ;;  %v2229_v34 = vrot.slane %v2221_v4, %v7354_v10  ;;  %v2236_v40 = vrot.slane %v2222_v37, %v7354_v10 }
 0x7a9   : > { %v2334_v55 = vpop.permute.xlu0 %2333 }
 0x7aa   : > { %2353 = vrot.lane.b32.xlu0 %v2213_v33, %s6733_s7  ;;  %5979 = vmatpush3.xpose.msk.msra.mxu0 %vm1246_vm9, %v2213_v33  ;;  %v2238_v35 = vcombine.high %v2220_v32, %v6726_v20  ;;  %v2237_v36 = vcombine.high %v2213_v33, %v6726_v20  ;;  %v2239_v38 = vcombine.high %v2229_v34, %v6726_v20 }
 0x7ab   : > { %5983 = vmatprep.subr.mxu0 %v6726_v20  ;;  %v2240_v42 = vcombine.high %v2236_v40, %v6726_v20  ;;  %v2336_v57 = vpop.permute.xlu1 %2335 }
 0x7ac   : > { %5994 = vmatpush3.xpose.msk.msra.mxu1 %vm1246_vm9, %v2238_v35  ;;  %2355 = vrot.lane.b32.xlu1 %v2237_v36, %s6733_s7 }
 0x7ad   : > { %5981 = vmatmul.mubr.msk.f32.vlgmr.msra.gmra.mrb[6].mxu0 %vm1246_vm9, %v2129_v12  ;;  %6003 = vmatprep.subr.mxu1 %v6726_v20  ;;  %v2338_v61 = vpop.permute.xlu0 %2337 }
 0x7ae   : > { %2357 = vrot.lane.b32.xlu0 %v2220_v32, %s6733_s7  ;;  %5984 = vmatpush3.xpose.msk.msra.mxu0 %vm1246_vm9, %v2237_v36 }
 0x7af   : > { %5996 = vmatmul.mubr.msk.f32.vlgmr.msra.gmra.mrb[10].mxu1 %vm1246_vm9, %v2154_v15  ;;  %5985 = vmatprep.mubr.msk.f32.mxu0 %vm6725_vm4, %v6726_v20  ;;  %v2340_v62 = vpop.permute.xlu1 %2339 }
 0x7b0   : > { %6004 = vmatpush3.xpose.msk.msra.mxu1 %vm1246_vm9, %v2239_v38  ;;  %2359 = vrot.lane.b32.xlu1 %v2238_v35, %s6733_s7 }
 0x7b1   : > { %5986 = vmatmul.mubr.msk.f32.vlgmr.msra.gmra.mrb[8].mxu0 %vm1246_vm9, %v2153_v13  ;;  %5988 = vmatprep.subr.mxu0 %v6726_v20 }
 0x7b2   : > { %6005 = vmatprep.mubr.msk.f32.mxu1 %vm6725_vm4, %v6726_v20  ;;  %2361 = vrot.lane.b32.xlu0 %v2229_v34, %s6733_s7 }
 0x7b3   : > { %5989 = vmatpush3.xpose.msk.msra.mxu0 %vm1246_vm9, %v2220_v32  ;;  %6006 = vmatmul.mubr.msk.f32.vlgmr.msra.gmra.mrb[12].mxu1 %vm1246_vm9, %v2155_v17 }
 0x7b4   : > { %6013 = vmatprep.subr.mxu1 %v6726_v20  ;;  %2363 = vrot.lane.b32.xlu1 %v2239_v38, %s6733_s7 }
 0x7b5   : > { %6014 = vmatpush3.xpose.msk.msra.mxu1 %vm1246_vm9, %v2240_v42  ;;  %5990 = vmatprep.mubr.msk.f32.mxu0 %vm6725_vm4, %v6726_v20 }
 0x7b6   : > { %5991 = vmatmul.mubr.msk.f32.vlgmr.msra.gmra.mrb[10].mxu0 %vm1246_vm9, %v2136_v14  ;;  %5998 = vmatprep.subr.mxu0 %v6726_v20 }
 0x7b7   : > { %6015 = vmatprep.mubr.msk.f32.mxu1 %vm6725_vm4, %v6726_v20  ;;  %2365 = vrot.lane.b32.xlu0 %v2236_v40, %s6733_s7 }
 0x7b8   : > { %5999 = vmatpush3.xpose.msk.msra.mxu0 %vm1246_vm9, %v2229_v34  ;;  %6016 = vmatmul.mubr.msk.f32.vlgmr.msra.gmra.mrb[14].mxu1 %vm1246_vm9, %v2156_v46 }
 0x7b9   : > { %2367 = vrot.lane.b32.xlu1 %v2240_v42, %s6733_s7  ;;  %6000 = vmatprep.mubr.msk.f32.mxu0 %vm6725_vm4, %v6726_v20 }
 0x7ba   : > { %6008 = vmatprep.subr.mxu0 %v6726_v20  ;;  %6023 = vmatprep.subr.mxu1 %v6726_v20 }
 0x7bb   : > { %6001 = vmatmul.mubr.msk.f32.vlgmr.msra.gmra.mrb[12].mxu0 %vm1246_vm9, %v7479_v16  ;;  %2341 = vrot.lane.b32.xlu0 %v2152_v41, %s6733_s7 }
 0x7bc   : > { %6009 = vmatpush3.xpose.msk.msra.mxu0 %vm1246_vm9, %v2236_v40  ;;  %6010 = vmatprep.mubr.msk.f32.mxu0 %vm6725_vm4, %v6726_v20 }
 0x7bd   : > { %2343 = vrot.lane.b32.xlu1 %v2156_v46, %s6733_s7  ;;  %6018 = vmatprep.subr.mxu0 %v6726_v20 }
 0x7be   : > { %6025 = vmatprep.mubr.msk.f32.mxu1 %vm6725_vm4, %v6726_v20 }
 0x7bf   : > { %6011 = vmatmul.mubr.msk.f32.vlgmr.msra.gmra.mrb[14].mxu0 %vm1246_vm9, %v2152_v41  ;;  %2243 = vrot.lane.b32.xlu0 %v7443_v58, %s6730_s8 }
 0x7c0   : > { %6020 = vmatprep.mubr.msk.f32.mxu0 %vm6725_vm4, %v6726_v20 }
 0x7c1   : > { %2241 = vrot.lane.b32.xlu1 %v7447_v59, %s6730_s8 }
 0x7c5   : > { %2245 = vrot.lane.b32.xlu1 %v7457_v63, %s6730_s8 }
 0x7c9   : > { %2247 = vrot.lane.b32.xlu1 %v7451_v60, %s6730_s8 }
 0x81c   : > { %v2354_v0 = vpop.permute.xlu0 %2353 }
 0x81d   : > { %6019 = vmatpush3.xpose.msk.msra.mxu0 %vm1246_vm9, %v2354_v0 }
 0x81e   : > { %v2356_v58 = vpop.permute.xlu1 %2355  ;;  %6028 = vmatprep.subr.mxu0 %v6726_v20 }
 0x81f   : > { %6024 = vmatpush3.xpose.msk.msra.mxu1 %vm1246_vm9, %v2356_v58 }
 0x820   : > { %6021 = vmatmul.mubr.msk.f32.vlgmr.msra.gmra.mrb[16].mxu0 %vm1246_vm9, %v2330_v51  ;;  %v2358_v59 = vpop.permute.xlu0 %2357  ;;  %6033 = vmatprep.subr.mxu1 %v6726_v20 }
 0x821   : > { %6029 = vmatpush3.xpose.msk.msra.mxu0 %vm1246_vm9, %v2358_v59  ;;  %6030 = vmatprep.mubr.msk.f32.mxu0 %vm6725_vm4, %v6726_v20 }
 0x822   : > { %6026 = vmatmul.mubr.msk.f32.vlgmr.msra.gmra.mrb[16].mxu1 %vm1246_vm9, %v2332_v52  ;;  %v2360_v60 = vpop.permute.xlu1 %2359  ;;  %6038 = vmatprep.subr.mxu0 %v6726_v20 }
 0x823   : > { %6034 = vmatpush3.xpose.msk.msra.mxu1 %vm1246_vm9, %v2360_v60  ;;  %6035 = vmatprep.mubr.msk.f32.mxu1 %vm6725_vm4, %v6726_v20 }
 0x824   : > { %6031 = vmatmul.mubr.msk.f32.vlgmr.msra.gmra.mrb[18].mxu0 %vm1246_vm9, %v2334_v55  ;;  %v2362_v63 = vpop.permute.xlu0 %2361  ;;  %6043 = vmatprep.subr.mxu1 %v6726_v20 }
 0x825   : > { %6039 = vmatpush3.xpose.msk.msra.mxu0 %vm1246_vm9, %v2362_v63  ;;  %6040 = vmatprep.mubr.msk.f32.mxu0 %vm6725_vm4, %v6726_v20 }
 0x826   : > { %6036 = vmatmul.mubr.msk.f32.vlgmr.msra.gmra.mrb[18].mxu1 %vm1246_vm9, %v2336_v57  ;;  %v2364_v1 = vpop.permute.xlu1 %2363  ;;  %6048 = vmatprep.subr.mxu0 %v6726_v20 }
 0x827   : > { %6044 = vmatpush3.xpose.msk.msra.mxu1 %vm1246_vm9, %v2364_v1  ;;  %6045 = vmatprep.mubr.msk.f32.mxu1 %vm6725_vm4, %v6726_v20 }
 0x828   : > { %6041 = vmatmul.mubr.msk.f32.vlgmr.msra.gmra.mrb[20].mxu0 %vm1246_vm9, %v2338_v61  ;;  %6053 = vmatprep.subr.mxu1 %v6726_v20 }
 0x829   : > { %v2366_v2 = vpop.permute.xlu0 %2365  ;;  %6050 = vmatprep.mubr.msk.f32.mxu0 %vm6725_vm4, %v6726_v20 }
 0x82a   : > { %6049 = vmatpush3.xpose.msk.msra.mxu0 %vm1246_vm9, %v2366_v2  ;;  %6046 = vmatmul.mubr.msk.f32.vlgmr.msra.gmra.mrb[20].mxu1 %vm1246_vm9, %v2340_v62 }
 0x82b   : > { %v2368_v3 = vpop.permute.xlu1 %2367  ;;  %6055 = vmatprep.mubr.msk.f32.mxu1 %vm6725_vm4, %v6726_v20  ;;  %6058 = vmatprep.subr.mxu0 %v6726_v20 }
 0x82c   : > { %6054 = vmatpush3.xpose.msk.msra.mxu1 %vm1246_vm9, %v2368_v3 }
 0x82d   : > { %v2342_v6 = vpop.permute.xlu0 %2341  ;;  %6063 = vmatprep.subr.mxu1 %v6726_v20 }
 0x82e   : > { %6051 = vmatmul.mubr.msk.f32.vlgmr.msra.gmra.mrb[22].mxu0 %vm1246_vm9, %v2342_v6 }
 0x82f   : > { %v2344_v7 = vpop.permute.xlu1 %2343  ;;  %6060 = vmatprep.mubr.msk.f32.mxu0 %vm6725_vm4, %v6726_v20 }
 0x830   : > { %6056 = vmatmul.mubr.msk.f32.vlgmr.msra.gmra.mrb[22].mxu1 %vm1246_vm9, %v2344_v7 }
 0x831   : > { %6065 = vmatprep.mubr.msk.f32.mxu1 %vm6725_vm4, %v6726_v20  ;;  %v2244_v12 = vpop.permute.xlu0 %2243 }
 0x833   : > { %v2242_v45 = vpop.permute.xlu1 %2241 }
 0x837   : > { %v2246_v54 = vpop.permute.xlu1 %2245 }
 0x838   : > { %v2254_v9 = vcombine.high %v2242_v45, %v2246_v54  ;;  %v2253_v11 = vcombine.low %v2242_v45, %v2246_v54 }
 0x83a   : > { %v2261_v16 = vrot.slane %v2253_v11, %v7347_v8  ;;  %v7602_v17 = vrot.slane %v2254_v9, %v7347_v8 }
 0x83b   : > { %v2248_v13 = vpop.permute.xlu1 %2247 }
 0x83c   : > { %v2269_v14 = vcombine.low %v2244_v12, %v2248_v13  ;;  %v2270_v15 = vcombine.high %v2244_v12, %v2248_v13 }
 0x83e   : > { %v2277_v18 = vrot.slane %v2269_v14, %v7347_v8  ;;  %v7606_v19 = vrot.slane %v2270_v15, %v7347_v8 }
 0x840   : > { %v2285_v21 = vcombine.low %v2261_v16, %v2277_v18  ;;  %v2286_v22 = vcombine.high %v2261_v16, %v2277_v18  ;;  %v2302_v24 = vcombine.high %v7602_v17, %v7606_v19 }
 0x842   : > { %v2293_v25 = vrot.slane %v2285_v21, %v7354_v10  ;;  %v7638_v58 = vrot.slane %v2286_v22, %v7354_v10 }
 0x844   : > { %2377 = vrot.lane.b32.xlu1 %v2293_v25, %s6733_s7  ;;  %v2317_v39 = vcombine.high %v2293_v25, %v6726_v20  ;;  %6059 = vmatpush3.msk.msra.mxu0 %vm3775_vm1, %v2293_v25 }
 0x845   : > { %6068 = vmatprep.subr.mxu0 %v6726_v20 }
 0x846   : > { %6064 = vmatpush3.msk.msra.mxu1 %vm3775_vm1, %v2317_v39 }
 0x847   : > { %6073 = vmatprep.subr.mxu1 %v6726_v20 }
 0x880   : > { %v2463_v26 = vpop.f32.mrb[6].mxu0 }
 0x881   : > { %v7617_v27 = vmul.f32 0.25, %v2463_v26  ;;  %v5982_v28 = vpop.f32.mrb[7].mxu0 }
 0x882   : > { %v2685_v29 = vpop.f32.mrb[10].mxu1 }
 0x883   : > { %v7619_v23 = vmul.f32 0.25, %v2685_v29  ;;  %v5997_v30 = vpop.f32.mrb[11].mxu1  ;;  %v3595_v31 = vsel %vm3594_vm2, %v7617_v27, -inf }
 0x884   : > { %3596 = vmax.xlane.f32.xlu0 %v3595_v31  ;;  %v2537_v4 = vpop.f32.mrb[8].mxu0 }
 0x885   : > { %v7623_v32 = vmul.f32 0.25, %v2537_v4  ;;  %v5987_v33 = vpop.f32.mrb[9].mxu0  ;;  %v3604_v37 = vsel %vm3594_vm2, %v7619_v23, -inf }
 0x886   : > { %v2833_v34 = vpop.f32.mrb[12].mxu1 }
 0x887   : > { %v7625_v35 = vmul.f32 0.25, %v2833_v34  ;;  %v6007_v36 = vpop.f32.mrb[13].mxu1  ;;  %v3598_v38 = vsel %vm3594_vm2, %v7623_v32, -inf }
 0x888   : > { %3605 = vmax.xlane.f32.xlu0 %v3604_v37  ;;  %3599 = vmax.xlane.f32.xlu1 %v3598_v38 }
 0x889   : > { %v2611_v40 = vpop.f32.mrb[10].mxu0  ;;  %v3610_v51 = vsel %vm3594_vm2, %v7625_v35, -inf }
 0x88a   : > { %v5992_v41 = vpop.f32.mrb[11].mxu0  ;;  %v7631_v42 = vmul.f32 0.25, %v2611_v40 }
 0x88b   : > { %v2981_v46 = vpop.f32.mrb[14].mxu1 }
 0x88c   : > { %v6017_v52 = vpop.f32.mrb[15].mxu1  ;;  %3611 = vmax.xlane.f32.xlu0 %v3610_v51  ;;  %v3601_v61 = vsel %vm3594_vm2, %v7631_v42, -inf  ;;  %v7649_v1 = vmul.f32 0.25, %v2981_v46 }
 0x88e   : > { %v2759_v55 = vpop.f32.mrb[12].mxu0  ;;  %v3616_v3 = vsel %vm3594_vm2, %v7649_v1, -inf }
 0x88f   : > { %v6002_v57 = vpop.f32.mrb[13].mxu0  ;;  %v7643_v59 = vmul.f32 0.25, %v2759_v55  ;;  %v2301_v55 = vcombine.low %v7602_v17, %v7606_v19 }
 0x890   : > { %3602 = vmax.xlane.f32.xlu0 %v3601_v61  ;;  %v7694_v61 = vcombine.high %v7638_v58, %v6726_v20 }
 0x891   : > { %v3607_v63 = vsel %vm3594_vm2, %v7643_v59, -inf  ;;  %v7690_v57 = vrot.slane %v2301_v55, %v7354_v10 }
 0x892   : > { %v2907_v62 = vpop.f32.mrb[14].mxu0 }
 0x893   : > { %v6012_v0 = vpop.f32.mrb[15].mxu0  ;;  %v7645_v60 = vmul.f32 0.25, %v2907_v62  ;;  %v7700_v62 = vcombine.high %v7690_v57, %v6726_v20 }
 0x895   : > { %v3613_v2 = vsel %vm3594_vm2, %v7645_v60, -inf }
 0x899   : > { %2381 = vrot.lane.b32.xlu1 %v7638_v58, %s6733_s7 }
 0x8a6   : > { %2379 = vrot.lane.b32.xlu0 %v2317_v39, %s6733_s7 }
 0x8bd   : > { %3608 = vmax.xlane.f32.xlu1 %v3607_v63  ;;  %v7706_v63 = vpop.permute.xlu1 %2377 }
 0x8c1   : > { %3614 = vmax.xlane.f32.xlu1 %v3613_v2 }
 0x8c5   : > { %3617 = vmax.xlane.f32.xlu0 %v3616_v3 }
 0x8f3   : > { %v3055_v6 = vpop.f32.mrb[16].mxu0 }
 0x8f4   : > { %v7655_v7 = vmul.f32 0.25, %v3055_v6  ;;  %v6022_v45 = vpop.f32.mrb[17].mxu0 }
 0x8f5   : > { %v3129_v54 = vpop.f32.mrb[16].mxu1 }
 0x8f6   : > { %v7657_v9 = vmul.f32 0.25, %v3129_v54  ;;  %v6027_v11 = vpop.f32.mrb[17].mxu1  ;;  %v3619_v12 = vsel %vm3594_vm2, %v7655_v7, -inf }
 0x8f7   : > { %3620 = vmax.xlane.f32.xlu1 %v3619_v12  ;;  %v3203_v13 = vpop.f32.mrb[18].mxu0 }
 0x8f8   : > { %v7661_v14 = vmul.f32 0.25, %v3203_v13  ;;  %v6032_v15 = vpop.f32.mrb[19].mxu0  ;;  %v3622_v16 = vsel %vm3594_vm2, %v7657_v9, -inf }
 0x8f9   : > { %v3277_v18 = vpop.f32.mrb[18].mxu1  ;;  %3623 = vmax.xlane.f32.xlu0 %v3622_v16 }
 0x8fa   : > { %v7665_v21 = vmul.f32 0.25, %v3277_v18  ;;  %v6037_v22 = vpop.f32.mrb[19].mxu1  ;;  %v3625_v25 = vsel %vm3594_vm2, %v7661_v14, -inf }
 0x8fb   : > { %3626 = vmax.xlane.f32.xlu1 %v3625_v25  ;;  %v3351_v39 = vpop.f32.mrb[20].mxu0 }
 0x8fc   : > { %v7669_v26 = vmul.f32 0.25, %v3351_v39  ;;  %v6042_v28 = vpop.f32.mrb[21].mxu0  ;;  %v3628_v29 = vsel %vm3594_vm2, %v7665_v21, -inf }
 0x8fd   : > { %v3425_v30 = vpop.f32.mrb[20].mxu1  ;;  %3629 = vmax.xlane.f32.xlu0 %v3628_v29 }
 0x8fe   : > { %v7673_v31 = vmul.f32 0.25, %v3425_v30  ;;  %v6047_v4 = vpop.f32.mrb[21].mxu1  ;;  %v3631_v33 = vsel %vm3594_vm2, %v7669_v26, -inf }
 0x8ff   : > { %3632 = vmax.xlane.f32.xlu1 %v3631_v33 }
 0x900   : > { %v3634_v34 = vsel %vm3594_vm2, %v7673_v31, -inf }
 0x901   : > { %v3499_v36 = vpop.f32.mrb[22].mxu0  ;;  %3635 = vmax.xlane.f32.xlu0 %v3634_v34 }
 0x902   : > { %v7679_v37 = vmul.f32 0.25, %v3499_v36  ;;  %v6052_v38 = vpop.f32.mrb[23].mxu0 }
 0x903   : > { %v3573_v40 = vpop.f32.mrb[22].mxu1 }
 0x904   : > { %v7681_v41 = vmul.f32 0.25, %v3573_v40  ;;  %v6057_v46 = vpop.f32.mrb[23].mxu1  ;;  %v3637_v51 = vsel %vm3594_vm2, %v7679_v37, -inf }
 0x905   : > { %3638 = vmax.xlane.f32.xlu1 %v3637_v51 }
 0x906   : > { %v3640_v52 = vsel %vm3594_vm2, %v7681_v41, -inf }
 0x907   : > { %3641 = vmax.xlane.f32.xlu0 %v3640_v52 }
 0x911   : > { %v3597_v0 = vpop.xlane.xlu0 %3596 }
 0x912   : > { %v3643_v6 = vsub.f32 %v7617_v27, %v3597_v0 }
 0x914   : > { %v3659_v11 = vmul.f32 1.442695, %v3643_v6 }
 0x915   : > { %v3606_v2 = vpop.xlane.xlu0 %3605  ;;  %v3600_v3 = vpop.xlane.xlu1 %3599 }
 0x916   : > { %2383 = vrot.lane.b32.xlu1 %v7694_v61, %s6733_s7  ;;  %v3644_v45 = vsub.f32 %v7623_v32, %v3600_v3  ;;  %v3646_v12 = vsub.f32 %v7619_v23, %v3606_v2  ;;  %6323 = vpow2.f32 %v3659_v11 }
 0x918   : > { %v3661_v13 = vmul.f32 1.442695, %v3644_v45  ;;  %v3665_v15 = vmul.f32 1.442695, %v3646_v12 }
 0x919   : > { %v3612_v54 = vpop.xlane.xlu0 %3611  ;;  %v7731_v33 = vpop.permute.xlu1 %2381 }
 0x91a   : > { %2387 = vrot.lane.b32.xlu1 %v7700_v62, %s6733_s7  ;;  %v3648_v16 = vsub.f32 %v7625_v35, %v3612_v54  ;;  %6325 = vpow2.f32 %v3661_v13 }
 0x91b   : > { %6327 = vpow2.f32 %v3665_v15 }
 0x91c   : > { %v3669_v22 = vmul.f32 1.442695, %v3648_v16 }
 0x91d   : > { %2385 = vrot.lane.b32.xlu0 %v7690_v57, %s6733_s7  ;;  %v3603_v18 = vpop.xlane.xlu0 %3602 }
 0x91e   : > { %v3645_v25 = vsub.f32 %v7631_v42, %v3603_v18  ;;  %6329 = vpow2.f32 %v3669_v22 }
 0x920   : > { %v3663_v39 = vmul.f32 1.442695, %v3645_v25  ;;  %v7713_v27 = vpop.eup %6323 }
 0x921   : > { %v3691_v23 = vsel %vm3594_vm2, %v7713_v27, 0.0  ;;  %v7736_v46 = vpop.permute.xlu0 %2379 }
 0x922   : > { %6331 = vpow2.f32 %v3663_v39 }
 0x924   : > { %v7715_v32 = vpop.eup %6325 }
 0x925   : > { %v7719_v28 = vpop.eup %6327  ;;  %v3694_v35 = vsel %vm3594_vm2, %v7715_v32, 0.0 }
 0x926   : > { %v3700_v42 = vsel %vm3594_vm2, %v7719_v28, 0.0 }
 0x928   : > { %v7725_v29 = vpop.eup %6329 }
 0x929   : > { %v3706_v30 = vsel %vm3594_vm2, %v7725_v29, 0.0 }
 0x92c   : > { %v7729_v4 = vpop.eup %6331 }
 0x92d   : > { %v3697_v34 = vsel %vm3594_vm2, %v7729_v4, 0.0 }
 0x93c   : > { %3692 = vadd.xlane.f32.xlu0 %v3691_v23 }
 0x93e   : > { %3695 = vadd.xlane.f32.xlu1 %v3694_v35 }
 0x940   : > { %3701 = vadd.xlane.f32.xlu0 %v3700_v42 }
 0x944   : > { %3707 = vadd.xlane.f32.xlu0 %v3706_v30 }
 0x948   : > { %3698 = vadd.xlane.f32.xlu0 %v3697_v34 }
 0x94a   : > { %v3609_v36 = vpop.xlane.xlu1 %3608 }
 0x94b   : > { %v3647_v38 = vsub.f32 %v7643_v59, %v3609_v36 }
 0x94d   : > { %v3667_v40 = vmul.f32 1.442695, %v3647_v38 }
 0x94e   : > { %v3615_v51 = vpop.xlane.xlu1 %3614 }
 0x94f   : > { %6333 = vpow2.f32 %v3667_v40  ;;  %v3649_v52 = vsub.f32 %v7645_v60, %v3615_v51 }
 0x951   : > { %v3671_v55 = vmul.f32 1.442695, %v3649_v52 }
 0x952   : > { %v3618_v0 = vpop.xlane.xlu0 %3617 }
 0x953   : > { %6335 = vpow2.f32 %v3671_v55  ;;  %v3650_v2 = vsub.f32 %v7649_v1, %v3618_v0 }
 0x955   : > { %v3673_v3 = vmul.f32 1.442695, %v3650_v2 }
 0x957   : > { %6337 = vpow2.f32 %v3673_v3 }
 0x959   : > { %v7740_v6 = vpop.eup %6333 }
 0x95a   : > { %v3703_v45 = vsel %vm3594_vm2, %v7740_v6, 0.0 }
 0x95b   : > { %3704 = vadd.xlane.f32.xlu1 %v3703_v45 }
 0x95d   : > { %v7744_v59 = vpop.eup %6335 }
 0x95e   : > { %v3709_v54 = vsel %vm3594_vm2, %v7744_v59, 0.0 }
 0x95f   : > { %3710 = vadd.xlane.f32.xlu1 %v3709_v54 }
 0x961   : > { %v7748_v60 = vpop.eup %6337 }
 0x962   : > { %v3712_v11 = vsel %vm3594_vm2, %v7748_v60, 0.0 }
 0x963   : > { %3713 = vadd.xlane.f32.xlu0 %v3712_v11 }
 0x984   : > { %v3621_v1 = vpop.xlane.xlu1 %3620 }
 0x985   : > { %v3651_v12 = vsub.f32 %v7655_v7, %v3621_v1 }
 0x986   : > { %v3624_v13 = vpop.xlane.xlu0 %3623 }
 0x987   : > { %v3675_v15 = vmul.f32 1.442695, %v3651_v12  ;;  %v3652_v16 = vsub.f32 %v7657_v9, %v3624_v13 }
 0x988   : > { %v3627_v18 = vpop.xlane.xlu1 %3626 }
 0x989   : > { %6339 = vpow2.f32 %v3675_v15  ;;  %v3677_v22 = vmul.f32 1.442695, %v3652_v16  ;;  %v3653_v25 = vsub.f32 %v7661_v14, %v3627_v18 }
 0x98a   : > { %v3630_v39 = vpop.xlane.xlu0 %3629 }
 0x98b   : > { %6341 = vpow2.f32 %v3677_v22  ;;  %v3679_v23 = vmul.f32 1.442695, %v3653_v25  ;;  %v3654_v35 = vsub.f32 %v7665_v21, %v3630_v39  ;;  %v2316_v22 = vrot.slane %v2302_v24, %v7354_v10 }
 0x98c   : > { %v3633_v42 = vpop.xlane.xlu1 %3632 }
 0x98d   : > { %6343 = vpow2.f32 %v3679_v23  ;;  %v3681_v30 = vmul.f32 1.442695, %v3654_v35  ;;  %v3655_v34 = vsub.f32 %v7669_v26, %v3633_v42  ;;  %v2320_v25 = vcombine.high %v2316_v22, %v6726_v20 }
 0x98e   : > { %v3636_v7 = vpop.xlane.xlu0 %3635 }
 0x98f   : > { %6345 = vpow2.f32 %v3681_v30  ;;  %v3683_v36 = vmul.f32 1.442695, %v3655_v34  ;;  %v3656_v9 = vsub.f32 %v7673_v31, %v3636_v7 }
 0x991   : > { %6347 = vpow2.f32 %v3683_v36  ;;  %v3685_v38 = vmul.f32 1.442695, %v3656_v9 }
 0x992   : > { %v3639_v40 = vpop.xlane.xlu1 %3638 }
 0x993   : > { %v7758_v51 = vpop.eup %6339  ;;  %6349 = vpow2.f32 %v3685_v38  ;;  %v3657_v14 = vsub.f32 %v7679_v37, %v3639_v40 }
 0x994   : > { %v3642_v52 = vpop.xlane.xlu0 %3641  ;;  %v3715_v21 = vsel %vm3594_vm2, %v7758_v51, 0.0 }
 0x995   : > { %v7763_v55 = vpop.eup %6341  ;;  %v3687_v26 = vmul.f32 1.442695, %v3657_v14  ;;  %v3658_v0 = vsub.f32 %v7681_v41, %v3642_v52  ;;  %3716 = vadd.xlane.f32.xlu1 %v3715_v21 }
 0x996   : > { %v3718_v31 = vsel %vm3594_vm2, %v7763_v55, 0.0  ;;  %v7799_v39 = vpop.permute.xlu1 %2383 }
 0x997   : > { %v7768_v2 = vpop.eup %6343  ;;  %6351 = vpow2.f32 %v3687_v26  ;;  %v3689_v3 = vmul.f32 1.442695, %v3658_v0  ;;  %3719 = vadd.xlane.f32.xlu0 %v3718_v31 }
 0x998   : > { %v3721_v37 = vsel %vm3594_vm2, %v7768_v2, 0.0  ;;  %v7801_v23 = vpop.permute.xlu0 %2385 }
 0x999   : > { %v7772_v45 = vpop.eup %6345  ;;  %6353 = vpow2.f32 %v3689_v3  ;;  %3722 = vadd.xlane.f32.xlu1 %v3721_v37 }
 0x99a   : > { %v3724_v54 = vsel %vm3594_vm2, %v7772_v45, 0.0  ;;  %v7803_v35 = vpop.permute.xlu1 %2387 }
 0x99b   : > { %v7776_v41 = vpop.eup %6347  ;;  %3725 = vadd.xlane.f32.xlu0 %v3724_v54 }
 0x99c   : > { %v3727_v11 = vsel %vm3594_vm2, %v7776_v41, 0.0 }
 0x99d   : > { %v7780_v1 = vpop.eup %6349  ;;  %3728 = vadd.xlane.f32.xlu1 %v3727_v11 }
 0x99e   : > { %v3730_v12 = vsel %vm3594_vm2, %v7780_v1, 0.0 }
 0x99f   : > { %3731 = vadd.xlane.f32.xlu0 %v3730_v12 }
 0x9a1   : > { %v7784_v13 = vpop.eup %6351 }
 0x9a2   : > { %v3733_v15 = vsel %vm3594_vm2, %v7784_v13, 0.0 }
 0x9a3   : > { %v7788_v16 = vpop.eup %6353  ;;  %3734 = vadd.xlane.f32.xlu1 %v3733_v15 }
 0x9a4   : > { %v3736_v18 = vsel %vm3594_vm2, %v7788_v16, 0.0 }
 0x9a5   : > { %3737 = vadd.xlane.f32.xlu0 %v3736_v18 }
 0x9b4   : > { %2391 = vrot.lane.b32.xlu1 %v2320_v25, %s6733_s7 }
 0x9bb   : > { %2389 = vrot.lane.b32.xlu0 %v2316_v22, %s6733_s7 }
 0x9c9   : > { %v3693_v42 = vpop.xlane.xlu0 %3692 }
 0x9ca   : > { %6355 = vrcp.f32 %v3693_v42 }
 0x9cb   : > { %v3696_v30 = vpop.xlane.xlu1 %3695 }
 0x9cc   : > { %6357 = vrcp.f32 %v3696_v30 }
 0x9cd   : > { %v3702_v34 = vpop.xlane.xlu0 %3701 }
 0x9ce   : > { %6359 = vrcp.f32 %v3702_v34 }
 0x9d1   : > { %v3708_v17 = vpop.xlane.xlu0 %3707 }
 0x9d2   : > { %6361 = vrcp.f32 %v3708_v17 }
 0x9d4   : > { %v6356_v19 = vpop.eup %6355 }
 0x9d5   : > { %v3740_v24 = vmul.f32 %v6356_v19, %v7713_v27  ;;  %v3699_v7 = vpop.xlane.xlu0 %3698 }
 0x9d6   : > { %v6358_v36 = vpop.eup %6357  ;;  %6363 = vrcp.f32 %v3699_v7 }
 0x9d7   : > { %v3742_v9 = vmul.f32 %v6358_v36, %v7715_v32  ;;  %6061 = vmatmul.mubr.msk.f32.vlgmr.msra.gmra.mrb[24].mxu0 %vm3771_vm3, %v3740_v24 }
 0x9d8   : > { %v6360_v38 = vpop.eup %6359  ;;  %6069 = vmatpush3.msk.msra.mxu0 %vm3775_vm1, %v7638_v58  ;;  %6070 = vmatprep.mubr.msk.f32.mxu0 %vm6725_vm4, %v6726_v20 }
 0x9d9   : > { %6066 = vmatmul.mubr.msk.f32.vlgmr.msra.gmra.mrb[24].mxu1 %vm3771_vm3, %v3742_v9  ;;  %6078 = vmatprep.subr.mxu0 %v6726_v20  ;;  %v3746_v27 = vmul.f32 %v6360_v38, %v7719_v28 }
 0x9da   : > { %6074 = vmatpush3.msk.msra.mxu1 %vm3775_vm1, %v7694_v61  ;;  %6075 = vmatprep.mubr.msk.f32.mxu1 %vm6725_vm4, %v6726_v20 }
 0x9db   : > { %6083 = vmatprep.subr.mxu1 %v6726_v20 }
 0x9dc   : > { %v6362_v32 = vpop.eup %6361 }
 0x9dd   : > { %6076 = vmatmul.mubr.msk.f32.vlgmr.msra.gmra.mrb[26].mxu1 %vm3771_vm3, %v3746_v27  ;;  %v3750_v58 = vmul.f32 %v6362_v32, %v7725_v29 }
 0x9de   : > { %6084 = vmatpush3.msk.msra.mxu1 %vm3775_vm1, %v7700_v62  ;;  %6085 = vmatprep.mubr.msk.f32.mxu1 %vm6725_vm4, %v6726_v20 }
 0x9df   : > { %6093 = vmatprep.subr.mxu1 %v6726_v20 }
 0x9e0   : > { %v6364_v61 = vpop.eup %6363 }
 0x9e1   : > { %v3744_v40 = vmul.f32 %v6364_v61, %v7729_v4  ;;  %6086 = vmatmul.mubr.msk.f32.vlgmr.msra.gmra.mrb[28].mxu1 %vm3771_vm3, %v3750_v58 }
 0x9e2   : > { %6094 = vmatpush3.msk.msra.mxu1 %vm3775_vm1, %v2320_v25  ;;  %6095 = vmatprep.mubr.msk.f32.mxu1 %vm6725_vm4, %v6726_v20 }
 0x9e3   : > { %6071 = vmatmul.mubr.msk.f32.vlgmr.msra.gmra.mrb[26].mxu0 %vm3771_vm3, %v3744_v40  ;;  %6103 = vmatprep.subr.mxu1 %v6726_v20 }
 0x9e4   : > { %6079 = vmatpush3.msk.msra.mxu0 %vm3775_vm1, %v7690_v57  ;;  %6080 = vmatprep.mubr.msk.f32.mxu0 %vm6725_vm4, %v6726_v20 }
 0x9e5   : > { %6088 = vmatprep.subr.mxu0 %v6726_v20 }
 0x9e8   : > { %v3705_v62 = vpop.xlane.xlu1 %3704 }
 0x9e9   : > { %6365 = vrcp.f32 %v3705_v62 }
 0x9ec   : > { %v3711_v28 = vpop.xlane.xlu1 %3710 }
 0x9ed   : > { %6367 = vrcp.f32 %v3711_v28 }
 0x9f0   : > { %v3714_v29 = vpop.xlane.xlu0 %3713 }
 0x9f1   : > { %6369 = vrcp.f32 %v3714_v29 }
 0x9f3   : > { %v6366_v4 = vpop.eup %6365 }
 0x9f4   : > { %v3748_v14 = vmul.f32 %v6366_v4, %v7740_v6 }
 0x9f6   : > { %6081 = vmatmul.mubr.msk.f32.vlgmr.msra.gmra.mrb[28].mxu0 %vm3771_vm3, %v3748_v14 }
 0x9f7   : > { %v6368_v52 = vpop.eup %6367  ;;  %6089 = vmatpush3.msk.msra.mxu0 %vm3775_vm1, %v2316_v22  ;;  %6090 = vmatprep.mubr.msk.f32.mxu0 %vm6725_vm4, %v6726_v20 }
 0x9f8   : > { %v3752_v57 = vmul.f32 %v6368_v52, %v7744_v59  ;;  %6098 = vmatprep.subr.mxu0 %v6726_v20 }
 0x9fa   : > { %6091 = vmatmul.mubr.msk.f32.vlgmr.msra.gmra.mrb[30].mxu0 %vm3771_vm3, %v3752_v57 }
 0x9fb   : > { %v6370_v21 = vpop.eup %6369  ;;  %6099 = vmatpush3.msk.msra.mxu0 %vm3775_vm1, %v7706_v63  ;;  %6100 = vmatprep.mubr.msk.f32.mxu0 %vm6725_vm4, %v6726_v20 }
 0x9fc   : > { %v3754_v6 = vmul.f32 %v6370_v21, %v7748_v60  ;;  %6108 = vmatprep.subr.mxu0 %v6726_v20 }
 0x9fe   : > { %6096 = vmatmul.mubr.msk.f32.vlgmr.msra.gmra.mrb[30].mxu1 %vm3771_vm3, %v3754_v6 }
 0x9ff   : > { %6104 = vmatpush3.msk.msra.mxu1 %vm3775_vm1, %v7736_v46  ;;  %6105 = vmatprep.mubr.msk.f32.mxu1 %vm6725_vm4, %v6726_v20 }
 0xa00   : > { %6113 = vmatprep.subr.mxu1 %v6726_v20 }
 0xa22   : > { %v3717_v59 = vpop.xlane.xlu1 %3716 }
 0xa23   : > { %6371 = vrcp.f32 %v3717_v59 }
 0xa24   : > { %v3720_v63 = vpop.xlane.xlu0 %3719 }
 0xa25   : > { %6373 = vrcp.f32 %v3720_v63 }
 0xa26   : > { %v3723_v26 = vpop.xlane.xlu1 %3722 }
 0xa27   : > { %6375 = vrcp.f32 %v3723_v26 }
 0xa28   : > { %v3726_v0 = vpop.xlane.xlu0 %3725 }
 0xa29   : > { %6377 = vrcp.f32 %v3726_v0 }
 0xa2a   : > { %v3729_v60 = vpop.xlane.xlu1 %3728 }
 0xa2b   : > { %6379 = vrcp.f32 %v3729_v60 }
 0xa2c   : > { %v3732_v31 = vpop.xlane.xlu0 %3731 }
 0xa2d   : > { %v6372_v3 = vpop.eup %6371  ;;  %6381 = vrcp.f32 %v3732_v31 }
 0xa2e   : > { %v3756_v46 = vmul.f32 %v6372_v3, %v7758_v51 }
 0xa2f   : > { %v6374_v37 = vpop.eup %6373 }
 0xa30   : > { %v3758_v54 = vmul.f32 %v6374_v37, %v7763_v55  ;;  %v3735_v11 = vpop.xlane.xlu1 %3734  ;;  %6101 = vmatmul.mubr.msk.f32.vlgmr.msra.gmra.mrb[32].mxu0 %vm3771_vm3, %v3756_v46 }
 0xa31   : > { %v6376_v12 = vpop.eup %6375  ;;  %6383 = vrcp.f32 %v3735_v11  ;;  %6109 = vmatpush3.msk.msra.mxu0 %vm3775_vm1, %v7731_v33  ;;  %6110 = vmatprep.mubr.msk.f32.mxu0 %vm6725_vm4, %v6726_v20 }
 0xa32   : > { %v3760_v15 = vmul.f32 %v6376_v12, %v7768_v2  ;;  %v3738_v18 = vpop.xlane.xlu0 %3737  ;;  %6106 = vmatmul.mubr.msk.f32.vlgmr.msra.gmra.mrb[32].mxu1 %vm3771_vm3, %v3758_v54  ;;  %6118 = vmatprep.subr.mxu0 %v6726_v20 }
 0xa33   : > { %v6378_v51 = vpop.eup %6377  ;;  %6385 = vrcp.f32 %v3738_v18  ;;  %6114 = vmatpush3.msk.msra.mxu1 %vm3775_vm1, %v7799_v39  ;;  %6115 = vmatprep.mubr.msk.f32.mxu1 %vm6725_vm4, %v6726_v20 }
 0xa34   : > { %v3762_v33 = vmul.f32 %v6378_v51, %v7772_v45  ;;  %6111 = vmatmul.mubr.msk.f32.vlgmr.msra.gmra.mrb[34].mxu0 %vm3771_vm3, %v3760_v15  ;;  %6123 = vmatprep.subr.mxu1 %v6726_v20 }
 0xa35   : > { %v6380_v55 = vpop.eup %6379  ;;  %6119 = vmatpush3.msk.msra.mxu0 %vm3775_vm1, %v7801_v23  ;;  %6120 = vmatprep.mubr.msk.f32.mxu0 %vm6725_vm4, %v6726_v20 }
 0xa36   : > { %v3764_v2 = vmul.f32 %v6380_v55, %v7776_v41  ;;  %6116 = vmatmul.mubr.msk.f32.vlgmr.msra.gmra.mrb[34].mxu1 %vm3771_vm3, %v3762_v33  ;;  %6128 = vmatprep.subr.mxu0 %v6726_v20  ;;  %v2390_v25 = vpop.permute.xlu0 %2389  ;;  %v2392_v41 = vpop.permute.xlu1 %2391 }
 0xa37   : > { %v6382_v22 = vpop.eup %6381  ;;  %6124 = vmatpush3.msk.msra.mxu1 %vm3775_vm1, %v7803_v35  ;;  %6125 = vmatprep.mubr.msk.f32.mxu1 %vm6725_vm4, %v6726_v20 }
 0xa38   : > { %v3766_v45 = vmul.f32 %v6382_v22, %v7780_v1  ;;  %6121 = vmatmul.mubr.msk.f32.vlgmr.msra.gmra.mrb[36].mxu0 %vm3771_vm3, %v3764_v2  ;;  %6133 = vmatprep.subr.mxu1 %v6726_v20 }
 0xa39   : > { %6129 = vmatpush3.msk.msra.mxu0 %vm3775_vm1, %v2390_v25  ;;  %6130 = vmatprep.mubr.msk.f32.mxu0 %vm6725_vm4, %v6726_v20 }
 0xa3a   : > { %6126 = vmatmul.mubr.msk.f32.vlgmr.msra.gmra.mrb[36].mxu1 %vm3771_vm3, %v3766_v45 }
 0xa3b   : > { %v6384_v39 = vpop.eup %6383  ;;  %6134 = vmatpush3.msk.msra.mxu1 %vm3775_vm1, %v2392_v41  ;;  %6135 = vmatprep.mubr.msk.f32.mxu1 %vm6725_vm4, %v6726_v20 }
 0xa3c   : > { %v3768_v1 = vmul.f32 %v6384_v39, %v7784_v13 }
 0xa3d   : > { %v6386_v23 = vpop.eup %6385 }
 0xa3e   : > { %v3770_v35 = vmul.f32 %v6386_v23, %v7788_v16  ;;  %6131 = vmatmul.mubr.msk.f32.vlgmr.msra.gmra.mrb[38].mxu0 %vm3771_vm3, %v3768_v1 }
 0xa40   : > { %6136 = vmatmul.mubr.msk.f32.vlgmr.msra.gmra.mrb[38].mxu1 %vm3771_vm3, %v3770_v35 }
 0xaaa   : > { %v3844_v42 = vpop.f32.mrb[24].mxu0 }
 0xaab   : > { %v6062_v30 = vpop.f32.mrb[25].mxu0 }
 0xaac   : > { %v3919_v34 = vpop.f32.mrb[24].mxu1 }
 0xaad   : > { %v6067_v17 = vpop.f32.mrb[25].mxu1 }
 0xab0   : > { %v4069_v19 = vpop.f32.mrb[26].mxu1 }
 0xab1   : > { %v6077_v24 = vpop.f32.mrb[27].mxu1 }
 0xab4   : > { %v4219_v7 = vpop.f32.mrb[28].mxu1 }
 0xab5   : > { %v6087_v36 = vpop.f32.mrb[29].mxu1 }
 0xab6   : > { %v3994_v9 = vpop.f32.mrb[26].mxu0 }
 0xab7   : > { %v6072_v38 = vpop.f32.mrb[27].mxu0 }
 0xac9   : > { %v4144_v20 = vpop.f32.mrb[28].mxu0 }
 0xaca   : > { %v6082_v27 = vpop.f32.mrb[29].mxu0 }
 0xacd   : > { %v4294_v13 = vpop.f32.mrb[30].mxu0 }
 0xace   : > { %v6092_v32 = vpop.f32.mrb[31].mxu0 }
 0xad1   : > { %v4369_v58 = vpop.f32.mrb[30].mxu1 }
 0xad2   : > { %v6097_v16 = vpop.f32.mrb[31].mxu1 }
 0xb03   : > { %v4444_v61 = vpop.f32.mrb[32].mxu0 }
 0xb04   : > { %4981 = vrot.lane.b32.xlu0 %v4444_v61, %s6734_s30  ;;  %v6102_v40 = vpop.f32.mrb[33].mxu0 }
 0xb05   : > { %v4519_v62 = vpop.f32.mrb[32].mxu1 }
 0xb06   : > { %4983 = vrot.lane.b32.xlu1 %v4519_v62, %s6734_s30  ;;  %v6107_v28 = vpop.f32.mrb[33].mxu1 }
 0xb07   : > { %v4594_v29 = vpop.f32.mrb[34].mxu0 }
 0xb08   : > { %4985 = vrot.lane.b32.xlu0 %v4594_v29, %s6734_s30  ;;  %v6112_v4 = vpop.f32.mrb[35].mxu0 }
 0xb09   : > { %v4669_v14 = vpop.f32.mrb[34].mxu1 }
 0xb0a   : > { %4987 = vrot.lane.b32.xlu1 %v4669_v14, %s6734_s30  ;;  %v6117_v52 = vpop.f32.mrb[35].mxu1 }
 0xb0b   : > { %v4744_v57 = vpop.f32.mrb[36].mxu0 }
 0xb0c   : > { %4989 = vrot.lane.b32.xlu0 %v4744_v57, %s6734_s30  ;;  %v6122_v21 = vpop.f32.mrb[37].mxu0 }
 0xb0d   : > { %v4819_v6 = vpop.f32.mrb[36].mxu1 }
 0xb0e   : > { %4991 = vrot.lane.b32.xlu1 %v4819_v6, %s6734_s30  ;;  %v6127_v59 = vpop.f32.mrb[37].mxu1 }
 0xb11   : > { %v4894_v63 = vpop.f32.mrb[38].mxu0 }
 0xb12   : > { %4993 = vrot.lane.b32.xlu0 %v4894_v63, %s6734_s30  ;;  %v6132_v26 = vpop.f32.mrb[39].mxu0 }
 0xb13   : > { %v4969_v0 = vpop.f32.mrb[38].mxu1 }
 0xb14   : > { %4995 = vrot.lane.b32.xlu1 %v4969_v0, %s6734_s30  ;;  %v6137_v60 = vpop.f32.mrb[39].mxu1 }
 0xb76   : > { %v4982_v31 = vpop.permute.xlu0 %4981 }
 0xb77   : > { %v5005_v37 = vsel %vm1246_vm9, %v3844_v42, %v4982_v31 }
 0xb78   : > { %v4984_v3 = vpop.permute.xlu1 %4983 }
 0xb79   : > { %v5006_v15 = vsel %vm1246_vm9, %v3919_v34, %v4984_v3 }
 0xb7a   : > { %v4986_v46 = vpop.permute.xlu0 %4985 }
 0xb7b   : > { %v5007_v54 = vsel %vm1246_vm9, %v3994_v9, %v4986_v46 }
 0xb7c   : > { %v5013_v11 = vcombine.low %v5005_v37, %v5007_v54  ;;  %v4988_v12 = vpop.permute.xlu1 %4987 }
 0xb7d   : > { %v5008_v18 = vsel %vm1246_vm9, %v4069_v19, %v4988_v12  ;;  %v5160_v12 = vld [vmem:[%s1013_s1 + $0x8] sm:$0xff] }
 0xb7e   : > { %v5021_v51 = vcombine.low %v5006_v15, %v5008_v18  ;;  %v4990_v33 = vpop.permute.xlu0 %4989  ;;  %v5020_v55 = vrot.slane %v5013_v11, %v7347_v8  ;;  %v5159_v11 = vld [vmem:[%s1013_s1] sm:$0xff]  ;;  %v5161_v18 = vld [vmem:[%s1013_s1 + $0x10] sm:$0xff] }
 0xb7f   : > { %v5009_v39 = vsel %vm1246_vm9, %v4144_v20, %v4990_v33  ;;  %v6187_v15 = vpack.c.bf16 %v5160_v12, %v5159_v11 }
 0xb80   : > { %v5028_v2 = vrot.slane %v5021_v51, %v7347_v8  ;;  %v4992_v22 = vpop.permute.xlu1 %4991  ;;  %v5162_v51 = vld [vmem:[%s1013_s1 + $0x18] sm:$0xff] }
 0xb81   : > { %v5010_v42 = vsel %vm1246_vm9, %v4219_v7, %v4992_v22  ;;  %6188 = vmatprep.subr.bf16.mxu0 %v6187_v15  ;;  %v6191_v33 = vpack.c.bf16 %v5162_v51, %v5161_v18  ;;  %v5423_v51 = vrot.slane %v7296_v47, %v7203_v5 }
 0xb82   : > { %v5045_v45 = vcombine.low %v5020_v55, %v5028_v2  ;;  %v5046_v25 = vcombine.high %v5020_v55, %v5028_v2  ;;  %6190 = vmatpush3.bf16.msra.mxu0 %v6187_v15  ;;  %v5271_v55 = vld [vmem:[%s7937_s13] sm:$0xff]  ;;  %v5272_v2 = vld [vmem:[%s7937_s13 + $0x8] sm:$0xff]  ;;  %v5427_v15 = vrot.slane %v7308_v56, %v7203_v5  ;;  %v5435_v56 = vrot.slane %v7336_v49, %v7203_v5 }
 0xb83   : > { %6192 = vmatprep.subr.bf16.mxu0 %v6191_v33  ;;  %v6195_v22 = vpack.c.bf16 %v5272_v2, %v5271_v55 }
 0xb84   : > { %v4994_v41 = vpop.permute.xlu0 %4993  ;;  %v5053_v9 = vrot.slane %v5045_v45, %v7354_v10  ;;  %v5060_v20 = vrot.slane %v5046_v25, %v7354_v10 }
 0xb85   : > { %v5011_v1 = vsel %vm1246_vm9, %v4294_v13, %v4994_v41  ;;  %6196 = vmatprep.subr.bf16.mxu1 %v6195_v22 }
 0xb86   : > { %v5029_v23 = vcombine.low %v5009_v39, %v5011_v1  ;;  %v4996_v35 = vpop.permute.xlu1 %4995  ;;  %6194 = vmatpush3.bf16.msra.mxu0 %v6191_v33  ;;  %6198 = vmatpush3.bf16.msra.mxu1 %v6195_v22 }
 0xb87   : > { %v5012_v30 = vsel %vm1246_vm9, %v4369_v58, %v4996_v35 }
 0xb88   : > { %v5037_v34 = vcombine.low %v5010_v42, %v5012_v30  ;;  %v5036_v17 = vrot.slane %v5029_v23, %v7347_v8 }
 0xb8a   : > { %v5044_v19 = vrot.slane %v5037_v34, %v7347_v8 }
 0xb8c   : > { %v5061_v24 = vcombine.low %v5036_v17, %v5044_v19  ;;  %v5062_v36 = vcombine.high %v5036_v17, %v5044_v19 }
 0xb8e   : > { %v5069_v38 = vrot.slane %v5061_v24, %v7354_v10  ;;  %v5076_v27 = vrot.slane %v5062_v36, %v7354_v10  ;;  %v5809_v36 = vld [vmem:[%s868_s6] ss:$0 sm:$0xff]  ;;  %s892_s6 = scalar_lea.vmem [#allocation17], %s7179_s9 }
 0xb90   : > { %v5078_v13 = vcombine.high %v5053_v9, %v5069_v38  ;;  %v5077_v32 = vcombine.low %v5053_v9, %v5069_v38  ;;  %v5079_v7 = vcombine.low %v5060_v20, %v5076_v27  ;;  %v5080_v16 = vcombine.high %v5060_v20, %v5076_v27  ;;  %v5810_v27 = vld [vmem:[%s876_s23] ss:$0 sm:$0xff] }
 0xb92   : > { %v5082_v58 = vadd.f32 %v5078_v13, %v7427_v48  ;;  %v5081_v61 = vadd.f32 %v5077_v32, %v7425_v44  ;;  %v5083_v62 = vadd.f32 %v5079_v7, %v7433_v53  ;;  %v5084_v10 = vadd.f32 %v5080_v16, %v7437_v43 }
 0xb94   : > { %v5090_v8 = vsel %vm1676_vm13, %v5082_v58, 0.0  ;;  %v5087_v40 = vsel %vm1676_vm13, %v5081_v61, 0.0  ;;  %v5093_v28 = vsel %vm1676_vm13, %v5083_v62, 0.0  ;;  %v5096_v29 = vsel %vm1676_vm13, %v5084_v10, 0.0 }
 0xb95   : > { %5091 = vadd.xlane.f32.xlu1 %v5090_v8  ;;  %5088 = vadd.xlane.f32.xlu0 %v5087_v40 }
 0xb99   : > { %5094 = vadd.xlane.f32.xlu0 %v5093_v28 }
 0xb9d   : > { %5097 = vadd.xlane.f32.xlu0 %v5096_v29 }
 0xc22   : > { %v5092_v4 = vpop.xlane.xlu1 %5091  ;;  %v5089_v48 = vpop.xlane.xlu0 %5088 }
 0xc23   : > { %v5100_v14 = vmul.f32 0.03125, %v5092_v4  ;;  %v5099_v44 = vmul.f32 0.03125, %v5089_v48  ;;  %v5273_v4 = vld [vmem:[%s7937_s13 + $0x10] sm:$0xff]  ;;  %v5274_v48 = vld [vmem:[%s7937_s13 + $0x18] sm:$0xff] }
 0xc25   : > { %v5104_v52 = vsub.f32 %v5082_v58, %v5100_v14  ;;  %v5103_v57 = vsub.f32 %v5081_v61, %v5099_v44  ;;  %v6199_v14 = vpack.c.bf16 %v5274_v48, %v5273_v4  ;;  %v5811_v44 = vld [vmem:[%s884_s2] ss:$0 sm:$0xff] }
 0xc26   : > { %v5095_v21 = vpop.xlane.xlu0 %5094 }
 0xc27   : > { %v5101_v6 = vmul.f32 0.03125, %v5095_v21  ;;  %v5108_v59 = vmul.f32 %v5104_v52, %v5104_v52  ;;  %v5107_v53 = vmul.f32 %v5103_v57, %v5103_v57  ;;  %6200 = vmatprep.subr.bf16.mxu1 %v6199_v14 }
 0xc28   : > { %6202 = vmatpush3.bf16.msra.mxu1 %v6199_v14 }
 0xc29   : > { %v5105_v63 = vsub.f32 %v5083_v62, %v5101_v6  ;;  %v5114_v26 = vsel %vm1676_vm13, %v5108_v59, 0.0  ;;  %v5111_v43 = vsel %vm1676_vm13, %v5107_v53, 0.0 }
 0xc2a   : > { %5115 = vadd.xlane.f32.xlu0 %v5114_v26  ;;  %5112 = vadd.xlane.f32.xlu1 %v5111_v43  ;;  %v5098_v0 = vpop.xlane.xlu0 %5097 }
 0xc2b   : > { %v5102_v60 = vmul.f32 0.03125, %v5098_v0  ;;  %v5109_v31 = vmul.f32 %v5105_v63, %v5105_v63 }
 0xc2d   : > { %v5106_v3 = vsub.f32 %v5084_v10, %v5102_v60  ;;  %v5117_v46 = vsel %vm1676_vm13, %v5109_v31, 0.0 }
 0xc2e   : > { %5118 = vadd.xlane.f32.xlu1 %v5117_v46 }
 0xc2f   : > { %v5110_v37 = vmul.f32 %v5106_v3, %v5106_v3 }
 0xc31   : > { %v5120_v54 = vsel %vm1676_vm13, %v5110_v37, 0.0 }
 0xc32   : > { %5121 = vadd.xlane.f32.xlu0 %v5120_v54 }
 0xcb7   : > { %v5113_v45 = vpop.xlane.xlu1 %5112  ;;  %v5116_v25 = vpop.xlane.xlu0 %5115 }
 0xcb8   : > { %v5123_v41 = vmul.f32 0.03125, %v5113_v45  ;;  %v5124_v39 = vmul.f32 0.03125, %v5116_v25 }
 0xcba   : > { %v5127_v1 = vadd.f32 1e-05, %v5123_v41  ;;  %v5128_v23 = vadd.f32 1e-05, %v5124_v39 }
 0xcbb   : > { %v5119_v35 = vpop.xlane.xlu1 %5118 }
 0xcbc   : > { %6387 = vrsqrt.f32 %v5127_v1  ;;  %v5125_v42 = vmul.f32 0.03125, %v5119_v35  ;;  %v5431_v1 = vrot.slane %v7339_v50, %v7203_v5 }
 0xcbd   : > { %6389 = vrsqrt.f32 %v5128_v23 }
 0xcbe   : > { %v5129_v30 = vadd.f32 1e-05, %v5125_v42 }
 0xcbf   : > { %v5122_v34 = vpop.xlane.xlu0 %5121 }
 0xcc0   : > { %6391 = vrsqrt.f32 %v5129_v30  ;;  %v5126_v17 = vmul.f32 0.03125, %v5122_v34 }
 0xcc2   : > { %v5130_v19 = vadd.f32 1e-05, %v5126_v17 }
 0xcc4   : > { %6393 = vrsqrt.f32 %v5130_v19 }
 0xcc6   : > { %v6388_v24 = vpop.eup %6387 }
 0xcc7   : > { %v6390_v9 = vpop.eup %6389  ;;  %v5135_v38 = vmul.f32 %v6388_v24, %v5103_v57 }
 0xcc8   : > { %v5136_v20 = vmul.f32 %v6390_v9, %v5104_v52 }
 0xcc9   : > { %v5145_v13 = vmul.f32 %v5809_v36, %v5135_v38 }
 0xcca   : > { %v6392_v32 = vpop.eup %6391  ;;  %v5146_v7 = vmul.f32 %v5809_v36, %v5136_v20 }
 0xccb   : > { %v5155_v16 = vadd.f32 %v5810_v27, %v5145_v13  ;;  %v5137_v58 = vmul.f32 %v6392_v32, %v5105_v63 }
 0xccc   : > { %v5156_v61 = vadd.f32 %v5810_v27, %v5146_v7 }
 0xccd   : > { %6146 = vmatprep.mubr.msk.f32.mxu0 %vm1676_vm13, %v5155_v16  ;;  %v5147_v8 = vmul.f32 %v5809_v36, %v5137_v58 }
 0xcce   : > { %v6394_v40 = vpop.eup %6393  ;;  %6147 = vmatmul.mubr.msk.f32.vlgmr.msra.gmra.mrb[40].mxu0 %vm1676_vm13, %v5156_v61 }
 0xccf   : > { %v5157_v62 = vadd.f32 %v5810_v27, %v5147_v8  ;;  %v5138_v28 = vmul.f32 %v6394_v40, %v5106_v3  ;;  %v5816_v3 = vld [vmem:[%s892_s6] ss:$0 sm:$0xff] }
 0xcd1   : > { %6149 = vmatprep.mubr.msk.f32.mxu0 %vm1676_vm13, %v5157_v62  ;;  %v5148_v10 = vmul.f32 %v5809_v36, %v5138_v28 }
 0xcd3   : > { %v5158_v29 = vadd.f32 %v5810_v27, %v5148_v10 }
 0xcd5   : > { %6150 = vmatmul.mubr.msk.f32.gmra.mrb[42].mxu0 %vm1676_vm13, %v5158_v29 }
 0xda1   : > { %v6148_v52 = vpop.f32.mrb[40].mxu0 }
 0xda2   : > { %v5254_v57 = vadd.f32 %v6148_v52, %v5811_v44  ;;  %v5248_v21 = vpop.f32.mrb[41].mxu0 }
 0xda3   : > { %v5249_v6 = vadd.f32 %v5811_v44, %v5248_v21 }
 0xda4   : > { %v5268_v53 = vmax.f32 %v5254_v57, 0.0 }
 0xda5   : > { %v5267_v59 = vmax.f32 %v5249_v6, 0.0 }
 0xda7   : > { %6160 = vmatprep.mubr.msk.f32.mxu1 %vm1676_vm13, %v5267_v59 }
 0xda8   : > { %v6151_v63 = vpop.f32.mrb[42].mxu0  ;;  %6161 = vmatmul.mubr.msk.f32.vlgmr.msra.gmra.mrb[40].mxu1 %vm1676_vm13, %v5268_v53 }
 0xda9   : > { %v5264_v26 = vadd.f32 %v6151_v63, %v5811_v44  ;;  %v5258_v43 = vpop.f32.mrb[43].mxu0 }
 0xdaa   : > { %v5259_v0 = vadd.f32 %v5811_v44, %v5258_v43 }
 0xdab   : > { %v5270_v31 = vmax.f32 %v5264_v26, 0.0 }
 0xdac   : > { %v5269_v60 = vmax.f32 %v5259_v0, 0.0 }
 0xdae   : > { %6163 = vmatprep.mubr.msk.f32.mxu1 %vm1676_vm13, %v5269_v60 }
 0xdaf   : > { %6164 = vmatmul.mubr.msk.f32.gmra.mrb[42].mxu1 %vm1676_vm13, %v5270_v31 }
 0xe7b   : > { %v6162_v46 = vpop.f32.mrb[40].mxu1 }
 0xe7c   : > { %v5366_v37 = vadd.f32 %v6162_v46, %v5816_v3  ;;  %v5360_v54 = vpop.f32.mrb[41].mxu1 }
 0xe7d   : > { %v5361_v11 = vadd.f32 %v5816_v3, %v5360_v54 }
 0xe7e   : > { %v5380_v12 = vadd.f32 %v5366_v37, %v5156_v61 }
 0xe7f   : > { %v5379_v18 = vadd.f32 %v5361_v11, %v5155_v16 }
 0xe80   : > { %v5441_v33 = vadd.f32 %v5427_v15, %v5380_v12 }
 0xe81   : > { %v5440_v55 = vadd.f32 %v5423_v51, %v5379_v18 }
 0xe82   : > { %5445 = vst.msk [vmem:[%s1023_s17 + $0x8] sm:$0xff] %vm1676_vm13, %v5441_v33  ;;  %v6165_v2 = vpop.f32.mrb[42].mxu1 }
 0xe83   : > { %5444 = vst.msk [vmem:[%s1023_s17] sm:$0xff] %vm1676_vm13, %v5440_v55  ;;  %v5376_v22 = vadd.f32 %v6165_v2, %v5816_v3  ;;  %v5370_v45 = vpop.f32.mrb[43].mxu1 }
 0xe84   : > { %v5371_v25 = vadd.f32 %v5816_v3, %v5370_v45 }
 0xe85   : > { %v5382_v41 = vadd.f32 %v5376_v22, %v5158_v29 }
 0xe86   : > { %v5381_v39 = vadd.f32 %v5371_v25, %v5157_v62 }
 0xe87   : > { %v5443_v23 = vadd.f32 %v5435_v56, %v5382_v41 }
 0xe88   : > { %v5442_v47 = vadd.f32 %v5431_v1, %v5381_v39 }
 0xe89   : > { %5447 = vst.msk [vmem:[%s1023_s17 + $0x18] sm:$0xff] %vm1676_vm13, %v5443_v23 }
 0xe8a   : > { %5446 = vst.msk [vmem:[%s1023_s17 + $0x10] sm:$0xff] %vm1676_vm13, %v5442_v47 }
 0xe8b PF: > { %s8108_s6 = sld [smem:[#allocation25_spill]]  ;;  %s8109_s1 = sld [smem:[#allocation23_spill]] }
 0xe8c   : > { %s8110_s26 = sld [smem:[#allocation24_spill]]  ;;  %s8111_s2 = sld [smem:[#allocation26_spill]] }
 0xe91   : > { %p45_p3 = scmp.ge.s32.totalorder %s8108_s6, 4  }
 0xe93   :  { %47 = sbr.rel (!%p45_p3) target bundleno = 29 (0x1d), region = 239 }
 0xe9a   :  { %5469 = vsyncpa [#allocation5], 1 }
 0xe9b   :  { %5471 = vsyncpa [#allocation5 + $0x1], 1 }
 0xe9c   :  { %5472 = vsyncpa [#allocation7], 1 }
 0xe9d   :  { %5473 = vsyncpa [#allocation10], 1 }
 0xe9e   :  { %5475 = vsyncpa [#allocation10 + $0x1], 1 }
 0xe9f   :  { %5476 = vsyncpa [#allocation13], 1 }
 0xea0   :  { %5478 = vsyncpa [#allocation13 + $0x1], 1 }
 0xea1   :  { %5479 = vsyncpa [#allocation16], 1 }
 0xea2   :  { %5481 = vsyncpa [#allocation16 + $0x1], 1 }

</bundles_post_ra>
